<compile_context>
chip_gen: v6e
topology: v6e:2x2x1
jax: 0.10.0
libtpu: 0.0.40
codegen_flags: <defaults>
</compile_context>

<pallas_src>
import functools

import jax
import jax.numpy as jnp
from jax.experimental import pallas as pl
from jax.experimental.pallas import tpu as pltpu


# ----------------------------------------------------------------------------
# Pallas kernel: fused multi-head attention + output projection for a block
# of Bt batch windows.
# ----------------------------------------------------------------------------
def _attn_share_global_kernel(q_ref, k_ref, v_ref, bias_ref, wp_ref, bp_ref,
                              o_ref, *, num_heads, head_dim, scale):
    # q_ref: (Bt, N, C) bf16   k_ref/v_ref: (Bt, M, C) bf16
    # bias_ref: (H, N, M) f32  wp_ref: (H, hd, C) f32  bp_ref: (1, C) f32
    Bt, _, C = q_ref.shape

    q = q_ref[...] * scale                    # scale folded into q (bf16)
    k = k_ref[...]
    v = v_ref[...]
    bias = bias_ref[...]                      # (H, N, M) f32

    # Hoisted broadcast of the projection weights (JAX does not CSE
    # broadcast_in_dim, so do it once rather than once per head).
    wp_b = jnp.broadcast_to(wp_ref[...][:, None, :, :],
                            (num_heads, Bt, head_dim, C))

    out = jnp.zeros(o_ref.shape, jnp.float32)
    for h in range(num_heads):                # static unroll (small H)
        lo = h * head_dim
        hi = lo + head_dim
        qh = q[:, :, lo:hi]                   # (Bt, N, hd) bf16
        kh = k[:, :, lo:hi]                   # (Bt, M, hd) bf16
        vh = v[:, :, lo:hi]                   # (Bt, M, hd) bf16

        # scores (MXU, bf16 in / f32 acc) + relative-position bias
        s = jnp.einsum("bnd,bmd->bnm", qh, kh,
                       preferred_element_type=jnp.float32)
        s = s + bias[h][None]                 # (Bt, N, M) f32

        # softmax over keys, kept in f32; reciprocal goes to the EUP
        m = jnp.max(s, axis=-1, keepdims=True)
        p = jnp.exp(s - m)
        denom = jnp.sum(p, axis=-1, keepdims=True)
        p = p * pl.reciprocal(denom, approx=True)
        # attn_drop: identity (eval mode)

        oh = jnp.einsum("bnm,bmd->bnd", p.astype(jnp.bfloat16), vh,
                        preferred_element_type=jnp.float32)    # (Bt, N, hd)

        # Head re-merge fused into the output projection:
        #   out[b, n, c] += sum_d oh[b, n, d] * W^T[h*hd + d, c]
        out = out + jnp.einsum("bnd,bdc->bnc", oh, wp_b[h],
                               preferred_element_type=jnp.float32)

    # proj bias; proj_drop: identity (eval mode)
    o_ref[...] = (out + bp_ref[...]).astype(o_ref.dtype)


def attention_share_global(q, k, v, rel_pos_bias, proj_w, proj_b, *,
                           num_heads, batch_block=8):
    """q: (B,N,C)  k,v: (B,M,C)  rel_pos_bias: (num_heads,N,M)."""
    B, N, C = q.shape
    _, M, _ = k.shape
    assert C % num_heads == 0
    head_dim = C // num_heads
    scale = head_dim ** (-0.5)
    assert rel_pos_bias.shape == (num_heads, N, M)

    out_dtype = q.dtype

    # MXU-native inputs: halves HBM traffic / VMEM for the large tensors.
    q = q.astype(jnp.bfloat16)
    k = k.astype(jnp.bfloat16)
    v = v.astype(jnp.bfloat16)

    # Batch blocking: Bt windows per grid step.  Keep >=2 grid steps where
    # possible (megacore / v7x 2-TC sharding via dimension_semantics).
    Bt = max(1, min(batch_block, B))
    num_blocks = pl.cdiv(B, Bt)
    B_pad = num_blocks * Bt
    if B_pad != B:
        pad = ((0, B_pad - B), (0, 0), (0, 0))
        q = jnp.pad(q, pad)
        k = jnp.pad(k, pad)
        v = jnp.pad(v, pad)

    # Fold the head re-merge into the projection: W^T (C,C) -> (H, hd, C).
    wp = proj_w.T.reshape(num_heads, head_dim, C).astype(jnp.float32)
    bp = proj_b.reshape(1, C).astype(jnp.float32)
    bias = rel_pos_bias.astype(jnp.float32)

    kern = functools.partial(_attn_share_global_kernel, num_heads=num_heads,
                             head_dim=head_dim, scale=scale)

    flops = B_pad * (4 * num_heads * N * M * head_dim + 2 * N * C * C)
    transcendentals = B_pad * num_heads * N * M
    bytes_accessed = (B_pad * N * C * 2 + 2 * B_pad * M * C * 2   # q, k, v bf16
                      + B_pad * N * C * 4                          # out f32
                      + num_heads * N * M * 4                      # bias
                      + num_heads * head_dim * C * 4 + C * 4)      # proj W, b

    out = pl.pallas_call(
        kern,
        out_shape=jax.ShapeDtypeStruct((B_pad, N, C), out_dtype),
        grid_spec=pltpu.PrefetchScalarGridSpec(
            num_scalar_prefetch=0,
            grid=(num_blocks,),
            in_specs=[
                pl.BlockSpec((Bt, N, C), lambda b: (b, 0, 0)),
                pl.BlockSpec((Bt, M, C), lambda b: (b, 0, 0)),
                pl.BlockSpec((Bt, M, C), lambda b: (b, 0, 0)),
                pl.BlockSpec((num_heads, N, M), lambda b: (0, 0, 0)),
                pl.BlockSpec((num_heads, head_dim, C), lambda b: (0, 0, 0)),
                pl.BlockSpec((1, C), lambda b: (0, 0)),
            ],
            out_specs=pl.BlockSpec((Bt, N, C), lambda b: (b, 0, 0)),
        ),
        compiler_params=pltpu.CompilerParams(
            dimension_semantics=("parallel",)),
        cost_estimate=pl.CostEstimate(flops=flops,
                                      transcendentals=transcendentals,
                                      bytes_accessed=bytes_accessed),
    )(q, k, v, bias, wp, bp)

    return out[:B] if B_pad != B else out
    # TODO(synk): if this op dominates a real profile, repack the wrapper
    # layout so the stored minor dim is >=128 lanes (C=32 leaves 75% lane
    # padding); left as-is since it is pure layout plumbing.


# ----------------------------------------------------------------------------
# Glue: dynamic position bias (dpb_pos MLP + relative position index table)
# ----------------------------------------------------------------------------
def compute_relative_position_bias(dpb_params, group_size, num_heads):
    Gh, Gw = group_size
    # NOTE: module uses group_size[0] for both axes of the bias grid.
    pbh = jnp.arange(1 - Gh, Gh)
    pbw = jnp.arange(1 - Gh, Gh)
    bh, bw = jnp.meshgrid(pbh, pbw, indexing="ij")
    biases = jnp.stack([bh, bw]).reshape(2, -1).T.astype(jnp.float32)

    ch, cw = jnp.meshgrid(jnp.arange(Gh), jnp.arange(Gh), indexing="ij")
    coords_flatten = jnp.stack([ch, cw]).reshape(2, -1)            # (2, Gh*Gh)
    rel = coords_flatten[:, :, None] - coords_flatten[:, None, :]
    rel = rel.transpose(1, 2, 0)
    rel = rel.at[:, :, 0].add(Gh - 1)
    rel = rel.at[:, :, 1].add(Gh - 1)
    rel = rel.at[:, :, 0].multiply(2 * Gh - 1)
    relative_position_index = rel.sum(-1)                          # (Gh², Gh²)

    # dpb_pos: Linear(2, pos_dim) -> ReLU -> Linear(pos_dim, num_heads)
    w1, b1, w2, b2 = dpb_params
    pos = jax.nn.relu(biases @ w1 + b1) @ w2 + b2   # ((2Gh-1)², num_heads)

    rpb = pos[relative_position_index.reshape(-1)].reshape(
        Gh * Gh, Gh * Gh, num_heads)
    if Gh != Gw:
        rpb = rpb[:, : Gw * Gw, :]
    return rpb.transpose(2, 0, 1)                   # (num_heads, Gh², Gw²)


# ----------------------------------------------------------------------------
# Pure-JAX reference (mirrors PyTorch forward, H/W != 7 branch), in f32.
# ----------------------------------------------------------------------------
def reference_forward(q, k, v, rel_pos_bias, proj_w, proj_b, *, num_heads):
    B, N, C = q.shape
    _, M, _ = k.shape
    hd = C // num_heads
    scale = hd ** (-0.5)
    qh = q.reshape(B, N, num_heads, hd).transpose(0, 2, 1, 3)
    kh = k.reshape(B, M, num_heads, hd).transpose(0, 2, 1, 3)
    vh = v.reshape(B, M, num_heads, hd).transpose(0, 2, 1, 3)
    attn = jnp.einsum("bhnd,bhmd->bhnm", qh, kh) * scale
    attn = attn + rel_pos_bias[None]
    attn = jax.nn.softmax(attn, axis=-1)
    x = jnp.einsum("bhnm,bhmd->bhnd", attn, vh)
    x = x.transpose(0, 2, 1, 3).reshape(B, N, C)
    return x @ proj_w.T + proj_b


# ----------------------------------------------------------------------------
if __name__ == "__main__":
    # Small shapes consistent with the module: group_size=(7,7) => N = M = 49.
    B = 8
    dim = 32
    num_heads = 4
    group_size = (7, 7)
    N = group_size[0] * group_size[0]
    M = group_size[1] * group_size[1]
    pos_dim = dim // 4

    key = jax.random.PRNGKey(0)
    kq, kk, kv, kw, kb, k1, k2, k3, k4 = jax.random.split(key, 9)

    q = jax.random.normal(kq, (B, N, dim), jnp.float32)
    k = jax.random.normal(kk, (B, M, dim), jnp.float32)
    v = jax.random.normal(kv, (B, M, dim), jnp.float32)

    # proj: nn.Linear(dim, dim)
    proj_w = jax.random.normal(kw, (dim, dim), jnp.float32) * 0.05
    proj_b = jax.random.normal(kb, (dim,), jnp.float32) * 0.05

    # dpb_pos: small MLP Linear(2, pos_dim) -> ReLU -> Linear(pos_dim, heads)
    dpb_params = (
        jax.random.normal(k1, (2, pos_dim), jnp.float32) * 0.1,
        jax.random.normal(k2, (pos_dim,), jnp.float32) * 0.1,
        jax.random.normal(k3, (pos_dim, num_heads), jnp.float32) * 0.1,
        jax.random.normal(k4, (num_heads,), jnp.float32) * 0.1,
    )

    rel_pos_bias = compute_relative_position_bias(
        dpb_params, group_size, num_heads)          # (num_heads, 49, 49)

    out = attention_share_global(q, k, v, rel_pos_bias, proj_w, proj_b,
                                 num_heads=num_heads, batch_block=4)
    out = jax.block_until_ready(out)

    ref = reference_forward(q, k, v, rel_pos_bias, proj_w, proj_b,
                            num_heads=num_heads)
    assert out.shape == (B, N, dim)
    # Kernel runs the two attention matmuls with bf16 operands (f32 softmax /
    # accumulation), so compare against the f32 reference with bf16 tolerance.
    assert jnp.allclose(out, ref, atol=5e-2, rtol=5e-2), "mismatch vs reference"

    # TODO(synk): the H==7 and W==7 branch (bias added only to the top-left
    # 49x49 sub-block of attn) is not exercised here; this script uses the
    # general branch where N == M == group_size**2.
    print("KERNEL_OK")
</pallas_src>

<mosaic_0001>
module attributes {stable_mosaic.version = 11 : i64} {
  func.func @_attn_share_global_kernel(%arg0: i32, %arg1: memref<4x49x32xbf16, #tpu.memory_space<vmem>>, %arg2: memref<4x49x32xbf16, #tpu.memory_space<vmem>>, %arg3: memref<4x49x32xbf16, #tpu.memory_space<vmem>>, %arg4: memref<4x49x49xf32, #tpu.memory_space<vmem>>, %arg5: memref<4x8x32xf32, #tpu.memory_space<vmem>>, %arg6: memref<1x32xf32, #tpu.memory_space<vmem>>, %arg7: memref<4x49x32xf32, #tpu.memory_space<vmem>>) attributes {dimension_semantics = [#tpu.dimension_semantics<parallel>], iteration_bounds = array<i64: 2>, scalar_prefetch = 0 : i64, scratch_operands = 0 : i64, tpu.core_type = #tpu.core_type<tc>, window_params = [{transform_indices = @transform_0, window_bounds = array<i64: 4, 49, 32>}, {transform_indices = @transform_1, window_bounds = array<i64: 4, 49, 32>}, {transform_indices = @transform_2, window_bounds = array<i64: 4, 49, 32>}, {pipeline_mode = #tpu.pipeline_mode<synchronous>, transform_indices = @transform_3, window_bounds = array<i64: 4, 49, 49>}, {pipeline_mode = #tpu.pipeline_mode<synchronous>, transform_indices = @transform_4, window_bounds = array<i64: 4, 8, 32>}, {pipeline_mode = #tpu.pipeline_mode<synchronous>, transform_indices = @transform_5, window_bounds = array<i64: 1, 32>}, {transform_indices = @transform_6, window_bounds = array<i64: 4, 49, 32>}]} {
    %c0 = arith.constant 0 : index
    %c0_0 = arith.constant 0 : index
    %c0_1 = arith.constant 0 : index
    %0 = vector.load %arg1[%c0, %c0_0, %c0_1] : memref<4x49x32xbf16, #tpu.memory_space<vmem>>, vector<4x49x32xbf16>
    %cst = arith.constant 3.535160e-01 : bf16
    %1 = vector.broadcast %cst : bf16 to vector<4x49x32xbf16>
    %2 = arith.mulf %0, %1 : vector<4x49x32xbf16>
    %c0_2 = arith.constant 0 : index
    %c0_3 = arith.constant 0 : index
    %c0_4 = arith.constant 0 : index
    %3 = vector.load %arg2[%c0_2, %c0_3, %c0_4] : memref<4x49x32xbf16, #tpu.memory_space<vmem>>, vector<4x49x32xbf16>
    %c0_5 = arith.constant 0 : index
    %c0_6 = arith.constant 0 : index
    %c0_7 = arith.constant 0 : index
    %4 = vector.load %arg3[%c0_5, %c0_6, %c0_7] : memref<4x49x32xbf16, #tpu.memory_space<vmem>>, vector<4x49x32xbf16>
    %c0_8 = arith.constant 0 : index
    %c0_9 = arith.constant 0 : index
    %c0_10 = arith.constant 0 : index
    %5 = vector.load %arg4[%c0_8, %c0_9, %c0_10] : memref<4x49x49xf32, #tpu.memory_space<vmem>>, vector<4x49x49xf32>
    %c0_11 = arith.constant 0 : index
    %c0_12 = arith.constant 0 : index
    %c0_13 = arith.constant 0 : index
    %6 = vector.load %arg5[%c0_11, %c0_12, %c0_13] : memref<4x8x32xf32, #tpu.memory_space<vmem>>, vector<4x8x32xf32>
    %7 = vector.shape_cast %6 : vector<4x8x32xf32> to vector<4x1x8x32xf32>
    %8 = vector.shape_cast %7 : vector<4x1x8x32xf32> to vector<4x1x8x32xf32>
    %9 = vector.broadcast %8 : vector<4x1x8x32xf32> to vector<4x4x8x32xf32>
    %cst_14 = arith.constant 0.000000e+00 : f32
    %10 = vector.broadcast %cst_14 : f32 to vector<4x49x32xf32>
    %11 = vector.extract_strided_slice %2 {offsets = [0, 0, 0], sizes = [4, 49, 8], strides = [1, 1, 1]} : vector<4x49x32xbf16> to vector<4x49x8xbf16>
    %12 = vector.extract_strided_slice %3 {offsets = [0, 0, 0], sizes = [4, 49, 8], strides = [1, 1, 1]} : vector<4x49x32xbf16> to vector<4x49x8xbf16>
    %13 = vector.extract_strided_slice %4 {offsets = [0, 0, 0], sizes = [4, 49, 8], strides = [1, 1, 1]} : vector<4x49x32xbf16> to vector<4x49x8xbf16>
    "tpu.trace_start"() <{level = 10 : i32, message = "bnd,bmd->bnm"}> : () -> ()
    %cst_15 = arith.constant dense<0.000000e+00> : vector<4x49x49xf32>
    %14 = tpu.matmul %11, %12, %cst_15 {dimension_numbers = #tpu.dot_dimension_numbers<[2], [2], [1], [1], [0, 0, 0, 1, 1, 1], [0], [0]>} : vector<4x49x8xbf16>, vector<4x49x8xbf16>, vector<4x49x49xf32> -> vector<4x49x49xf32>
    "tpu.trace_stop"() : () -> ()
    %15 = vector.extract_strided_slice %5 {offsets = [0, 0, 0], sizes = [1, 49, 49], strides = [1, 1, 1]} : vector<4x49x49xf32> to vector<1x49x49xf32>
    %16 = vector.shape_cast %15 : vector<1x49x49xf32> to vector<49x49xf32>
    %17 = vector.shape_cast %16 : vector<49x49xf32> to vector<1x49x49xf32>
    %18 = vector.broadcast %17 : vector<1x49x49xf32> to vector<4x49x49xf32>
    %19 = arith.addf %14, %18 : vector<4x49x49xf32>
    %cst_16 = arith.constant dense<0xFF800000> : vector<4x49xf32>
    %20 = vector.multi_reduction <maximumf>, %19, %cst_16 [2] : vector<4x49x49xf32> to vector<4x49xf32>
    %21 = vector.shape_cast %20 : vector<4x49xf32> to vector<4x49x1xf32>
    %22 = vector.broadcast %21 : vector<4x49x1xf32> to vector<4x49x49xf32>
    %23 = arith.subf %19, %22 : vector<4x49x49xf32>
    %24 = math.exp %23 : vector<4x49x49xf32>
    %cst_17 = arith.constant dense<0.000000e+00> : vector<4x49xf32>
    %25 = vector.multi_reduction <add>, %24, %cst_17 [2] : vector<4x49x49xf32> to vector<4x49xf32>
    %26 = vector.shape_cast %25 : vector<4x49xf32> to vector<4x49x1xf32>
    %27 = tpu.reciprocal %26 {approx = true} : vector<4x49x1xf32> -> vector<4x49x1xf32>
    %28 = vector.broadcast %27 : vector<4x49x1xf32> to vector<4x49x49xf32>
    %29 = arith.mulf %24, %28 : vector<4x49x49xf32>
    %30 = arith.truncf %29 : vector<4x49x49xf32> to vector<4x49x49xbf16>
    "tpu.trace_start"() <{level = 10 : i32, message = "bnm,bmd->bnd"}> : () -> ()
    %cst_18 = arith.constant dense<0.000000e+00> : vector<4x49x8xf32>
    %31 = tpu.matmul %30, %13, %cst_18 {dimension_numbers = #tpu.dot_dimension_numbers<[2], [1], [1], [2], [0, 0, 0, 1, 1, 2], [0], [0]>} : vector<4x49x49xbf16>, vector<4x49x8xbf16>, vector<4x49x8xf32> -> vector<4x49x8xf32>
    "tpu.trace_stop"() : () -> ()
    %32 = vector.extract_strided_slice %9 {offsets = [0, 0, 0, 0], sizes = [1, 4, 8, 32], strides = [1, 1, 1, 1]} : vector<4x4x8x32xf32> to vector<1x4x8x32xf32>
    %33 = vector.shape_cast %32 : vector<1x4x8x32xf32> to vector<4x8x32xf32>
    "tpu.trace_start"() <{level = 10 : i32, message = "bnd,bdc->bnc"}> : () -> ()
    %cst_19 = arith.constant dense<0.000000e+00> : vector<4x49x32xf32>
    %34 = tpu.matmul %31, %33, %cst_19 {dimension_numbers = #tpu.dot_dimension_numbers<[2], [1], [1], [2], [0, 0, 0, 1, 1, 2], [0], [0]>} : vector<4x49x8xf32>, vector<4x8x32xf32>, vector<4x49x32xf32> -> vector<4x49x32xf32>
    "tpu.trace_stop"() : () -> ()
    %35 = arith.addf %10, %34 : vector<4x49x32xf32>
    %36 = vector.extract_strided_slice %2 {offsets = [0, 0, 8], sizes = [4, 49, 8], strides = [1, 1, 1]} : vector<4x49x32xbf16> to vector<4x49x8xbf16>
    %37 = vector.extract_strided_slice %3 {offsets = [0, 0, 8], sizes = [4, 49, 8], strides = [1, 1, 1]} : vector<4x49x32xbf16> to vector<4x49x8xbf16>
    %38 = vector.extract_strided_slice %4 {offsets = [0, 0, 8], sizes = [4, 49, 8], strides = [1, 1, 1]} : vector<4x49x32xbf16> to vector<4x49x8xbf16>
    "tpu.trace_start"() <{level = 10 : i32, message = "bnd,bmd->bnm"}> : () -> ()
    %cst_20 = arith.constant dense<0.000000e+00> : vector<4x49x49xf32>
    %39 = tpu.matmul %36, %37, %cst_20 {dimension_numbers = #tpu.dot_dimension_numbers<[2], [2], [1], [1], [0, 0, 0, 1, 1, 1], [0], [0]>} : vector<4x49x8xbf16>, vector<4x49x8xbf16>, vector<4x49x49xf32> -> vector<4x49x49xf32>
    "tpu.trace_stop"() : () -> ()
    %40 = vector.extract_strided_slice %5 {offsets = [1, 0, 0], sizes = [1, 49, 49], strides = [1, 1, 1]} : vector<4x49x49xf32> to vector<1x49x49xf32>
    %41 = vector.shape_cast %40 : vector<1x49x49xf32> to vector<49x49xf32>
    %42 = vector.shape_cast %41 : vector<49x49xf32> to vector<1x49x49xf32>
    %43 = vector.broadcast %42 : vector<1x49x49xf32> to vector<4x49x49xf32>
    %44 = arith.addf %39, %43 : vector<4x49x49xf32>
    %cst_21 = arith.constant dense<0xFF800000> : vector<4x49xf32>
    %45 = vector.multi_reduction <maximumf>, %44, %cst_21 [2] : vector<4x49x49xf32> to vector<4x49xf32>
    %46 = vector.shape_cast %45 : vector<4x49xf32> to vector<4x49x1xf32>
    %47 = vector.broadcast %46 : vector<4x49x1xf32> to vector<4x49x49xf32>
    %48 = arith.subf %44, %47 : vector<4x49x49xf32>
    %49 = math.exp %48 : vector<4x49x49xf32>
    %cst_22 = arith.constant dense<0.000000e+00> : vector<4x49xf32>
    %50 = vector.multi_reduction <add>, %49, %cst_22 [2] : vector<4x49x49xf32> to vector<4x49xf32>
    %51 = vector.shape_cast %50 : vector<4x49xf32> to vector<4x49x1xf32>
    %52 = tpu.reciprocal %51 {approx = true} : vector<4x49x1xf32> -> vector<4x49x1xf32>
    %53 = vector.broadcast %52 : vector<4x49x1xf32> to vector<4x49x49xf32>
    %54 = arith.mulf %49, %53 : vector<4x49x49xf32>
    %55 = arith.truncf %54 : vector<4x49x49xf32> to vector<4x49x49xbf16>
    "tpu.trace_start"() <{level = 10 : i32, message = "bnm,bmd->bnd"}> : () -> ()
    %cst_23 = arith.constant dense<0.000000e+00> : vector<4x49x8xf32>
    %56 = tpu.matmul %55, %38, %cst_23 {dimension_numbers = #tpu.dot_dimension_numbers<[2], [1], [1], [2], [0, 0, 0, 1, 1, 2], [0], [0]>} : vector<4x49x49xbf16>, vector<4x49x8xbf16>, vector<4x49x8xf32> -> vector<4x49x8xf32>
    "tpu.trace_stop"() : () -> ()
    %57 = vector.extract_strided_slice %9 {offsets = [1, 0, 0, 0], sizes = [1, 4, 8, 32], strides = [1, 1, 1, 1]} : vector<4x4x8x32xf32> to vector<1x4x8x32xf32>
    %58 = vector.shape_cast %57 : vector<1x4x8x32xf32> to vector<4x8x32xf32>
    "tpu.trace_start"() <{level = 10 : i32, message = "bnd,bdc->bnc"}> : () -> ()
    %cst_24 = arith.constant dense<0.000000e+00> : vector<4x49x32xf32>
    %59 = tpu.matmul %56, %58, %cst_24 {dimension_numbers = #tpu.dot_dimension_numbers<[2], [1], [1], [2], [0, 0, 0, 1, 1, 2], [0], [0]>} : vector<4x49x8xf32>, vector<4x8x32xf32>, vector<4x49x32xf32> -> vector<4x49x32xf32>
    "tpu.trace_stop"() : () -> ()
    %60 = arith.addf %35, %59 : vector<4x49x32xf32>
    %61 = vector.extract_strided_slice %2 {offsets = [0, 0, 16], sizes = [4, 49, 8], strides = [1, 1, 1]} : vector<4x49x32xbf16> to vector<4x49x8xbf16>
    %62 = vector.extract_strided_slice %3 {offsets = [0, 0, 16], sizes = [4, 49, 8], strides = [1, 1, 1]} : vector<4x49x32xbf16> to vector<4x49x8xbf16>
    %63 = vector.extract_strided_slice %4 {offsets = [0, 0, 16], sizes = [4, 49, 8], strides = [1, 1, 1]} : vector<4x49x32xbf16> to vector<4x49x8xbf16>
    "tpu.trace_start"() <{level = 10 : i32, message = "bnd,bmd->bnm"}> : () -> ()
    %cst_25 = arith.constant dense<0.000000e+00> : vector<4x49x49xf32>
    %64 = tpu.matmul %61, %62, %cst_25 {dimension_numbers = #tpu.dot_dimension_numbers<[2], [2], [1], [1], [0, 0, 0, 1, 1, 1], [0], [0]>} : vector<4x49x8xbf16>, vector<4x49x8xbf16>, vector<4x49x49xf32> -> vector<4x49x49xf32>
    "tpu.trace_stop"() : () -> ()
    %65 = vector.extract_strided_slice %5 {offsets = [2, 0, 0], sizes = [1, 49, 49], strides = [1, 1, 1]} : vector<4x49x49xf32> to vector<1x49x49xf32>
    %66 = vector.shape_cast %65 : vector<1x49x49xf32> to vector<49x49xf32>
    %67 = vector.shape_cast %66 : vector<49x49xf32> to vector<1x49x49xf32>
    %68 = vector.broadcast %67 : vector<1x49x49xf32> to vector<4x49x49xf32>
    %69 = arith.addf %64, %68 : vector<4x49x49xf32>
    %cst_26 = arith.constant dense<0xFF800000> : vector<4x49xf32>
    %70 = vector.multi_reduction <maximumf>, %69, %cst_26 [2] : vector<4x49x49xf32> to vector<4x49xf32>
    %71 = vector.shape_cast %70 : vector<4x49xf32> to vector<4x49x1xf32>
    %72 = vector.broadcast %71 : vector<4x49x1xf32> to vector<4x49x49xf32>
    %73 = arith.subf %69, %72 : vector<4x49x49xf32>
    %74 = math.exp %73 : vector<4x49x49xf32>
    %cst_27 = arith.constant dense<0.000000e+00> : vector<4x49xf32>
    %75 = vector.multi_reduction <add>, %74, %cst_27 [2] : vector<4x49x49xf32> to vector<4x49xf32>
    %76 = vector.shape_cast %75 : vector<4x49xf32> to vector<4x49x1xf32>
    %77 = tpu.reciprocal %76 {approx = true} : vector<4x49x1xf32> -> vector<4x49x1xf32>
    %78 = vector.broadcast %77 : vector<4x49x1xf32> to vector<4x49x49xf32>
    %79 = arith.mulf %74, %78 : vector<4x49x49xf32>
    %80 = arith.truncf %79 : vector<4x49x49xf32> to vector<4x49x49xbf16>
    "tpu.trace_start"() <{level = 10 : i32, message = "bnm,bmd->bnd"}> : () -> ()
    %cst_28 = arith.constant dense<0.000000e+00> : vector<4x49x8xf32>
    %81 = tpu.matmul %80, %63, %cst_28 {dimension_numbers = #tpu.dot_dimension_numbers<[2], [1], [1], [2], [0, 0, 0, 1, 1, 2], [0], [0]>} : vector<4x49x49xbf16>, vector<4x49x8xbf16>, vector<4x49x8xf32> -> vector<4x49x8xf32>
    "tpu.trace_stop"() : () -> ()
    %82 = vector.extract_strided_slice %9 {offsets = [2, 0, 0, 0], sizes = [1, 4, 8, 32], strides = [1, 1, 1, 1]} : vector<4x4x8x32xf32> to vector<1x4x8x32xf32>
    %83 = vector.shape_cast %82 : vector<1x4x8x32xf32> to vector<4x8x32xf32>
    "tpu.trace_start"() <{level = 10 : i32, message = "bnd,bdc->bnc"}> : () -> ()
    %cst_29 = arith.constant dense<0.000000e+00> : vector<4x49x32xf32>
    %84 = tpu.matmul %81, %83, %cst_29 {dimension_numbers = #tpu.dot_dimension_numbers<[2], [1], [1], [2], [0, 0, 0, 1, 1, 2], [0], [0]>} : vector<4x49x8xf32>, vector<4x8x32xf32>, vector<4x49x32xf32> -> vector<4x49x32xf32>
    "tpu.trace_stop"() : () -> ()
    %85 = arith.addf %60, %84 : vector<4x49x32xf32>
    %86 = vector.extract_strided_slice %2 {offsets = [0, 0, 24], sizes = [4, 49, 8], strides = [1, 1, 1]} : vector<4x49x32xbf16> to vector<4x49x8xbf16>
    %87 = vector.extract_strided_slice %3 {offsets = [0, 0, 24], sizes = [4, 49, 8], strides = [1, 1, 1]} : vector<4x49x32xbf16> to vector<4x49x8xbf16>
    %88 = vector.extract_strided_slice %4 {offsets = [0, 0, 24], sizes = [4, 49, 8], strides = [1, 1, 1]} : vector<4x49x32xbf16> to vector<4x49x8xbf16>
    "tpu.trace_start"() <{level = 10 : i32, message = "bnd,bmd->bnm"}> : () -> ()
    %cst_30 = arith.constant dense<0.000000e+00> : vector<4x49x49xf32>
    %89 = tpu.matmul %86, %87, %cst_30 {dimension_numbers = #tpu.dot_dimension_numbers<[2], [2], [1], [1], [0, 0, 0, 1, 1, 1], [0], [0]>} : vector<4x49x8xbf16>, vector<4x49x8xbf16>, vector<4x49x49xf32> -> vector<4x49x49xf32>
    "tpu.trace_stop"() : () -> ()
    %90 = vector.extract_strided_slice %5 {offsets = [3, 0, 0], sizes = [1, 49, 49], strides = [1, 1, 1]} : vector<4x49x49xf32> to vector<1x49x49xf32>
    %91 = vector.shape_cast %90 : vector<1x49x49xf32> to vector<49x49xf32>
    %92 = vector.shape_cast %91 : vector<49x49xf32> to vector<1x49x49xf32>
    %93 = vector.broadcast %92 : vector<1x49x49xf32> to vector<4x49x49xf32>
    %94 = arith.addf %89, %93 : vector<4x49x49xf32>
    %cst_31 = arith.constant dense<0xFF800000> : vector<4x49xf32>
    %95 = vector.multi_reduction <maximumf>, %94, %cst_31 [2] : vector<4x49x49xf32> to vector<4x49xf32>
    %96 = vector.shape_cast %95 : vector<4x49xf32> to vector<4x49x1xf32>
    %97 = vector.broadcast %96 : vector<4x49x1xf32> to vector<4x49x49xf32>
    %98 = arith.subf %94, %97 : vector<4x49x49xf32>
    %99 = math.exp %98 : vector<4x49x49xf32>
    %cst_32 = arith.constant dense<0.000000e+00> : vector<4x49xf32>
    %100 = vector.multi_reduction <add>, %99, %cst_32 [2] : vector<4x49x49xf32> to vector<4x49xf32>
    %101 = vector.shape_cast %100 : vector<4x49xf32> to vector<4x49x1xf32>
    %102 = tpu.reciprocal %101 {approx = true} : vector<4x49x1xf32> -> vector<4x49x1xf32>
    %103 = vector.broadcast %102 : vector<4x49x1xf32> to vector<4x49x49xf32>
    %104 = arith.mulf %99, %103 : vector<4x49x49xf32>
    %105 = arith.truncf %104 : vector<4x49x49xf32> to vector<4x49x49xbf16>
    "tpu.trace_start"() <{level = 10 : i32, message = "bnm,bmd->bnd"}> : () -> ()
    %cst_33 = arith.constant dense<0.000000e+00> : vector<4x49x8xf32>
    %106 = tpu.matmul %105, %88, %cst_33 {dimension_numbers = #tpu.dot_dimension_numbers<[2], [1], [1], [2], [0, 0, 0, 1, 1, 2], [0], [0]>} : vector<4x49x49xbf16>, vector<4x49x8xbf16>, vector<4x49x8xf32> -> vector<4x49x8xf32>
    "tpu.trace_stop"() : () -> ()
    %107 = vector.extract_strided_slice %9 {offsets = [3, 0, 0, 0], sizes = [1, 4, 8, 32], strides = [1, 1, 1, 1]} : vector<4x4x8x32xf32> to vector<1x4x8x32xf32>
    %108 = vector.shape_cast %107 : vector<1x4x8x32xf32> to vector<4x8x32xf32>
    "tpu.trace_start"() <{level = 10 : i32, message = "bnd,bdc->bnc"}> : () -> ()
    %cst_34 = arith.constant dense<0.000000e+00> : vector<4x49x32xf32>
    %109 = tpu.matmul %106, %108, %cst_34 {dimension_numbers = #tpu.dot_dimension_numbers<[2], [1], [1], [2], [0, 0, 0, 1, 1, 2], [0], [0]>} : vector<4x49x8xf32>, vector<4x8x32xf32>, vector<4x49x32xf32> -> vector<4x49x32xf32>
    "tpu.trace_stop"() : () -> ()
    %110 = arith.addf %85, %109 : vector<4x49x32xf32>
    %c0_35 = arith.constant 0 : index
    %c0_36 = arith.constant 0 : index
    %111 = vector.load %arg6[%c0_35, %c0_36] : memref<1x32xf32, #tpu.memory_space<vmem>>, vector<1x32xf32>
    %112 = vector.shape_cast %111 : vector<1x32xf32> to vector<1x1x32xf32>
    %113 = vector.broadcast %112 : vector<1x1x32xf32> to vector<4x49x32xf32>
    %114 = arith.addf %110, %113 : vector<4x49x32xf32>
    %c0_37 = arith.constant 0 : index
    %c0_38 = arith.constant 0 : index
    %c0_39 = arith.constant 0 : index
    %115 = vector.load %arg7[%c0_37, %c0_38, %c0_39] : memref<4x49x32xf32, #tpu.memory_space<vmem>>, vector<4x49x32xf32>
    tpu.vector_store %arg7[%c0_37, %c0_38, %c0_39], %114 {strides = array<i32>} : memref<4x49x32xf32, #tpu.memory_space<vmem>>, vector<4x49x32xf32>,
    return
  }
  func.func @transform_0(%arg0: i32) -> (i32, i32, i32) {
    %c0_i32 = arith.constant 0 : i32
    %c0_i32_0 = arith.constant 0 : i32
    %c0_i32_1 = arith.constant 0 : i32
    return %arg0, %c0_i32, %c0_i32_0 : i32, i32, i32
  }
  func.func @transform_1(%arg0: i32) -> (i32, i32, i32) {
    %c0_i32 = arith.constant 0 : i32
    %c0_i32_0 = arith.constant 0 : i32
    %c0_i32_1 = arith.constant 0 : i32
    return %arg0, %c0_i32, %c0_i32_0 : i32, i32, i32
  }
  func.func @transform_2(%arg0: i32) -> (i32, i32, i32) {
    %c0_i32 = arith.constant 0 : i32
    %c0_i32_0 = arith.constant 0 : i32
    %c0_i32_1 = arith.constant 0 : i32
    return %arg0, %c0_i32, %c0_i32_0 : i32, i32, i32
  }
  func.func @transform_3(%arg0: i32) -> (i32, i32, i32) {
    %c0_i32 = arith.constant 0 : i32
    %c0_i32_0 = arith.constant 0 : i32
    %c0_i32_1 = arith.constant 0 : i32
    %c0_i32_2 = arith.constant 0 : i32
    return %c0_i32, %c0_i32_0, %c0_i32_1 : i32, i32, i32
  }
  func.func @transform_4(%arg0: i32) -> (i32, i32, i32) {
    %c0_i32 = arith.constant 0 : i32
    %c0_i32_0 = arith.constant 0 : i32
    %c0_i32_1 = arith.constant 0 : i32
    %c0_i32_2 = arith.constant 0 : i32
    return %c0_i32, %c0_i32_0, %c0_i32_1 : i32, i32, i32
  }
  func.func @transform_5(%arg0: i32) -> (i32, i32) {
    %c0_i32 = arith.constant 0 : i32
    %c0_i32_0 = arith.constant 0 : i32
    %c0_i32_1 = arith.constant 0 : i32
    return %c0_i32, %c0_i32_0 : i32, i32
  }
  func.func @transform_6(%arg0: i32) -> (i32, i32, i32) {
    %c0_i32 = arith.constant 0 : i32
    %c0_i32_0 = arith.constant 0 : i32
    %c0_i32_1 = arith.constant 0 : i32
    return %arg0, %c0_i32, %c0_i32_0 : i32, i32, i32
  }
}

</mosaic_0001>

<bundles_post_ra>
// kernel: tpu_custom_call.1
= control target key start
LH: loop header
LB: loop body
LE: loop exit
PB: predicated region body
PF: predicated region fallthrough
CT: control target
= control target key end

     0   :  { %s9364_s21 = smov 0   ;;  %s12489_s0 = inlined_call_operand.vmem [shape: bf16[8,49,32], index: 0, kind: input, shape index: {}]   ;;  %s12490_s1 = inlined_call_operand.vmem [shape: bf16[8,49,32], index: 1, kind: input, shape index: {}]   ;;  %s12491_s2 = inlined_call_operand.vmem [shape: bf16[8,49,32], index: 2, kind: input, shape index: {}]   ;;  %s12492_s3 = inlined_call_operand.vmem [shape: f32[4,49,49], index: 3, kind: input, shape index: {}]   ;;  %s12493_s4 = inlined_call_operand.vmem [shape: f32[4,8,32], index: 4, kind: input, shape index: {}]   ;;  %s12494_s5 = inlined_call_operand.vmem [shape: f32[1,32], index: 5, kind: input, shape index: {}]   ;;  %s12495_s6 = inlined_call_operand.vmem [shape: f32[8,49,32], index: 6, kind: output, shape index: {}]  }
   0x1 LB: > { %s7121_s22 = sadd.s32 4294967295, %s9321_s21   ;;  %p7125_p0 = scmp.ge.s32.totalorder %s9321_s21, 1  ;;  %s9321_s21 = sphi %s9364_s21, %s16_s21  }
   0x2   : > { %p238_p1 = scmp.lt.s32.totalorder %s9321_s21, 3 }
   0x4   : > { %p239_p2 = pnand %p7125_p0, %p238_p1 }
   0x6   : > { %242 = sbr.rel (%p239_p2) target bundleno = 3404 (0xd4c), region = 44 }
   0xb   : > { %s7126_s23 = sshll.u32 %s7121_s22, 2  ;;  %vm492_vm0 = vcmask 64512   ;;  %s9323_s28 = smov 120   ;;  %vm953_vm1 = vcmask 400384   ;;  %vm972_vm2 = vcmask 393216   ;;  %vm1312_vm3 = vcmask 1040384  }
   0xc   : > { %p283_p3 = scmp.lt.s32.totalorder %s7126_s23, 7  ;;  %s9325_s19 = smov 112   ;;  %vm9327_vm4 = vmmov 0   ;;  %vm7009_vm5 = vcmask 261120   ;;  %vm7016_vm6 = vcmask 253952  }
   0xd   : > { %s9328_s18 = smov 104  }
   0xe   : > { %s12725_s23 = smov (!%p283_p3, %s7126_s23), 7 }
   0xf   : > { %s9375_s24 = smul.u32 28, %s12725_s23 }
  0x10   : > { %s8754_s15 = smul.u32 56, %s12725_s23 }
  0x11   : > { %s9381_s27 = scalar_lea.vmem %s12490_s1, %s9375_s24  ;;  %s9399_s7 = scalar_lea.vmem %s12489_s0, %s9375_s24 }
  0x12   : > { %v8769_v0 = vld [vmem:[%s9381_s27 + $0x18] ss:$0 sps:$4 sm:$0x11]   ;;  %v8771_v1 = vld [vmem:[%s9381_s27 + $0x10] sm:$0xff]   ;;  %v8773_v6 = vld [vmem:[%s9381_s27 + $0x8] sm:$0xff]   ;;  %s9827_s29 = scalar_lea.vmem %s12491_s2, %s9375_s24 }
  0x13   : > { %v8770_v2 = vld [vmem:[%s9381_s27 + $0x34] ss:$0 sps:$4 sm:$0x11]   ;;  %v8772_v3 = vld [vmem:[%s9381_s27 + $0x2c] sm:$0xff]   ;;  %8689 = vmatprep.subr.msk.bf16.mxu0 %vm492_vm0, %v8769_v0  ;;  %v515_v4 = vsel %vm492_vm0, %v8769_v0, 0  ;;  %1696 = vrot.lane.b32.xlu0 %v8769_v0, %s9323_s28  ;;  %v512_v7 = vsel %vm492_vm0, %v8771_v1, 0 }
  0x14   : > { %8693 = vmatprep.subr.msk.bf16.mxu1 %vm492_vm0, %v8770_v2  ;;  %7810 = vmatpush3.bf16.xpose.msra.mxu0 %v515_v4  ;;  %v639_v5 = vsel %vm492_vm0, %v8770_v2, 0  ;;  %v312_v8 = vld [vmem:[%s9399_s7] sm:$0xf]  ;;  %v313_v9 = vld [vmem:[%s9399_s7 + $0x4] sm:$0xf]  ;;  %v636_v10 = vsel %vm492_vm0, %v8772_v3, 0 }
  0x15   : > { %7826 = vmatpush3.bf16.xpose.msra.mxu1 %v639_v5  ;;  %8690 = vmatprep.subr.msk.bf16.mxu0 %vm492_vm0, %v8771_v1  ;;  %v8774_v11 = vld [vmem:[%s9381_s27 + $0x24] sm:$0xff]   ;;  %v340_v12 = vmul.bf16 1052065461, %v312_v8  ;;  %v341_v13 = vmul.bf16 1052065461, %v313_v9  ;;  %v509_v20 = vsel %vm492_vm0, %v8773_v6, 0 }
  0x16   : > { %8694 = vmatprep.subr.msk.bf16.mxu1 %vm492_vm0, %v8772_v3  ;;  %1800 = vrot.lane.b32.xlu1 %v8770_v2, %s9323_s28  ;;  %v319_v14 = vld [vmem:[%s9399_s7 + $0x1c] sm:$0xf]  ;;  %v320_v15 = vld [vmem:[%s9399_s7 + $0x20] sm:$0xf]  ;;  %v633_v22 = vsel %vm492_vm0, %v8774_v11, 0  ;;  %v9465_v48 = vld [vmem:[%s9381_s27 + $0x48] sm:$0xff]  }
  0x17   : > { %1692 = vrot.lane.b32.xlu0 %v8773_v6, %s9323_s28  ;;  %v9411_v16 = vcombine.low %v340_v12, %v341_v13  ;;  %v347_v17 = vmul.bf16 1052065461, %v319_v14  ;;  %v348_v18 = vmul.bf16 1052065461, %v320_v15  ;;  %v9424_v21 = vld [vmem:[%s9381_s27] sm:$0xff]   ;;  %v760_v2 = vsel %vm492_vm0, %v9465_v48, 0 }
  0x18   : > { %v9428_v23 = vld [vmem:[%s9381_s27 + $0x1c] sm:$0xff]   ;;  %v314_v24 = vld [vmem:[%s9399_s7 + $0x8] sm:$0xf]  ;;  %v315_v25 = vld [vmem:[%s9399_s7 + $0xc] sm:$0xf]  ;;  %v506_v26 = vsel %vm492_vm0, %v9424_v21, 0 }
  0x19   : > { %7817 = vmatprep.mubr.msk.bf16.mxu0 %vm492_vm0, %v9411_v16  ;;  %v9417_v19 = vcombine.low %v347_v17, %v348_v18  ;;  %v342_v27 = vmul.bf16 1052065461, %v314_v24  ;;  %v343_v28 = vmul.bf16 1052065461, %v315_v25  ;;  %v321_v30 = vld [vmem:[%s9399_s7 + $0x24] sm:$0xf] }
  0x1a   : > { %1694 = vrot.lane.b32.xlu1 %v8771_v1, %s9323_s28  ;;  %v9440_v29 = vld [vmem:[%s9381_s27 + $0x50] ss:$0 sps:$4 sm:$0x11]   ;;  %v322_v31 = vld [vmem:[%s9399_s7 + $0x28] sm:$0xf]  ;;  %v630_v32 = vsel %vm492_vm0, %v9428_v23, 0 }
  0x1b   : > { %7833 = vmatprep.mubr.msk.bf16.mxu1 %vm492_vm0, %v9417_v19  ;;  %v9447_v33 = vld [vmem:[%s9381_s27 + $0x6c] ss:$0 sps:$4 sm:$0x11]   ;;  %v349_v34 = vmul.bf16 1052065461, %v321_v30  ;;  %v9457_v42 = vcombine.low %v342_v27, %v343_v28  ;;  %v763_v47 = vsel %vm492_vm0, %v9440_v29, 0 }
  0x1c   : > { %7812 = vmatpush3.bf16.xpose.msra.mxu0 %v512_v7  ;;  %v316_v35 = vld [vmem:[%s9399_s7 + $0x10] sm:$0xf]  ;;  %v317_v36 = vld [vmem:[%s9399_s7 + $0x14] sm:$0xf]  ;;  %v350_v37 = vmul.bf16 1052065461, %v322_v31 }
  0x1d   : > { %7828 = vmatpush3.bf16.xpose.msra.mxu1 %v636_v10  ;;  %8691 = vmatprep.subr.msk.bf16.mxu0 %vm492_vm0, %v8773_v6  ;;  %v323_v38 = vld [vmem:[%s9399_s7 + $0x2c] sm:$0xf]  ;;  %v324_v39 = vld [vmem:[%s9399_s7 + $0x30] sm:$0xf]  ;;  %v344_v40 = vmul.bf16 1052065461, %v316_v35 }
  0x1e   : > { %8695 = vmatprep.subr.msk.bf16.mxu1 %vm492_vm0, %v8774_v11  ;;  %1798 = vrot.lane.b32.xlu1 %v8772_v3, %s9323_s28  ;;  %v345_v41 = vmul.bf16 1052065461, %v317_v36  ;;  %v351_v43 = vmul.bf16 1052065461, %v323_v38  ;;  %v352_v44 = vmul.bf16 1052065461, %v324_v39  ;;  %v9459_v45 = vcombine.low %v349_v34, %v350_v37 }
  0x1f   : > { %v318_v46 = vld [vmem:[%s9399_s7 + $0x18] sm:$0x1]  ;;  %v325_v49 = vld [vmem:[%s9399_s7 + $0x34] sm:$0x1]  ;;  %v887_v50 = vsel %vm492_vm0, %v9447_v33, 0  ;;  %v9471_v51 = vld [vmem:[%s9381_s27 + $0x64] sm:$0xff]  }
  0x20   : > { %v9473_v52 = vcombine.low %v344_v40, %v345_v41  ;;  %v9477_v53 = vcombine.low %v351_v43, %v352_v44  ;;  %v346_v54 = vmul.bf16 1052065461, %v318_v46  ;;  %v326_v55 = vld [vmem:[%s9399_s7 + $0x38] sm:$0xf]  ;;  %v327_v56 = vld [vmem:[%s9399_s7 + $0x3c] sm:$0xf] }
  0x21   : > { %v353_v57 = vmul.bf16 1052065461, %v325_v49  ;;  %v333_v58 = vld [vmem:[%s9399_s7 + $0x54] sm:$0xf]  ;;  %v334_v59 = vld [vmem:[%s9399_s7 + $0x58] sm:$0xf] }
  0x22   : > { %1796 = vrot.lane.b32.xlu1 %v8774_v11, %s9323_s28  ;;  %v354_v60 = vmul.bf16 1052065461, %v326_v55  ;;  %v355_v61 = vmul.bf16 1052065461, %v327_v56  ;;  %v9493_v62 = vcombine.low %v346_v54, %v346_v54  ;;  %v361_v63 = vmul.bf16 1052065461, %v333_v58 }
  0x23   : > { %v362_v0 = vmul.bf16 1052065461, %v334_v59  ;;  %v9495_v1 = vcombine.low %v353_v57, %v353_v57  ;;  %v9500_v3 = vld [vmem:[%s9381_s27 + $0x40] sm:$0xff]   ;;  %v884_v4 = vsel %vm492_vm0, %v9471_v51, 0  ;;  %v9526_v9 = vld [vmem:[%s9381_s27 + $0x38] sm:$0xff]   ;;  %v9578_v49 = vld [vmem:[%s12492_s3 + $0x10] sm:$0xff] }
  0x24   : > { %7814 = vmatpush3.bf16.xpose.msra.mxu0 %v509_v20  ;;  %v9505_v5 = vld [vmem:[%s9381_s27 + $0x5c] sm:$0xff]   ;;  %v9507_v6 = vcombine.low %v354_v60, %v355_v61  ;;  %v757_v8 = vsel %vm492_vm0, %v9500_v3, 0  ;;  %v9531_v11 = vld [vmem:[%s9381_s27 + $0x54] sm:$0xff]   ;;  %v754_v12 = vsel %vm492_vm0, %v9526_v9, 0  ;;  %v329_v14 = vld [vmem:[%s9399_s7 + $0x44] sm:$0xf] }
  0x25   : > { %7830 = vmatpush3.bf16.xpose.msra.mxu1 %v633_v22  ;;  %8692 = vmatprep.subr.msk.bf16.mxu0 %vm492_vm0, %v9424_v21  ;;  %v9511_v7 = vcombine.low %v361_v63, %v362_v0  ;;  %v881_v10 = vsel %vm492_vm0, %v9505_v5, 0  ;;  %v328_v13 = vld [vmem:[%s9399_s7 + $0x40] sm:$0xf]  ;;  %v335_v15 = vld [vmem:[%s9399_s7 + $0x5c] sm:$0xf]  ;;  %v878_v22 = vsel %vm492_vm0, %v9531_v11, 0 }
  0x26   : > { %8696 = vmatprep.subr.msk.bf16.mxu1 %vm492_vm0, %v9428_v23  ;;  %v336_v17 = vld [vmem:[%s9399_s7 + $0x60] sm:$0xf]  ;;  %v330_v18 = vld [vmem:[%s9399_s7 + $0x48] sm:$0xf]  ;;  %v331_v20 = vld [vmem:[%s9399_s7 + $0x4c] sm:$0xf] }
  0x27   : > { %12534 = vst [vmem:[#allocation2_spill] sm:$0xff] %v9511_v7  ;;  %v337_v24 = vld [vmem:[%s9399_s7 + $0x64] sm:$0xf]  ;;  %v338_v25 = vld [vmem:[%s9399_s7 + $0x68] sm:$0xf]  ;;  %v9594_v59 = vld [vmem:[%s12492_s3 + $0x18] sm:$0xff] }
  0x28   : > { %v357_v27 = vmul.bf16 1052065461, %v329_v14  ;;  %v363_v28 = vmul.bf16 1052065461, %v335_v15  ;;  %v364_v30 = vmul.bf16 1052065461, %v336_v17 }
  0x29   : > { %v358_v31 = vmul.bf16 1052065461, %v330_v18  ;;  %v365_v34 = vmul.bf16 1052065461, %v337_v24  ;;  %v366_v35 = vmul.bf16 1052065461, %v338_v25 }
  0x2a   : > { %v9551_v37 = vcombine.low %v363_v28, %v364_v30  ;;  %v332_v39 = vld [vmem:[%s9399_s7 + $0x50] sm:$0x1]  ;;  %v339_v41 = vld [vmem:[%s9399_s7 + $0x6c] sm:$0x1]  ;;  %v9586_v56 = vld [vmem:[%s12492_s3] sm:$0xff] }
  0x2b   : > { %v9556_v40 = vcombine.low %v365_v34, %v366_v35  ;;  %v360_v43 = vmul.bf16 1052065461, %v332_v39  ;;  %v367_v44 = vmul.bf16 1052065461, %v339_v41  ;;  %v9617_v17 = vld [vmem:[%s12492_s3 + $0x8] sm:$0xff]  ;;  %v9645_v41 = vld [vmem:[%s12492_s3 + $0x20] sm:$0xff] }
  0x2c   : > { %7816 = vmatpush3.bf16.xpose.msra.mxu0 %v506_v26  ;;  %v356_v26 = vmul.bf16 1052065461, %v328_v13  ;;  %v9624_v24 = vld [vmem:[%s12492_s3 + $0x30] sm:$0x1] }
  0x2d   : > { %7832 = vmatpush3.bf16.xpose.msra.mxu1 %v630_v32  ;;  %8697 = vmatprep.subr.msk.bf16.mxu0 %vm492_vm0, %v9440_v29  ;;  %v359_v32 = vmul.bf16 1052065461, %v331_v20  ;;  %12536 = vst [vmem:[#allocation4_spill] sm:$0xff] %v9556_v40  ;;  %v9567_v46 = vcombine.low %v360_v43, %v360_v43 }
  0x2e   : > { %8701 = vmatprep.subr.msk.bf16.mxu1 %vm492_vm0, %v9447_v33  ;;  %v9549_v36 = vcombine.low %v356_v26, %v357_v27 }
  0x2f   : > { %v9553_v38 = vcombine.low %v358_v31, %v359_v32  ;;  %12537 = vst [vmem:[#allocation5_spill] sm:$0xff] %v9567_v46 }
  0x31   : > { %12535 = vst [vmem:[#allocation3_spill] sm:$0xff] %v9553_v38 }
  0x33   : > { %7818 = vmatmul.mubr.msk.bf16.vlgmr.msra.gmra.mxu0 %vm492_vm0, %v9457_v42 }
  0x34   : > { %7834 = vmatmul.mubr.msk.bf16.vlgmr.msra.gmra.mxu1 %vm492_vm0, %v9459_v45  ;;  %7842 = vmatpush3.bf16.xpose.msra.mxu0 %v763_v47  ;;  %v9569_v47 = vcombine.low %v367_v44, %v367_v44 }
  0x35   : > { %7858 = vmatpush3.bf16.xpose.msra.mxu1 %v887_v50  ;;  %8698 = vmatprep.subr.msk.bf16.mxu0 %vm492_vm0, %v9465_v48 }
  0x36   : > { %8702 = vmatprep.subr.msk.bf16.mxu1 %vm492_vm0, %v9471_v51  ;;  %7821 = vmatprep.mubr.msk.bf16.mxu0 %vm492_vm0, %v9473_v52  ;;  %12538 = vst [vmem:[#allocation6_spill] sm:$0xff] %v9569_v47 }
  0x37   : > { %7837 = vmatprep.mubr.msk.bf16.mxu1 %vm492_vm0, %v9477_v53 }
  0x3b   : > { %7822 = vmatmul.mubr.msk.bf16.gmra.mxu0 %vm492_vm0, %v9493_v62 }
  0x3c   : > { %7844 = vmatpush3.bf16.xpose.msra.mxu0 %v760_v2  ;;  %7838 = vmatmul.mubr.msk.bf16.gmra.mxu1 %vm492_vm0, %v9495_v1 }
  0x3d   : > { %7860 = vmatpush3.bf16.xpose.msra.mxu1 %v884_v4  ;;  %8699 = vmatprep.subr.msk.bf16.mxu0 %vm492_vm0, %v9500_v3 }
  0x3e   : > { %8703 = vmatprep.subr.msk.bf16.mxu1 %vm492_vm0, %v9505_v5  ;;  %7849 = vmatprep.mubr.msk.bf16.mxu0 %vm492_vm0, %v9507_v6 }
  0x3f   : > { %7865 = vmatprep.mubr.msk.bf16.mxu1 %vm492_vm0, %v9511_v7 }
  0x44   : > { %7846 = vmatpush3.bf16.xpose.msra.mxu0 %v757_v8 }
  0x45   : > { %7862 = vmatpush3.bf16.xpose.msra.mxu1 %v881_v10  ;;  %8700 = vmatprep.subr.msk.bf16.mxu0 %vm492_vm0, %v9526_v9 }
  0x46   : > { %8704 = vmatprep.subr.msk.bf16.mxu1 %vm492_vm0, %v9531_v11 }
  0x4c   : > { %7848 = vmatpush3.bf16.xpose.msra.mxu0 %v754_v12 }
  0x4d   : > { %7864 = vmatpush3.bf16.xpose.msra.mxu1 %v878_v22 }
  0x53   : > { %7850 = vmatmul.mubr.msk.bf16.vlgmr.msra.gmra.mxu0 %vm492_vm0, %v9549_v36 }
  0x54   : > { %7866 = vmatmul.mubr.msk.bf16.vlgmr.msra.gmra.mxu1 %vm492_vm0, %v9551_v37  ;;  %7853 = vmatprep.mubr.msk.bf16.mxu0 %vm492_vm0, %v9553_v38 }
  0x55   : > { %7869 = vmatprep.mubr.msk.bf16.mxu1 %vm492_vm0, %v9556_v40 }
  0x5b   : > { %7854 = vmatmul.mubr.msk.bf16.gmra.mxu0 %vm492_vm0, %v9567_v46 }
  0x5c   : > { %7870 = vmatmul.mubr.msk.bf16.gmra.mxu1 %vm492_vm0, %v9569_v47 }
  0xf3   : > { %v7819_v50 = vpop.f32.mrf.mxu0 }
  0xf4   : > { %v9581_v54 = vadd.f32 %v7819_v50, %v9578_v49  ;;  %v7835_v55 = vpop.f32.mrf.mxu1 }
  0xf5   : > { %v9589_v57 = vadd.f32 %v7835_v55, %v9578_v49  ;;  %v551_v58 = vpop.f32.mrf.mxu0 }
  0xf6   : > { %v675_v60 = vpop.f32.mrf.mxu1  ;;  %v960_v61 = vsel %vm953_vm1, %v9581_v54, -inf  ;;  %v9599_v63 = vadd.f32 %v551_v58, %v9586_v56 }
  0xf7   : > { %v982_v0 = vsel %vm953_vm1, %v9589_v57, -inf  ;;  %961 = vmax.xlane.f32.xlu1 %v960_v61  ;;  %v7820_v2 = vpop.f32.mrf.mxu0  ;;  %v9612_v15 = vadd.f32 %v675_v60, %v9586_v56  ;;  %v9664_v61 = vld [vmem:[%s12492_s3 + $0x28] sm:$0xff] }
  0xf8   : > { %983 = vmax.xlane.f32.xlu0 %v982_v0  ;;  %v7836_v4 = vpop.f32.mrf.mxu1  ;;  %v9604_v8 = vadd.f32 %v7820_v2, %v9594_v59  ;;  %v954_v18 = vsel %vm953_vm1, %v9599_v63, -inf }
  0xf9   : > { %v554_v10 = vpop.f32.mrf.mxu0  ;;  %v9607_v12 = vadd.f32 %v7836_v4, %v9594_v59  ;;  %v976_v31 = vsel %vm953_vm1, %v9612_v15, -inf }
  0xfa   : > { %v678_v13 = vpop.f32.mrf.mxu1  ;;  %v963_v14 = vsel %vm953_vm1, %v9604_v8, -inf  ;;  %v9632_v30 = vadd.f32 %v554_v10, %v9617_v17 }
  0xfb   : > { %964 = vmax.xlane.f32.xlu1 %v963_v14  ;;  %v7823_v20 = vpop.f32.mrf.mxu0  ;;  %v9627_v26 = vadd.f32 %v678_v13, %v9617_v17  ;;  %v985_v27 = vsel %vm953_vm1, %v9607_v12, -inf }
  0xfc   : > { %955 = vmax.xlane.f32.xlu0 %v954_v18  ;;  %v7839_v22 = vpop.f32.mrf.mxu1  ;;  %v9640_v39 = vadd.f32 %v7823_v20, %v9624_v24  ;;  %v957_v44 = vsel %vm953_vm1, %v9632_v30, -inf }
  0xfd   : > { %v567_v25 = vpop.f32.mrf.mxu0  ;;  %v9637_v34 = vadd.f32 %v7839_v22, %v9624_v24  ;;  %v979_v43 = vsel %vm953_vm1, %v9627_v26, -inf }
  0xfe   : > { %v691_v28 = vpop.f32.mrf.mxu1  ;;  %v9657_v58 = vadd.f32 %v567_v25, %v9645_v41  ;;  %v973_v60 = vsel %vm972_vm2, %v9640_v39, -inf }
  0xff   : > { %986 = vmax.xlane.f32.xlu1 %v985_v27  ;;  %v7824_v32 = vpop.f32.mrf.mxu0  ;;  %v9652_v50 = vadd.f32 %v691_v28, %v9645_v41  ;;  %v994_v55 = vsel %vm972_vm2, %v9637_v34, -inf }
 0x100   : > { %977 = vmax.xlane.f32.xlu0 %v976_v31  ;;  %v7840_v35 = vpop.f32.mrf.mxu1  ;;  %v966_v14 = vsel %vm953_vm1, %v9657_v58, -inf }
 0x101   : > { %v570_v0 = vpop.f32.mrf.mxu0  ;;  %v988_v4 = vsel %vm953_vm1, %v9652_v50, -inf }
 0x102   : > { %v694_v2 = vpop.f32.mrf.mxu1  ;;  %v9669_v10 = vadd.f32 %v570_v0, %v9664_v61 }
 0x103   : > { %980 = vmax.xlane.f32.xlu1 %v979_v43  ;;  %v9672_v13 = vadd.f32 %v694_v2, %v9664_v61 }
 0x104   : > { %958 = vmax.xlane.f32.xlu0 %v957_v44  ;;  %v969_v18 = vsel %vm953_vm1, %v9669_v10, -inf }
 0x105   : > { %v991_v20 = vsel %vm953_vm1, %v9672_v13, -inf }
 0x107   : > { %995 = vmax.xlane.f32.xlu1 %v994_v55 }
 0x108   : > { %974 = vmax.xlane.f32.xlu0 %v973_v60 }
 0x10b   : > { %989 = vmax.xlane.f32.xlu1 %v988_v4 }
 0x10c   : > { %967 = vmax.xlane.f32.xlu0 %v966_v14 }
 0x10f   : > { %970 = vmax.xlane.f32.xlu1 %v969_v18 }
 0x110   : > { %992 = vmax.xlane.f32.xlu0 %v991_v20 }
 0x113   : > { %v7851_v22 = vpop.f32.mrf.mxu0 }
 0x114   : > { %v9681_v25 = vadd.f32 %v7851_v22, %v9578_v49  ;;  %v7867_v27 = vpop.f32.mrf.mxu1 }
 0x115   : > { %v9684_v28 = vadd.f32 %v7867_v27, %v9578_v49  ;;  %v799_v31 = vpop.f32.mrf.mxu0 }
 0x116   : > { %v923_v32 = vpop.f32.mrf.mxu1  ;;  %v1003_v35 = vsel %vm953_vm1, %v9681_v25, -inf  ;;  %v9694_v2 = vadd.f32 %v799_v31, %v9586_v56 }
 0x117   : > { %v7852_v43 = vpop.f32.mrf.mxu0  ;;  %1004 = vmax.xlane.f32.xlu0 %v1003_v35  ;;  %v1024_v60 = vsel %vm953_vm1, %v9684_v28, -inf  ;;  %v9702_v27 = vadd.f32 %v923_v32, %v9586_v56 }
 0x118   : > { %v9689_v44 = vadd.f32 %v7852_v43, %v9594_v59  ;;  %v7868_v55 = vpop.f32.mrf.mxu1 }
 0x119   : > { %v802_v0 = vpop.f32.mrf.mxu0  ;;  %v9697_v49 = vadd.f32 %v7868_v55, %v9594_v59  ;;  %v997_v59 = vsel %vm953_vm1, %v9694_v2, -inf }
 0x11a   : > { %v926_v4 = vpop.f32.mrf.mxu1  ;;  %v1006_v14 = vsel %vm953_vm1, %v9689_v44, -inf  ;;  %v9705_v35 = vadd.f32 %v802_v0, %v9617_v17  ;;  %v1018_v0 = vsel %vm953_vm1, %v9702_v27, -inf }
 0x11b   : > { %1007 = vmax.xlane.f32.xlu1 %v1006_v14  ;;  %1025 = vmax.xlane.f32.xlu0 %v1024_v60  ;;  %v7855_v18 = vpop.f32.mrf.mxu0  ;;  %v1027_v31 = vsel %vm953_vm1, %v9697_v49, -inf  ;;  %v9715_v56 = vadd.f32 %v926_v4, %v9617_v17 }
 0x11c   : > { %v7871_v20 = vpop.f32.mrf.mxu1  ;;  %v9712_v60 = vadd.f32 %v7855_v18, %v9624_v24  ;;  %v1000_v32 = vsel %vm953_vm1, %v9705_v35, -inf }
 0x11d   : > { %v815_v22 = vpop.f32.mrf.mxu0  ;;  %v9722_v40 = vadd.f32 %v7871_v20, %v9624_v24  ;;  %v1021_v17 = vsel %vm953_vm1, %v9715_v56, -inf }
 0x11e   : > { %v939_v43 = vpop.f32.mrf.mxu1  ;;  %v1015_v18 = vsel %vm972_vm2, %v9712_v60, -inf }
 0x11f   : > { %1028 = vmax.xlane.f32.xlu1 %v1027_v31  ;;  %998 = vmax.xlane.f32.xlu0 %v997_v59  ;;  %v7856_v55 = vpop.f32.mrf.mxu0  ;;  %v9725_v31 = vadd.f32 %v815_v22, %v9645_v41  ;;  %v9732_v4 = vadd.f32 %v939_v43, %v9645_v41  ;;  %v1036_v24 = vsel %vm972_vm2, %v9722_v40, -inf }
 0x120   : > { %v7872_v14 = vpop.f32.mrf.mxu1 }
 0x121   : > { %v1009_v20 = vsel %vm953_vm1, %v9725_v31, -inf  ;;  %v818_v22 = vpop.f32.mrf.mxu0 }
 0x122   : > { %v942_v59 = vpop.f32.mrf.mxu1  ;;  %v9742_v14 = vadd.f32 %v818_v22, %v9664_v61 }
 0x123   : > { %1001 = vmax.xlane.f32.xlu1 %v1000_v32  ;;  %1019 = vmax.xlane.f32.xlu0 %v1018_v0  ;;  %v9735_v55 = vadd.f32 %v942_v59, %v9664_v61  ;;  %v1030_v32 = vsel %vm953_vm1, %v9732_v4, -inf  ;;  %v9750_v0 = vpop.permute.xlu1 %1800  ;;  %v9756_v61 = vpop.permute.xlu0 %1696 }
 0x124   : > { %v1012_v43 = vsel %vm953_vm1, %v9742_v14, -inf  ;;  %12539 = vst [vmem:[#allocation7_spill] sm:$0xff] %v9750_v0  ;;  %12542 = vst [vmem:[#allocation10_spill] sm:$0xff] %v9756_v61 }
 0x125   : > { %v1033_v41 = vsel %vm953_vm1, %v9735_v55, -inf }
 0x127   : > { %1022 = vmax.xlane.f32.xlu1 %v1021_v17  ;;  %1016 = vmax.xlane.f32.xlu0 %v1015_v18  ;;  %v9752_v18 = vpop.permute.xlu1 %1694 }
 0x128   : > { %12540 = vst [vmem:[#allocation8_spill] sm:$0xff] %v9752_v18 }
 0x12b   : > { %1037 = vmax.xlane.f32.xlu1 %v1036_v24  ;;  %1010 = vmax.xlane.f32.xlu0 %v1009_v20  ;;  %v9754_v59 = vpop.permute.xlu1 %1798  ;;  %v9760_v24 = vpop.permute.xlu0 %1692 }
 0x12c   : > { %12541 = vst [vmem:[#allocation9_spill] sm:$0xff] %v9754_v59  ;;  %12544 = vst [vmem:[#allocation12_spill] sm:$0xff] %v9760_v24 }
 0x12f   : > { %1031 = vmax.xlane.f32.xlu1 %v1030_v32  ;;  %1034 = vmax.xlane.f32.xlu0 %v1033_v41  ;;  %v9758_v17 = vpop.permute.xlu1 %1796 }
 0x130   : > { %12543 = vst [vmem:[#allocation11_spill] sm:$0xff] %v9758_v17 }
 0x133   : > { %1013 = vmax.xlane.f32.xlu1 %v1012_v43 }
 0x180   : > { %v962_v20 = vpop.xlane.xlu1 %961 }
 0x181   : > { %v984_v22 = vpop.xlane.xlu0 %983  ;;  %v1041_v32 = vsub.f32 %v9581_v54, %v962_v20 }
 0x182   : > { %v1048_v41 = vsub.f32 %v9589_v57, %v984_v22 }
 0x183   : > { %v1071_v47 = vmul.f32 1.442695, %v1041_v32 }
 0x184   : > { %v1085_v43 = vmul.f32 1.442695, %v1048_v41  ;;  %v965_v38 = vpop.xlane.xlu1 %964 }
 0x185   : > { %8801 = vpow2.f32 %v1071_v47  ;;  %v1042_v18 = vsub.f32 %v9604_v8, %v965_v38  ;;  %v956_v0 = vpop.xlane.xlu0 %955 }
 0x186   : > { %v1039_v59 = vsub.f32 %v9599_v63, %v956_v0  ;;  %8803 = vpow2.f32 %v1085_v43 }
 0x187   : > { %v1073_v61 = vmul.f32 1.442695, %v1042_v18 }
 0x188   : > { %v1067_v17 = vmul.f32 1.442695, %v1039_v59  ;;  %v987_v46 = vpop.xlane.xlu1 %986 }
 0x189   : > { %8805 = vpow2.f32 %v1073_v61  ;;  %v1049_v24 = vsub.f32 %v9607_v12, %v987_v46  ;;  %v978_v7 = vpop.xlane.xlu0 %977 }
 0x18a   : > { %v1046_v54 = vsub.f32 %v9612_v15, %v978_v7  ;;  %8807 = vpow2.f32 %v1067_v17 }
 0x18b   : > { %v1087_v57 = vmul.f32 1.442695, %v1049_v24 }
 0x18c   : > { %v1081_v20 = vmul.f32 1.442695, %v1046_v54  ;;  %v981_v22 = vpop.xlane.xlu1 %980 }
 0x18d   : > { %8809 = vpow2.f32 %v1087_v57  ;;  %v1047_v38 = vsub.f32 %v9627_v26, %v981_v22  ;;  %v959_v47 = vpop.xlane.xlu0 %958 }
 0x18e   : > { %v1040_v63 = vsub.f32 %v9632_v30, %v959_v47  ;;  %8811 = vpow2.f32 %v1081_v20 }
 0x18f   : > { %v1083_v8 = vmul.f32 1.442695, %v1047_v38 }
 0x190   : > { %v1069_v0 = vmul.f32 1.442695, %v1040_v63  ;;  %v996_v18 = vpop.xlane.xlu1 %995 }
 0x191   : > { %v1052_v59 = vsub.f32 %v9637_v34, %v996_v18  ;;  %v975_v46 = vpop.xlane.xlu0 %974 }
 0x192   : > { %v9771_v12 = vpop.eup %8801  ;;  %8813 = vpow2.f32 %v1069_v0  ;;  %v1045_v7 = vsub.f32 %v9640_v39, %v975_v46 }
 0x193   : > { %v1129_v15 = vsel %vm953_vm1, %v9771_v12, 0.0  ;;  %v9776_v61 = vpop.eup %8803  ;;  %8815 = vpow2.f32 %v1083_v8  ;;  %v1093_v26 = vmul.f32 1.442695, %v1052_v59 }
 0x194   : > { %v1079_v30 = vmul.f32 1.442695, %v1045_v7  ;;  %v990_v17 = vpop.xlane.xlu1 %989  ;;  %1130 = vadd.xlane.f32.xlu0 %v1129_v15  ;;  %v1150_v43 = vsel %vm953_vm1, %v9776_v61, 0.0 }
 0x195   : > { %v1050_v24 = vsub.f32 %v9652_v50, %v990_v17  ;;  %v968_v32 = vpop.xlane.xlu0 %967 }
 0x196   : > { %v9779_v34 = vpop.eup %8805  ;;  %8817 = vpow2.f32 %v1079_v30  ;;  %v1043_v41 = vsub.f32 %v9657_v58, %v968_v32 }
 0x197   : > { %v1132_v39 = vsel %vm953_vm1, %v9779_v34, 0.0  ;;  %v9786_v54 = vpop.eup %8807  ;;  %8819 = vpow2.f32 %v1093_v26  ;;  %v1089_v57 = vmul.f32 1.442695, %v1050_v24 }
 0x198   : > { %v1075_v20 = vmul.f32 1.442695, %v1043_v41  ;;  %1133 = vadd.xlane.f32.xlu1 %v1132_v39  ;;  %v971_v22 = vpop.xlane.xlu1 %970  ;;  %1151 = vadd.xlane.f32.xlu0 %v1150_v43  ;;  %v1123_v8 = vsel %vm953_vm1, %v9786_v54, 0.0 }
 0x199   : > { %v1044_v50 = vsub.f32 %v9669_v10, %v971_v22  ;;  %v993_v38 = vpop.xlane.xlu0 %992 }
 0x19a   : > { %v9789_v47 = vpop.eup %8809  ;;  %8821 = vpow2.f32 %v1075_v20  ;;  %v1051_v58 = vsub.f32 %v9672_v13, %v993_v38 }
 0x19b   : > { %v1153_v63 = vsel %vm953_vm1, %v9789_v47, 0.0  ;;  %v9796_v0 = vpop.eup %8811  ;;  %8823 = vpow2.f32 %v1089_v57  ;;  %v1077_v18 = vmul.f32 1.442695, %v1044_v50 }
 0x19c   : > { %v1091_v59 = vmul.f32 1.442695, %v1051_v58  ;;  %1154 = vadd.xlane.f32.xlu1 %v1153_v63  ;;  %1124 = vadd.xlane.f32.xlu0 %v1123_v8  ;;  %v1144_v46 = vsel %vm953_vm1, %v9796_v0, 0.0 }
 0x19e   : > { %8825 = vpow2.f32 %v1091_v59  ;;  %v9834_v59 = vld [vmem:[%s9827_s29 + $0x18] ss:$0 sps:$4 sm:$0x11]  }
 0x19f   : > { %v9798_v10 = vpop.eup %8813  ;;  %8827 = vpow2.f32 %v1077_v18 }
 0x1a0   : > { %1145 = vadd.xlane.f32.xlu0 %v1144_v46  ;;  %v1126_v13 = vsel %vm953_vm1, %v9798_v10, 0.0  ;;  %v1005_v7 = vpop.xlane.xlu0 %1004  ;;  %v9804_v15 = vpop.eup %8815 }
 0x1a1   : > { %1127 = vadd.xlane.f32.xlu1 %v1126_v13  ;;  %v1055_v26 = vsub.f32 %v9681_v25, %v1005_v7  ;;  %v1147_v32 = vsel %vm953_vm1, %v9804_v15, 0.0 }
 0x1a3   : > { %v9807_v30 = vpop.eup %8817  ;;  %v1099_v17 = vmul.f32 1.442695, %v1055_v26  ;;  %v9324_v26 = vmov 0  }
 0x1a4   : > { %v1008_v24 = vpop.xlane.xlu1 %1007  ;;  %v1141_v41 = vsel %vm972_vm2, %v9807_v30, 0.0  ;;  %v1026_v39 = vpop.xlane.xlu0 %1025 }
 0x1a5   : > { %v9813_v43 = vpop.eup %8819  ;;  %8829 = vpow2.f32 %v1099_v17  ;;  %v1056_v57 = vsub.f32 %v9689_v44, %v1008_v24  ;;  %1148 = vadd.xlane.f32.xlu1 %v1147_v32  ;;  %1142 = vadd.xlane.f32.xlu0 %v1141_v41  ;;  %v1062_v25 = vsub.f32 %v9684_v28, %v1026_v39  ;;  %v9838_v17 = vsel %vm1312_vm3, 65535, %v9324_v26 }
 0x1a6   : > { %v1162_v58 = vsel %vm972_vm2, %v9813_v43, 0.0  ;;  %12545 = vst [vmem:[#allocation13_spill] sm:$0xff] %v9838_v17  ;;  %v1316_v41 = vand.u32 %v9834_v59, %v9838_v17 }
 0x1a7   : > { %v9817_v20 = vpop.eup %8821  ;;  %v1101_v22 = vmul.f32 1.442695, %v1056_v57  ;;  %v1113_v50 = vmul.f32 1.442695, %v1062_v25 }
 0x1a8   : > { %v1029_v38 = vpop.xlane.xlu1 %1028  ;;  %v1135_v63 = vsel %vm953_vm1, %v9817_v20, 0.0  ;;  %v999_v8 = vpop.xlane.xlu0 %998  ;;  %7873 = vmatprep.subr.bf16.mxu0 %v1316_v41 }
 0x1a9   : > { %v9829_v44 = vpop.eup %8823  ;;  %8831 = vpow2.f32 %v1101_v22  ;;  %v1063_v28 = vsub.f32 %v9697_v49, %v1029_v38  ;;  %1163 = vadd.xlane.f32.xlu1 %v1162_v58  ;;  %1136 = vadd.xlane.f32.xlu0 %v1135_v63  ;;  %v1053_v18 = vsub.f32 %v9694_v2, %v999_v8  ;;  %v9851_v22 = vld [vmem:[%s9827_s29 + $0x34] ss:$0 sps:$4 sm:$0x11]  }
 0x1aa   : > { %8833 = vpow2.f32 %v1113_v50  ;;  %v1156_v49 = vsel %vm953_vm1, %v9829_v44, 0.0  ;;  %7874 = vmatpush3.bf16.msra.mxu0 %v1316_v41  ;;  %v9856_v8 = vld [vmem:[%s9827_s29 + $0x10] sm:$0xff]   ;;  %v9889_v41 = vld [vmem:[%s9827_s29 + $0x24] sm:$0xff]  }
 0x1ab   : > { %v9836_v46 = vpop.eup %8825  ;;  %v1115_v13 = vmul.f32 1.442695, %v1063_v28  ;;  %v1095_v7 = vmul.f32 1.442695, %v1053_v18  ;;  %7875 = vmatprep.subr.bf16.mxu0 %v9856_v8 }
 0x1ac   : > { %v1002_v24 = vpop.xlane.xlu1 %1001  ;;  %v1159_v32 = vsel %vm953_vm1, %v9836_v46, 0.0  ;;  %v1020_v2 = vpop.xlane.xlu0 %1019 }
 0x1ad   : > { %v9846_v39 = vpop.eup %8827  ;;  %8835 = vpow2.f32 %v1115_v13  ;;  %v1054_v57 = vsub.f32 %v9705_v35, %v1002_v24  ;;  %1157 = vadd.xlane.f32.xlu1 %v1156_v49  ;;  %1160 = vadd.xlane.f32.xlu0 %v1159_v32  ;;  %v1060_v25 = vsub.f32 %v9702_v27, %v1020_v2  ;;  %v1416_v35 = vand.u32 %v9851_v22, %v9838_v17  ;;  %v9886_v2 = vld [vmem:[%s9827_s29] sm:$0xff]  }
 0x1ae   : > { %8837 = vpow2.f32 %v1095_v7  ;;  %v1138_v63 = vsel %vm953_vm1, %v9846_v39, 0.0  ;;  %7876 = vmatpush3.bf16.msra.mxu0 %v9856_v8  ;;  %v9868_v7 = vld [vmem:[%s9827_s29 + $0x8] sm:$0xff]  }
 0x1af   : > { %v1097_v50 = vmul.f32 1.442695, %v1054_v57  ;;  %v1109_v38 = vmul.f32 1.442695, %v1060_v25  ;;  %7889 = vmatprep.subr.bf16.mxu1 %v1416_v35  ;;  %7877 = vmatprep.subr.bf16.mxu0 %v9868_v7 }
 0x1b0   : > { %v1023_v58 = vpop.xlane.xlu1 %1022  ;;  %7890 = vmatpush3.bf16.msra.mxu1 %v1416_v35  ;;  %v9896_v25 = vld [vmem:[%s9827_s29 + $0x50] ss:$0 sps:$4 sm:$0x11]  }
 0x1b1   : > { %8839 = vpow2.f32 %v1097_v50  ;;  %v1061_v27 = vsub.f32 %v9715_v56, %v1023_v58  ;;  %1139 = vadd.xlane.f32.xlu1 %v1138_v63  ;;  %v9871_v56 = vld [vmem:[%s9827_s29 + $0x2c] sm:$0xff]   ;;  %12550 = vst [vmem:[#allocation18_spill] sm:$0xff] %v9896_v25  ;;  %v9905_v58 = vld [vmem:[%s9827_s29 + $0x1c] sm:$0xff]   ;;  %v9911_v35 = vand.u32 %v9896_v25, %v9838_v17 }
 0x1b2   : > { %v9861_v28 = vpop.eup %8829  ;;  %8841 = vpow2.f32 %v1109_v38  ;;  %7891 = vmatprep.subr.bf16.mxu1 %v9871_v56  ;;  %7878 = vmatpush3.bf16.msra.mxu0 %v9868_v7  ;;  %12552 = vst [vmem:[#allocation20_spill] sm:$0xff] %v9905_v58 }
 0x1b3   : > { %12546 = vst [vmem:[#allocation14_spill] sm:$0xff] %v9861_v28  ;;  %v1111_v18 = vmul.f32 1.442695, %v1061_v27  ;;  %v1171_v13 = vsel %vm953_vm1, %v9861_v28, 0.0  ;;  %7879 = vmatprep.subr.bf16.mxu0 %v9886_v2 }
 0x1b4   : > { %1172 = vadd.xlane.f32.xlu0 %v1171_v13  ;;  %7892 = vmatpush3.bf16.msra.mxu1 %v9871_v56 }
 0x1b5   : > { %8843 = vpow2.f32 %v1111_v18  ;;  %7893 = vmatprep.subr.bf16.mxu1 %v9889_v41  ;;  %v9918_v18 = vld [vmem:[%s9827_s29 + $0x6c] ss:$0 sps:$4 sm:$0x11]  }
 0x1b6   : > { %v9873_v26 = vpop.eup %8831  ;;  %7880 = vmatpush3.bf16.msra.mxu0 %v9886_v2  ;;  %12554 = vst [vmem:[#allocation22_spill] sm:$0xff] %v9918_v18 }
 0x1b7   : > { %12547 = vst [vmem:[#allocation15_spill] sm:$0xff] %v9873_v26  ;;  %v9877_v24 = vpop.eup %8833  ;;  %v1174_v49 = vsel %vm953_vm1, %v9873_v26, 0.0  ;;  %7905 = vmatprep.subr.bf16.mxu0 %v9911_v35 }
 0x1b8   : > { %12548 = vst [vmem:[#allocation16_spill] sm:$0xff] %v9877_v24  ;;  %1175 = vadd.xlane.f32.xlu1 %v1174_v49  ;;  %v1192_v32 = vsel %vm953_vm1, %v9877_v24, 0.0  ;;  %7894 = vmatpush3.bf16.msra.mxu1 %v9889_v41 }
 0x1b9   : > { %1193 = vadd.xlane.f32.xlu0 %v1192_v32  ;;  %7895 = vmatprep.subr.bf16.mxu1 %v9905_v58 }
 0x1ba   : > { %v9891_v57 = vpop.eup %8835 }
 0x1bb   : > { %12549 = vst [vmem:[#allocation17_spill] sm:$0xff] %v9891_v57  ;;  %v9898_v50 = vpop.eup %8837  ;;  %v1195_v38 = vsel %vm953_vm1, %v9891_v57, 0.0 }
 0x1bc   : > { %12551 = vst [vmem:[#allocation19_spill] sm:$0xff] %v9898_v50  ;;  %1196 = vadd.xlane.f32.xlu1 %v1195_v38  ;;  %v1165_v63 = vsel %vm953_vm1, %v9898_v50, 0.0  ;;  %7896 = vmatpush3.bf16.msra.mxu1 %v9905_v58  ;;  %v9929_v38 = vand.u32 %v9918_v18, %v9838_v17 }
 0x1bd   : > { %1166 = vadd.xlane.f32.xlu0 %v1165_v63 }
 0x1be   : > { %v9914_v27 = vpop.eup %8839  ;;  %7921 = vmatprep.subr.bf16.mxu1 %v9929_v38 }
 0x1bf   : > { %12553 = vst [vmem:[#allocation21_spill] sm:$0xff] %v9914_v27  ;;  %v9920_v13 = vpop.eup %8841  ;;  %v1168_v49 = vsel %vm953_vm1, %v9914_v27, 0.0 }
 0x1c0   : > { %12555 = vst [vmem:[#allocation23_spill] sm:$0xff] %v9920_v13  ;;  %1169 = vadd.xlane.f32.xlu1 %v1168_v49  ;;  %v1186_v32 = vsel %vm953_vm1, %v9920_v13, 0.0  ;;  %v1017_v49 = vpop.xlane.xlu0 %1016  ;;  %v1038_v13 = vpop.xlane.xlu1 %1037 }
 0x1c1   : > { %1187 = vadd.xlane.f32.xlu0 %v1186_v32  ;;  %v1059_v17 = vsub.f32 %v9712_v60, %v1017_v49  ;;  %v1066_v28 = vsub.f32 %v9722_v40, %v1038_v13 }
 0x1c2   : > { %v9931_v63 = vpop.eup %8843 }
 0x1c3   : > { %12556 = vst [vmem:[#allocation24_spill] sm:$0xff] %v9931_v63  ;;  %v1189_v24 = vsel %vm953_vm1, %v9931_v63, 0.0  ;;  %v1107_v27 = vmul.f32 1.442695, %v1059_v17  ;;  %v1121_v63 = vmul.f32 1.442695, %v1066_v28 }
 0x1c4   : > { %1190 = vadd.xlane.f32.xlu1 %v1189_v24  ;;  %v1011_v57 = vpop.xlane.xlu0 %1010  ;;  %v1032_v32 = vpop.xlane.xlu1 %1031 }
 0x1c5   : > { %v1057_v50 = vsub.f32 %v9725_v31, %v1011_v57  ;;  %v1064_v24 = vsub.f32 %v9732_v4, %v1032_v32  ;;  %8845 = vpow2.f32 %v1107_v27 }
 0x1c6   : > { %8847 = vpow2.f32 %v1121_v63 }
 0x1c8   : > { %v1035_v26 = vpop.xlane.xlu0 %1034  ;;  %v1014_v58 = vpop.xlane.xlu1 %1013 }
 0x1c9   : > { %v1065_v18 = vsub.f32 %v9735_v55, %v1035_v26  ;;  %v1058_v25 = vsub.f32 %v9742_v14, %v1014_v58 }
 0x1cb   : > { %v1119_v60 = vmul.f32 1.442695, %v1065_v18  ;;  %v1105_v40 = vmul.f32 1.442695, %v1058_v25 }
 0x1d2   : > { %v9946_v31 = vpop.eup %8845 }
 0x1d3   : > { %v9948_v17 = vpop.eup %8847  ;;  %v1183_v4 = vsel %vm972_vm2, %v9946_v31, 0.0 }
 0x1d4   : > { %v1204_v55 = vsel %vm972_vm2, %v9948_v17, 0.0 }
 0x1d5   : > { %1794 = vrot.lane.b32.xlu1 %v9428_v23, %s9323_s28  ;;  %v1103_v23 = vmul.f32 1.442695, %v1057_v50 }
 0x1d7   : > { %1690 = vrot.lane.b32.xlu0 %v9424_v21, %s9323_s28  ;;  %v1117_v21 = vmul.f32 1.442695, %v1064_v24  ;;  %8849 = vpow2.f32 %v1103_v23 }
 0x1d9   : > { %8851 = vpow2.f32 %v1117_v21 }
 0x1da   : > { %8853 = vpow2.f32 %v1119_v60 }
 0x1db   : > { %8855 = vpow2.f32 %v1105_v40 }
 0x1e4   : > { %v9952_v28 = vpop.eup %8849 }
 0x1e5   : > { %v1177_v26 = vsel %vm953_vm1, %v9952_v28, 0.0 }
 0x1e6   : > { %v9956_v14 = vpop.eup %8851 }
 0x1e7   : > { %v9960_v57 = vpop.eup %8853  ;;  %v1198_v25 = vsel %vm953_vm1, %v9956_v14, 0.0 }
 0x1e8   : > { %v9964_v50 = vpop.eup %8855  ;;  %v1201_v58 = vsel %vm953_vm1, %v9960_v57, 0.0 }
 0x1e9   : > { %v1180_v27 = vsel %vm953_vm1, %v9964_v50, 0.0 }
 0x1f6   : > { %1184 = vadd.xlane.f32.xlu0 %v1183_v4  ;;  %v12557_v4 = vld [vmem:[#allocation2_spill] sm:$0xff] }
 0x1f9   : > { %1205 = vadd.xlane.f32.xlu1 %v1204_v55 }
 0x1fa   : > { %1178 = vadd.xlane.f32.xlu0 %v1177_v26 }
 0x1fd   : > { %1199 = vadd.xlane.f32.xlu1 %v1198_v25 }
 0x1fe   : > { %1202 = vadd.xlane.f32.xlu0 %v1201_v58 }
 0x201   : > { %1181 = vadd.xlane.f32.xlu1 %v1180_v27 }
 0x212   : > { %1904 = vrot.lane.b32.xlu1 %v9440_v29, %s9323_s28 }
 0x214   : > { %1682 = vrot.lane.b32.xlu0 %v9411_v16, %s9323_s28 }
 0x216   : > { %1786 = vrot.lane.b32.xlu1 %v9417_v19, %s9323_s28 }
 0x218   : > { %1684 = vrot.lane.b32.xlu0 %v9457_v42, %s9323_s28 }
 0x21a   : > { %1788 = vrot.lane.b32.xlu1 %v9459_v45, %s9323_s28 }
 0x21c   : > { %2008 = vrot.lane.b32.xlu0 %v9447_v33, %s9323_s28 }
 0x21d   : > { %v1131_v18 = vpop.xlane.xlu0 %1130 }
 0x21e   : > { %2006 = vrot.lane.b32.xlu1 %v9471_v51, %s9323_s28 }
 0x220   : > { %1902 = vrot.lane.b32.xlu0 %v9465_v48, %s9323_s28 }
 0x221   : > { %v1134_v29 = vpop.xlane.xlu1 %1133  ;;  %v1152_v13 = vpop.xlane.xlu0 %1151 }
 0x222   : > { %2004 = vrot.lane.b32.xlu1 %v9505_v5, %s9323_s28  ;;  %8857 = vrcp.f32 %v1134_v29  ;;  %v12558_v29 = vld [vmem:[#allocation5_spill] sm:$0xff] }
 0x224   : > { %1900 = vrot.lane.b32.xlu0 %v9500_v3, %s9323_s28 }
 0x225   : > { %v1155_v63 = vpop.xlane.xlu1 %1154  ;;  %v1125_v49 = vpop.xlane.xlu0 %1124 }
 0x226   : > { %1688 = vrot.lane.b32.xlu1 %v9493_v62, %s9323_s28  ;;  %8859 = vrcp.f32 %v1125_v49 }
 0x227   : > { %8861 = vrcp.f32 %v1131_v18 }
 0x228   : > { %1686 = vrot.lane.b32.xlu0 %v9473_v52, %s9323_s28 }
 0x229   : > { %v1146_v33 = vpop.xlane.xlu0 %1145 }
 0x22a   : > { %v1128_v48 = vpop.xlane.xlu1 %1127  ;;  %1792 = vrot.lane.b32.xlu1 %v9495_v1, %s9323_s28 }
 0x22b   : > { %8863 = vrcp.f32 %v1128_v48  ;;  %v10018_v48 = vld [vmem:[%s9827_s29 + $0x48] sm:$0xff]  }
 0x22c   : > { %8865 = vrcp.f32 %v1155_v63  ;;  %1790 = vrot.lane.b32.xlu0 %v9477_v53, %s9323_s28 }
 0x22d   : > { %8867 = vrcp.f32 %v1146_v33 }
 0x22e   : > { %8869 = vrcp.f32 %v1152_v13  ;;  %v1149_v51 = vpop.xlane.xlu1 %1148  ;;  %v1143_v3 = vpop.xlane.xlu0 %1142  ;;  %2002 = vrot.lane.b32.xlu1 %v9531_v11, %s9323_s28 }
 0x22f   : > { %8871 = vrcp.f32 %v1149_v51  ;;  %v8858_v24 = vpop.eup %8857 }
 0x230   : > { %1898 = vrot.lane.b32.xlu0 %v9526_v9, %s9323_s28  ;;  %v1238_v40 = vmul.f32 %v8858_v24, %v9779_v34  ;;  %v10032_v24 = vld [vmem:[%s9827_s29 + $0x40] sm:$0xff]  }
 0x232   : > { %v1164_v5 = vpop.xlane.xlu1 %1163  ;;  %v1137_v32 = vpop.xlane.xlu0 %1136  ;;  %1892 = vrot.lane.b32.xlu1 %v9549_v36, %s9323_s28 }
 0x233   : > { %8873 = vrcp.f32 %v1164_v5  ;;  %v8860_v23 = vpop.eup %8859 }
 0x234   : > { %1890 = vrot.lane.b32.xlu0 %v9507_v6, %s9323_s28  ;;  %8875 = vrcp.f32 %v1143_v3  ;;  %v8862_v11 = vpop.eup %8861  ;;  %v1235_v26 = vmul.f32 %v8860_v23, %v9786_v54  ;;  %v12559_v54 = vld [vmem:[#allocation3_spill] sm:$0xff] }
 0x235   : > { %v1237_v27 = vmul.f32 %v8862_v11, %v9771_v12  ;;  %v8798_v11 = vld [vmem:[%s9827_s29 + $0x38] sm:$0xff]  }
 0x236   : > { %v1158_v21 = vpop.xlane.xlu1 %1157  ;;  %v1161_v60 = vpop.xlane.xlu0 %1160  ;;  %1996 = vrot.lane.b32.xlu1 %v9551_v37, %s9323_s28 }
 0x237   : > { %8877 = vrcp.f32 %v1158_v21  ;;  %v1264_v33 = vpack.c.bf16 %v1238_v40, %v1237_v27 }
 0x238   : > { %v8864_v9 = vpop.eup %8863  ;;  %8879 = vrcp.f32 %v1161_v60  ;;  %1994 = vrot.lane.b32.xlu0 %v12557_v4, %s9323_s28 }
 0x239   : > { %v8866_v55 = vpop.eup %8865  ;;  %8881 = vrcp.f32 %v1137_v32  ;;  %v1236_v25 = vmul.f32 %v8864_v9, %v9798_v10  ;;  %v10049_v9 = vld [vmem:[%s9827_s29 + $0x5c] sm:$0xff]  }
 0x23a   : > { %v8868_v58 = vpop.eup %8867  ;;  %v1140_v18 = vpop.xlane.xlu1 %1139  ;;  %1896 = vrot.lane.b32.xlu1 %v12558_v29, %s9323_s28  ;;  %v1245_v49 = vmul.f32 %v8866_v55, %v9789_v47  ;;  %v12560_v47 = vld [vmem:[#allocation6_spill] sm:$0xff] }
 0x23b   : > { %v8870_v13 = vpop.eup %8869  ;;  %8883 = vrcp.f32 %v1140_v18  ;;  %v1263_v34 = vpack.c.bf16 %v1236_v25, %v1235_v26  ;;  %v1242_v10 = vmul.f32 %v8868_v58, %v9796_v0  ;;  %v10035_v0 = vld [vmem:[%s9827_s29 + $0x64] sm:$0xff]  }
 0x23c   : > { %v8872_v63 = vpop.eup %8871  ;;  %1894 = vrot.lane.b32.xlu0 %v12559_v54, %s9323_s28  ;;  %v1244_v3 = vmul.f32 %v8870_v13, %v9776_v61  ;;  %v8800_v13 = vld [vmem:[%s9827_s29 + $0x54] sm:$0xff]  }
 0x23d   : > { %7881 = vmatprep.mubr.msk.bf16.mxu0 %vm953_vm1, %v1263_v34  ;;  %v1173_v12 = vpop.xlane.xlu0 %1172  ;;  %v1243_v51 = vmul.f32 %v8872_v63, %v9804_v15  ;;  %v12561_v15 = vld [vmem:[#allocation4_spill] sm:$0xff]  ;;  %v12564_v63 = vld [vmem:[#allocation18_spill] sm:$0xff] }
 0x23e   : > { %7882 = vmatmul.mubr.msk.bf16.vlgmr.msra.gmra.mxu0 %vm953_vm1, %v1264_v33  ;;  %2000 = vrot.lane.b32.xlu1 %v12560_v47, %s9323_s28  ;;  %v1268_v32 = vpack.c.bf16 %v1245_v49, %v1244_v3  ;;  %v12565_v49 = vld [vmem:[#allocation20_spill] sm:$0xff]  ;;  %v12567_v3 = vld [vmem:[#allocation15_spill] sm:$0xff] }
 0x23f   : > { %7906 = vmatpush3.bf16.msra.mxu0 %v9911_v35  ;;  %v1267_v5 = vpack.c.bf16 %v1243_v51, %v1242_v10  ;;  %v12566_v51 = vld [vmem:[#allocation22_spill] sm:$0xff] }
 0x240   : > { %7907 = vmatprep.subr.bf16.mxu0 %v10018_v48  ;;  %1998 = vrot.lane.b32.xlu0 %v12561_v15, %s9323_s28  ;;  %v8874_v23 = vpop.eup %8873 }
 0x241   : > { %7897 = vmatprep.mubr.msk.bf16.mxu1 %vm953_vm1, %v1267_v5  ;;  %v1176_v61 = vpop.xlane.xlu1 %1175  ;;  %v8876_v21 = vpop.eup %8875  ;;  %v1248_v25 = vmul.f32 %v8874_v23, %v9813_v43  ;;  %v12569_v23 = vld [vmem:[#allocation21_spill] sm:$0xff] }
 0x242   : > { %7898 = vmatmul.mubr.msk.bf16.vlgmr.msra.gmra.mxu1 %vm953_vm1, %v1268_v32  ;;  %v1194_v35 = vpop.xlane.xlu0 %1193  ;;  %2518 = vrot.lane.b32.xlu1 %v9851_v22, %s9323_s28  ;;  %8885 = vrcp.f32 %v1176_v61  ;;  %v1241_v43 = vmul.f32 %v8876_v21, %v9807_v30  ;;  %v12568_v32 = vld [vmem:[#allocation19_spill] sm:$0xff] }
 0x243   : > { %7908 = vmatpush3.bf16.msra.mxu0 %v10018_v48  ;;  %7922 = vmatpush3.bf16.msra.mxu1 %v9929_v38 }
 0x244   : > { %v8878_v60 = vpop.eup %8877  ;;  %7909 = vmatprep.subr.bf16.mxu0 %v10032_v24  ;;  %7923 = vmatprep.subr.bf16.mxu1 %v10035_v0 }
 0x245   : > { %v8880_v40 = vpop.eup %8879  ;;  %v1197_v55 = vpop.xlane.xlu1 %1196  ;;  %v1246_v26 = vmul.f32 %v8878_v60, %v9829_v44  ;;  %2428 = vrot.lane.b32.xlu0 %v9834_v59, %s9323_s28  ;;  %v12570_v60 = vld [vmem:[#allocation14_spill] sm:$0xff] }
 0x246   : > { %v8882_v22 = vpop.eup %8881  ;;  %v1167_v58 = vpop.xlane.xlu0 %1166  ;;  %v1247_v38 = vmul.f32 %v8880_v40, %v9836_v46  ;;  %2516 = vrot.lane.b32.xlu1 %v9871_v56, %s9323_s28  ;;  %v1270_v46 = vpack.c.bf16 %v1248_v25, %v1248_v25  ;;  %v12571_v25 = vld [vmem:[#allocation17_spill] sm:$0xff] }
 0x247   : > { %7910 = vmatpush3.bf16.msra.mxu0 %v10032_v24  ;;  %7924 = vmatpush3.bf16.msra.mxu1 %v10035_v0  ;;  %8887 = vrcp.f32 %v1167_v58  ;;  %v1239_v18 = vmul.f32 %v8882_v22, %v9817_v20  ;;  %v12562_v20 = vld [vmem:[#allocation10_spill] sm:$0xff] }
 0x248   : > { %v8884_v27 = vpop.eup %8883  ;;  %v1269_v44 = vpack.c.bf16 %v1247_v38, %v1246_v26  ;;  %7911 = vmatprep.subr.bf16.mxu0 %v8798_v11  ;;  %7925 = vmatprep.subr.bf16.mxu1 %v10049_v9  ;;  %8889 = vrcp.f32 %v1173_v12 }
 0x249   : > { %v1170_v59 = vpop.xlane.xlu1 %1169  ;;  %v1240_v56 = vmul.f32 %v8884_v27, %v9846_v39  ;;  %2426 = vrot.lane.b32.xlu0 %v9856_v8, %s9323_s28  ;;  %v1266_v39 = vpack.c.bf16 %v1241_v43, %v1241_v43  ;;  %v12573_v27 = vld [vmem:[#allocation24_spill] sm:$0xff] }
 0x24a   : > { %7901 = vmatprep.mubr.msk.bf16.mxu1 %vm953_vm1, %v1269_v44  ;;  %8891 = vrcp.f32 %v1170_v59  ;;  %v1188_v34 = vpop.xlane.xlu0 %1187  ;;  %2424 = vrot.lane.b32.xlu1 %v9868_v7, %s9323_s28  ;;  %v12563_v7 = vld [vmem:[#allocation7_spill] sm:$0xff]  ;;  %v12574_v43 = vld [vmem:[#allocation16_spill] sm:$0xff] }
 0x24b   : > { %8893 = vrcp.f32 %v1197_v55  ;;  %7902 = vmatmul.mubr.msk.bf16.gmra.mxu1 %vm953_vm1, %v1270_v46  ;;  %7912 = vmatpush3.bf16.msra.mxu0 %v8798_v11  ;;  %v1265_v30 = vpack.c.bf16 %v1240_v56, %v1239_v18  ;;  %v1720_v46 = vsel %vm492_vm0, %v12562_v20, 0 }
 0x24c   : > { %7926 = vmatpush3.bf16.msra.mxu1 %v10049_v9  ;;  %8895 = vrcp.f32 %v1188_v34  ;;  %8705 = vmatprep.subr.msk.bf16.mxu0 %vm492_vm0, %v12562_v20  ;;  %v12576_v34 = vld [vmem:[#allocation9_spill] sm:$0xff]  ;;  %v12577_v20 = vld [vmem:[#allocation12_spill] sm:$0xff] }
 0x24d   : > { %8897 = vrcp.f32 %v1194_v35  ;;  %7885 = vmatprep.mubr.msk.bf16.mxu0 %vm953_vm1, %v1265_v30  ;;  %7927 = vmatprep.subr.bf16.mxu1 %v8800_v13  ;;  %v1191_v8 = vpop.xlane.xlu1 %1190 }
 0x24e   : > { %8899 = vrcp.f32 %v1191_v8  ;;  %7886 = vmatmul.mubr.msk.bf16.gmra.mxu0 %vm953_vm1, %v1266_v39  ;;  %2514 = vrot.lane.b32.xlu1 %v9889_v41, %s9323_s28  ;;  %v1821_v39 = vsel %vm492_vm0, %v12576_v34, 0  ;;  %v12578_v8 = vld [vmem:[#allocation11_spill] sm:$0xff] }
 0x24f   : > { %2422 = vrot.lane.b32.xlu0 %v9886_v2, %s9323_s28  ;;  %v8886_v33 = vpop.eup %8885 }
 0x250   : > { %7928 = vmatpush3.bf16.msra.mxu1 %v8800_v13  ;;  %v1252_v5 = vmul.f32 %v8886_v33, %v12567_v3  ;;  %v1824_v13 = vsel %vm492_vm0, %v12563_v7, 0 }
 0x251   : > { %8709 = vmatprep.subr.msk.bf16.mxu1 %vm492_vm0, %v12563_v7  ;;  %v1714_v7 = vsel %vm492_vm0, %v12577_v20, 0  ;;  %v1795_v33 = vpop.permute.xlu1 %1794 }
 0x252   : > { %2608 = vrot.lane.b32.xlu1 %v12564_v63, %s9323_s28  ;;  %v1691_v63 = vpop.permute.xlu0 %1690 }
 0x253   : > { %2512 = vrot.lane.b32.xlu0 %v12565_v49, %s9323_s28  ;;  %v1818_v49 = vsel %vm492_vm0, %v12578_v8, 0 }
 0x254   : > { %v8888_v12 = vpop.eup %8887 }
 0x255   : > { %v8890_v10 = vpop.eup %8889  ;;  %v1249_v61 = vmul.f32 %v8888_v12, %v12568_v32  ;;  %v1711_v12 = vsel %vm492_vm0, %v1691_v63, 0 }
 0x256   : > { %2698 = vrot.lane.b32.xlu1 %v12566_v51, %s9323_s28  ;;  %v1251_v11 = vmul.f32 %v8890_v10, %v12570_v60  ;;  %v1815_v10 = vsel %vm492_vm0, %v1795_v33, 0 }
 0x257   : > { %v8892_v41 = vpop.eup %8891  ;;  %2606 = vrot.lane.b32.xlu0 %v10018_v48, %s9323_s28  ;;  %v12572_v48 = vld [vmem:[#allocation23_spill] sm:$0xff] }
 0x258   : > { %v8894_v2 = vpop.eup %8893  ;;  %v1250_v35 = vmul.f32 %v8892_v41, %v12569_v23  ;;  %v1272_v58 = vpack.c.bf16 %v1252_v5, %v1251_v11 }
 0x259   : > { %v8896_v21 = vpop.eup %8895  ;;  %v1259_v22 = vmul.f32 %v8894_v2, %v12571_v25 }
 0x25a   : > { %v8898_v40 = vpop.eup %8897  ;;  %v1271_v55 = vpack.c.bf16 %v1250_v35, %v1249_v61  ;;  %2696 = vrot.lane.b32.xlu1 %v10035_v0, %s9323_s28  ;;  %v1256_v38 = vmul.f32 %v8896_v21, %v12572_v48  ;;  %v12575_v0 = vld [vmem:[#allocation8_spill] sm:$0xff] }
 0x25b   : > { %v8900_v26 = vpop.eup %8899  ;;  %v1258_v59 = vmul.f32 %v8898_v40, %v12574_v43  ;;  %v1717_v30 = vsel %vm492_vm0, %v12575_v0, 0 }
 0x25c   : > { %7913 = vmatprep.mubr.msk.bf16.mxu0 %vm953_vm1, %v1271_v55  ;;  %v1257_v44 = vmul.f32 %v8900_v26, %v12573_v27 }
 0x25d   : > { %7914 = vmatmul.mubr.msk.bf16.vlgmr.msra.gmra.mxu0 %vm953_vm1, %v1272_v58  ;;  %v1276_v56 = vpack.c.bf16 %v1259_v22, %v1258_v59 }
 0x25e   : > { %7938 = vmatpush3.bf16.xpose.msra.mxu0 %v1720_v46  ;;  %v1275_v18 = vpack.c.bf16 %v1257_v44, %v1256_v38 }
 0x25f   : > { %8706 = vmatprep.subr.msk.bf16.mxu0 %vm492_vm0, %v12575_v0 }
 0x260   : > { %7929 = vmatprep.mubr.msk.bf16.mxu1 %vm953_vm1, %v1275_v18 }
 0x261   : > { %7930 = vmatmul.mubr.msk.bf16.vlgmr.msra.gmra.mxu1 %vm953_vm1, %v1276_v56 }
 0x262   : > { %7954 = vmatpush3.bf16.xpose.msra.mxu1 %v1824_v13 }
 0x263   : > { %8710 = vmatprep.subr.msk.bf16.mxu1 %vm492_vm0, %v12576_v34 }
 0x266   : > { %7940 = vmatpush3.bf16.xpose.msra.mxu0 %v1717_v30 }
 0x267   : > { %8707 = vmatprep.subr.msk.bf16.mxu0 %vm492_vm0, %v12577_v20 }
 0x26a   : > { %7956 = vmatpush3.bf16.xpose.msra.mxu1 %v1821_v39 }
 0x26b   : > { %8711 = vmatprep.subr.msk.bf16.mxu1 %vm492_vm0, %v12578_v8 }
 0x26e   : > { %7942 = vmatpush3.bf16.xpose.msra.mxu0 %v1714_v7 }
 0x26f   : > { %8708 = vmatprep.subr.msk.bf16.mxu0 %vm492_vm0, %v1691_v63 }
 0x272   : > { %7958 = vmatpush3.bf16.xpose.msra.mxu1 %v1818_v49 }
 0x273   : > { %8712 = vmatprep.subr.msk.bf16.mxu1 %vm492_vm0, %v1795_v33 }
 0x276   : > { %7944 = vmatpush3.bf16.xpose.msra.mxu0 %v1711_v12 }
 0x27a   : > { %7960 = vmatpush3.bf16.xpose.msra.mxu1 %v1815_v10 }
 0x27f   : > { %v1185_v51 = vpop.xlane.xlu0 %1184 }
 0x282   : > { %v1206_v41 = vpop.xlane.xlu1 %1205 }
 0x283   : > { %v1179_v3 = vpop.xlane.xlu0 %1178  ;;  %8901 = vrcp.f32 %v1206_v41 }
 0x284   : > { %8903 = vrcp.f32 %v1185_v51 }
 0x286   : > { %v1200_v5 = vpop.xlane.xlu1 %1199 }
 0x287   : > { %8905 = vrcp.f32 %v1200_v5  ;;  %v1203_v2 = vpop.xlane.xlu0 %1202 }
 0x288   : > { %8907 = vrcp.f32 %v1203_v2 }
 0x289   : > { %8909 = vrcp.f32 %v1179_v3 }
 0x28a   : > { %v1182_v32 = vpop.xlane.xlu1 %1181 }
 0x28b   : > { %8911 = vrcp.f32 %v1182_v32  ;;  %v1683_v61 = vpop.permute.xlu0 %1682 }
 0x28e   : > { %v1905_v23 = vpop.permute.xlu1 %1904 }
 0x28f   : > { %v1685_v35 = vpop.permute.xlu0 %1684  ;;  %8713 = vmatprep.subr.msk.bf16.mxu0 %vm492_vm0, %v1905_v23  ;;  %v1928_v30 = vsel %vm492_vm0, %v1905_v23, 0 }
 0x290   : > { %v8902_v21 = vpop.eup %8901 }
 0x291   : > { %v8904_v11 = vpop.eup %8903  ;;  %v1262_v22 = vmul.f32 %v8902_v21, %v9948_v17 }
 0x292   : > { %v1787_v60 = vpop.permute.xlu1 %1786  ;;  %v1255_v59 = vmul.f32 %v8904_v11, %v9946_v31 }
 0x293   : > { %v2009_v40 = vpop.permute.xlu0 %2008  ;;  %v1278_v46 = vpack.c.bf16 %v1262_v22, %v1262_v22 }
 0x294   : > { %v8906_v55 = vpop.eup %8905  ;;  %8717 = vmatprep.subr.msk.bf16.mxu1 %vm492_vm0, %v2009_v40  ;;  %v1274_v13 = vpack.c.bf16 %v1255_v59, %v1255_v59 }
 0x295   : > { %v8908_v26 = vpop.eup %8907  ;;  %v1260_v25 = vmul.f32 %v8906_v55, %v9956_v14 }
 0x296   : > { %v8910_v58 = vpop.eup %8909  ;;  %v1261_v48 = vmul.f32 %v8908_v26, %v9960_v57  ;;  %v1789_v38 = vpop.permute.xlu1 %1788  ;;  %v2032_v57 = vsel %vm492_vm0, %v2009_v40, 0 }
 0x297   : > { %v1903_v27 = vpop.permute.xlu0 %1902  ;;  %v1253_v18 = vmul.f32 %v8910_v58, %v9952_v28 }
 0x298   : > { %v8912_v44 = vpop.eup %8911  ;;  %v1277_v43 = vpack.c.bf16 %v1261_v48, %v1260_v25  ;;  %v1925_v63 = vsel %vm492_vm0, %v1903_v27, 0 }
 0x299   : > { %v1254_v0 = vmul.f32 %v8912_v44, %v9964_v50 }
 0x29a   : > { %7933 = vmatprep.mubr.msk.bf16.mxu1 %vm953_vm1, %v1277_v43  ;;  %v2007_v56 = vpop.permute.xlu1 %2006 }
 0x29b   : > { %7934 = vmatmul.mubr.msk.bf16.gmra.mxu1 %vm953_vm1, %v1278_v46  ;;  %v1273_v17 = vpack.c.bf16 %v1254_v0, %v1253_v18  ;;  %v1901_v14 = vpop.permute.xlu0 %1900  ;;  %v2029_v8 = vsel %vm492_vm0, %v2007_v56, 0  ;;  %v12590_v46 = vld [vmem:[#allocation13_spill] sm:$0xff] }
 0x29c   : > { %7961 = vmatprep.mubr.msk.bf16.mxu1 %vm492_vm0, %v1787_v60  ;;  %v1922_v10 = vsel %vm492_vm0, %v1901_v14, 0 }
 0x29d   : > { %7917 = vmatprep.mubr.msk.bf16.mxu0 %vm953_vm1, %v1273_v17 }
 0x29e   : > { %7918 = vmatmul.mubr.msk.bf16.gmra.mxu0 %vm953_vm1, %v1274_v13  ;;  %v2005_v31 = vpop.permute.xlu1 %2004 }
 0x29f   : > { %7945 = vmatprep.mubr.msk.bf16.mxu0 %vm492_vm0, %v1683_v61  ;;  %v1687_v28 = vpop.permute.xlu0 %1686  ;;  %v2026_v33 = vsel %vm492_vm0, %v2005_v31, 0 }
 0x2a2   : > { %v1689_v50 = vpop.permute.xlu1 %1688 }
 0x2a3   : > { %7962 = vmatmul.mubr.msk.bf16.vlgmr.msra.gmra.mxu1 %vm492_vm0, %v1789_v38  ;;  %v1791_v34 = vpop.permute.xlu0 %1790 }
 0x2a4   : > { %7986 = vmatpush3.bf16.xpose.msra.mxu1 %v2032_v57  ;;  %7965 = vmatprep.mubr.msk.bf16.mxu1 %vm492_vm0, %v1791_v34 }
 0x2a5   : > { %8718 = vmatprep.subr.msk.bf16.mxu1 %vm492_vm0, %v2007_v56 }
 0x2a6   : > { %7946 = vmatmul.mubr.msk.bf16.vlgmr.msra.gmra.mxu0 %vm492_vm0, %v1685_v35  ;;  %v1793_v39 = vpop.permute.xlu1 %1792 }
 0x2a7   : > { %7970 = vmatpush3.bf16.xpose.msra.mxu0 %v1928_v30  ;;  %7949 = vmatprep.mubr.msk.bf16.mxu0 %vm492_vm0, %v1687_v28  ;;  %v1899_v20 = vpop.permute.xlu0 %1898 }
 0x2a8   : > { %8714 = vmatprep.subr.msk.bf16.mxu0 %vm492_vm0, %v1903_v27  ;;  %v1919_v5 = vsel %vm492_vm0, %v1899_v20, 0 }
 0x2aa   : > { %v2003_v12 = vpop.permute.xlu1 %2002 }
 0x2ab   : > { %7966 = vmatmul.mubr.msk.bf16.gmra.mxu1 %vm492_vm0, %v1793_v39  ;;  %v1891_v7 = vpop.permute.xlu0 %1890  ;;  %v2023_v41 = vsel %vm492_vm0, %v2003_v12, 0 }
 0x2ac   : > { %7988 = vmatpush3.bf16.xpose.msra.mxu1 %v2029_v8 }
 0x2ad   : > { %8719 = vmatprep.subr.msk.bf16.mxu1 %vm492_vm0, %v2005_v31 }
 0x2ae   : > { %7950 = vmatmul.mubr.msk.bf16.gmra.mxu0 %vm492_vm0, %v1689_v50  ;;  %v1893_v51 = vpop.permute.xlu1 %1892 }
 0x2af   : > { %7972 = vmatpush3.bf16.xpose.msra.mxu0 %v1925_v63  ;;  %7977 = vmatprep.mubr.msk.bf16.mxu0 %vm492_vm0, %v1891_v7  ;;  %v1995_v49 = vpop.permute.xlu0 %1994 }
 0x2b0   : > { %8715 = vmatprep.subr.msk.bf16.mxu0 %vm492_vm0, %v1901_v14  ;;  %7993 = vmatprep.mubr.msk.bf16.mxu1 %vm492_vm0, %v1995_v49 }
 0x2b2   : > { %v1997_v2 = vpop.permute.xlu1 %1996 }
 0x2b3   : > { %v1895_v3 = vpop.permute.xlu0 %1894 }
 0x2b4   : > { %7990 = vmatpush3.bf16.xpose.msra.mxu1 %v2026_v33 }
 0x2b5   : > { %8720 = vmatprep.subr.msk.bf16.mxu1 %vm492_vm0, %v2003_v12 }
 0x2b6   : > { %v1897_v61 = vpop.permute.xlu1 %1896 }
 0x2b7   : > { %7974 = vmatpush3.bf16.xpose.msra.mxu0 %v1922_v10  ;;  %v1999_v32 = vpop.permute.xlu0 %1998 }
 0x2b8   : > { %8716 = vmatprep.subr.msk.bf16.mxu0 %vm492_vm0, %v1899_v20 }
 0x2ba   : > { %v2001_v23 = vpop.permute.xlu1 %2000 }
 0x2bb   : > { %v2429_v43 = vpop.permute.xlu0 %2428 }
 0x2bc   : > { %7992 = vmatpush3.bf16.xpose.msra.mxu1 %v2023_v41  ;;  %v2446_v18 = vand.u32 %v2429_v43, %v12590_v46 }
 0x2be   : > { %v2519_v59 = vpop.permute.xlu1 %2518 }
 0x2bf   : > { %7976 = vmatpush3.bf16.xpose.msra.mxu0 %v1919_v5  ;;  %v2536_v0 = vand.u32 %v2519_v59, %v12590_v46  ;;  %v2427_v17 = vpop.permute.xlu0 %2426 }
 0x2c0   : > { %8001 = vmatprep.subr.bf16.mxu0 %v2446_v18 }
 0x2c1   : > { %8017 = vmatprep.subr.bf16.mxu1 %v2536_v0 }
 0x2c2   : > { %v2517_v56 = vpop.permute.xlu1 %2516 }
 0x2c3   : > { %7994 = vmatmul.mubr.msk.bf16.vlgmr.msra.gmra.mxu1 %vm492_vm0, %v1997_v2  ;;  %v2423_v13 = vpop.permute.xlu0 %2422 }
 0x2c4   : > { %7997 = vmatprep.mubr.msk.bf16.mxu1 %vm492_vm0, %v1999_v32  ;;  %8018 = vmatpush3.bf16.msra.mxu1 %v2536_v0 }
 0x2c5   : > { %8019 = vmatprep.subr.bf16.mxu1 %v2517_v56 }
 0x2c6   : > { %7978 = vmatmul.mubr.msk.bf16.vlgmr.msra.gmra.mxu0 %vm492_vm0, %v1893_v51  ;;  %v2425_v14 = vpop.permute.xlu1 %2424 }
 0x2c7   : > { %7981 = vmatprep.mubr.msk.bf16.mxu0 %vm492_vm0, %v1895_v3  ;;  %8002 = vmatpush3.bf16.msra.mxu0 %v2446_v18  ;;  %v2513_v28 = vpop.permute.xlu0 %2512  ;;  %v10244_v18 = vld [vmem:[%s12492_s3 + $0x50] sm:$0xff] }
 0x2c8   : > { %8003 = vmatprep.subr.bf16.mxu0 %v2427_v17  ;;  %8020 = vmatpush3.bf16.msra.mxu1 %v2517_v56 }
 0x2ca   : > { %v2515_v31 = vpop.permute.xlu1 %2514 }
 0x2cb   : > { %7998 = vmatmul.mubr.msk.bf16.gmra.mxu1 %vm492_vm0, %v2001_v23  ;;  %8004 = vmatpush3.bf16.msra.mxu0 %v2427_v17 }
 0x2cc   : > { %8005 = vmatprep.subr.bf16.mxu0 %v2425_v14  ;;  %8021 = vmatprep.subr.bf16.mxu1 %v2515_v31 }
 0x2cd   : > { %8022 = vmatpush3.bf16.msra.mxu1 %v2515_v31 }
 0x2ce   : > { %7982 = vmatmul.mubr.msk.bf16.gmra.mxu0 %vm492_vm0, %v1897_v61  ;;  %8023 = vmatprep.subr.bf16.mxu1 %v2513_v28  ;;  %v2609_v57 = vpop.permute.xlu1 %2608 }
 0x2cf   : > { %8006 = vmatpush3.bf16.msra.mxu0 %v2425_v14  ;;  %v10197_v50 = vand.u32 %v2609_v57, %v12590_v46 }
 0x2d0   : > { %8007 = vmatprep.subr.bf16.mxu0 %v2423_v13 }
 0x2d1   : > { %8024 = vmatpush3.bf16.msra.mxu1 %v2513_v28 }
 0x2d2   : > { %v2699_v34 = vpop.permute.xlu1 %2698 }
 0x2d3   : > { %8008 = vmatpush3.bf16.msra.mxu0 %v2423_v13  ;;  %v10201_v30 = vand.u32 %v2699_v34, %v12590_v46  ;;  %v10260_v34 = vld [vmem:[%s12492_s3 + $0x38] sm:$0xff] }
 0x2d4   : > { %8033 = vmatprep.subr.bf16.mxu0 %v10197_v50 }
 0x2d5   : > { %8049 = vmatprep.subr.bf16.mxu1 %v10201_v30 }
 0x2fe   : > { %v10170_v35 = vpop.f32.mrf.mxu0 }
 0x2ff   : > { %12579 = vst [vmem:[#allocation10_spill] sm:$0xff] %v10170_v35 }
 0x300   : > { %v10174_v60 = vpop.f32.mrf.mxu0 }
 0x302   : > { %v10172_v21 = vpop.f32.mrf.mxu1  ;;  %v10180_v55 = vpop.f32.mrf.mxu0 }
 0x303   : > { %12580 = vst [vmem:[#allocation7_spill] sm:$0xff] %v10172_v21  ;;  %12583 = vst [vmem:[#allocation22_spill] sm:$0xff] %v10180_v55 }
 0x304   : > { %v10176_v11 = vpop.f32.mrf.mxu1  ;;  %v10186_v22 = vpop.f32.mrf.mxu0 }
 0x305   : > { %12581 = vst [vmem:[#allocation18_spill] sm:$0xff] %v10176_v11  ;;  %12586 = vst [vmem:[#allocation21_spill] sm:$0xff] %v10186_v22 }
 0x306   : > { %v10178_v40 = vpop.f32.mrf.mxu1 }
 0x307   : > { %12582 = vst [vmem:[#allocation20_spill] sm:$0xff] %v10178_v40 }
 0x308   : > { %v10182_v26 = vpop.f32.mrf.mxu1 }
 0x309   : > { %12584 = vst [vmem:[#allocation15_spill] sm:$0xff] %v10182_v26 }
 0x30b   : > { %v10184_v25 = vpop.f32.mrf.mxu1 }
 0x30c   : > { %12585 = vst [vmem:[#allocation19_spill] sm:$0xff] %v10184_v25 }
 0x30d   : > { %v10188_v58 = vpop.f32.mrf.mxu1 }
 0x30e   : > { %12587 = vst [vmem:[#allocation14_spill] sm:$0xff] %v10188_v58  ;;  %v10190_v48 = vpop.f32.mrf.mxu0 }
 0x30f   : > { %12588 = vst [vmem:[#allocation17_spill] sm:$0xff] %v10190_v48  ;;  %v7904_v38 = vpop.f32.mrf.mxu1 }
 0x310   : > { %v10192_v27 = vpop.f32.mrf.mxu0 }
 0x311   : > { %12589 = vst [vmem:[#allocation23_spill] sm:$0xff] %v10192_v27  ;;  %v10204_v20 = vpop.f32.mrf.mxu1 }
 0x312   : > { %v7888_v44 = vpop.f32.mrf.mxu0  ;;  %12591 = vst [vmem:[#allocation24_spill] sm:$0xff] %v10204_v20 }
 0x313   : > { %v10237_v44 = vld [vmem:[%s12492_s3 + $0x48] sm:$0xff] }
 0x314   : > { %v10208_v8 = vpop.f32.mrf.mxu0 }
 0x315   : > { %12593 = vst [vmem:[#allocation8_spill] sm:$0xff] %v10208_v8 }
 0x31d   : > { %v10210_v7 = vpop.f32.mrf.mxu0 }
 0x31e   : > { %12594 = vst [vmem:[#allocation9_spill] sm:$0xff] %v10210_v7 }
 0x31f   : > { %v10214_v49 = vpop.f32.mrf.mxu0 }
 0x320   : > { %12596 = vst [vmem:[#allocation11_spill] sm:$0xff] %v10214_v49 }
 0x321   : > { %v10206_v39 = vpop.f32.mrf.mxu1  ;;  %v10218_v12 = vpop.f32.mrf.mxu0 }
 0x322   : > { %12592 = vst [vmem:[#allocation16_spill] sm:$0xff] %v10206_v39  ;;  %12598 = vst [vmem:[#allocation26_spill] sm:$0xff] %v10218_v12 }
 0x323   : > { %v10212_v63 = vpop.f32.mrf.mxu1  ;;  %v10224_v41 = vpop.f32.mrf.mxu0 }
 0x324   : > { %12595 = vst [vmem:[#allocation12_spill] sm:$0xff] %v10212_v63  ;;  %12601 = vst [vmem:[#allocation29_spill] sm:$0xff] %v10224_v41 }
 0x325   : > { %v10216_v33 = vpop.f32.mrf.mxu1 }
 0x326   : > { %12597 = vst [vmem:[#allocation25_spill] sm:$0xff] %v10216_v33 }
 0x327   : > { %v10220_v10 = vpop.f32.mrf.mxu1 }
 0x328   : > { %12599 = vst [vmem:[#allocation27_spill] sm:$0xff] %v10220_v10 }
 0x35b   : > { %v10222_v51 = vpop.f32.mrf.mxu1 }
 0x35c   : > { %12600 = vst [vmem:[#allocation28_spill] sm:$0xff] %v10222_v51 }
 0x35d   : > { %v10226_v3 = vpop.f32.mrf.mxu1 }
 0x35e   : > { %12602 = vst [vmem:[#allocation30_spill] sm:$0xff] %v10226_v3  ;;  %v10228_v5 = vpop.f32.mrf.mxu0 }
 0x35f   : > { %12603 = vst [vmem:[#allocation31_spill] sm:$0xff] %v10228_v5  ;;  %v7936_v2 = vpop.f32.mrf.mxu1 }
 0x360   : > { %v10230_v32 = vpop.f32.mrf.mxu0 }
 0x361   : > { %12604 = vst [vmem:[#allocation32_spill] sm:$0xff] %v10230_v32  ;;  %v10232_v61 = vpop.f32.mrf.mxu1 }
 0x362   : > { %12605 = vst [vmem:[#allocation33_spill] sm:$0xff] %v10232_v61  ;;  %v7920_v23 = vpop.f32.mrf.mxu0 }
 0x363   : > { %v7963_v38 = vpop.f32.mrf.mxu1 }
 0x364   : > { %v10239_v43 = vpop.f32.mrf.mxu0  ;;  %v10247_v56 = vadd.f32 %v7963_v38, %v10237_v44 }
 0x365   : > { %12606 = vst [vmem:[#allocation34_spill] sm:$0xff] %v10239_v43  ;;  %v1860_v59 = vpop.f32.mrf.mxu1 }
 0x366   : > { %v7947_v0 = vpop.f32.mrf.mxu0  ;;  %v2125_v38 = vsel %vm953_vm1, %v10247_v56, -inf }
 0x367   : > { %v10250_v17 = vadd.f32 %v7947_v0, %v10237_v44  ;;  %v7964_v14 = vpop.f32.mrf.mxu1 }
 0x368   : > { %v10253_v13 = vadd.f32 %v7964_v14, %v10244_v18  ;;  %v1756_v31 = vpop.f32.mrf.mxu0  ;;  %v10269_v14 = vld [vmem:[%s12492_s3 + $0x40] sm:$0xff] }
 0x369   : > { %v1863_v28 = vpop.f32.mrf.mxu1  ;;  %v2104_v57 = vsel %vm953_vm1, %v10250_v17, -inf  ;;  %v10272_v51 = vadd.f32 %v1756_v31, %v10260_v34 }
 0x36a   : > { %v2128_v2 = vsel %vm953_vm1, %v10253_v13, -inf  ;;  %2105 = vmax.xlane.f32.xlu0 %v2104_v57  ;;  %v7948_v23 = vpop.f32.mrf.mxu0  ;;  %v10280_v57 = vld [vmem:[%s12492_s3 + $0x68] sm:$0x1]  ;;  %v10283_v3 = vadd.f32 %v1863_v28, %v10269_v14  ;;  %v10298_v28 = vld [vmem:[%s12492_s3 + $0x58] sm:$0xff] }
 0x36b   : > { %2129 = vmax.xlane.f32.xlu1 %v2128_v2  ;;  %v7967_v0 = vpop.f32.mrf.mxu1 }
 0x36c   : > { %v1759_v46 = vpop.f32.mrf.mxu0  ;;  %v10293_v32 = vadd.f32 %v7967_v0, %v10280_v57 }
 0x36d   : > { %v10275_v61 = vadd.f32 %v1759_v46, %v10269_v14  ;;  %v1876_v5 = vpop.f32.mrf.mxu1  ;;  %v10288_v46 = vadd.f32 %v1860_v59, %v10260_v34 }
 0x36e   : > { %2126 = vmax.xlane.f32.xlu0 %v2125_v38  ;;  %v7951_v2 = vpop.f32.mrf.mxu0  ;;  %v2098_v38 = vsel %vm953_vm1, %v10272_v51, -inf  ;;  %v2137_v0 = vsel %vm972_vm2, %v10293_v32, -inf }
 0x36f   : > { %v2101_v43 = vsel %vm953_vm1, %v10275_v61, -inf  ;;  %v7968_v33 = vpop.f32.mrf.mxu1  ;;  %v2119_v59 = vsel %vm953_vm1, %v10288_v46, -inf }
 0x370   : > { %2102 = vmax.xlane.f32.xlu1 %v2101_v43  ;;  %v1772_v31 = vpop.f32.mrf.mxu0  ;;  %v2122_v33 = vsel %vm953_vm1, %v10283_v3, -inf  ;;  %v10303_v43 = vadd.f32 %v7948_v23, %v10244_v18 }
 0x372   : > { %2099 = vmax.xlane.f32.xlu0 %v2098_v38  ;;  %v7952_v39 = vpop.f32.mrf.mxu0  ;;  %v10310_v38 = vadd.f32 %v1876_v5, %v10298_v28  ;;  %v2107_v23 = vsel %vm953_vm1, %v10303_v43, -inf }
 0x373   : > { %v10315_v39 = vld [vmem:[%s12492_s3 + $0x60] sm:$0xff] }
 0x374   : > { %2123 = vmax.xlane.f32.xlu1 %v2122_v33  ;;  %v1775_v12 = vpop.f32.mrf.mxu0  ;;  %v10318_v33 = vadd.f32 %v7951_v2, %v10280_v57  ;;  %v2131_v5 = vsel %vm953_vm1, %v10310_v38, -inf  ;;  %v1879_v2 = vpop.f32.mrf.mxu1 }
 0x375   : > { %v10323_v10 = vadd.f32 %v1775_v12, %v10315_v39  ;;  %v10337_v63 = vadd.f32 %v1879_v2, %v10315_v39 }
 0x376   : > { %2120 = vmax.xlane.f32.xlu0 %v2119_v59  ;;  %v10328_v59 = vadd.f32 %v1772_v31, %v10298_v28  ;;  %v2116_v7 = vsel %vm972_vm2, %v10318_v33, -inf }
 0x377   : > { %v2134_v31 = vsel %vm953_vm1, %v10337_v63, -inf }
 0x378   : > { %2138 = vmax.xlane.f32.xlu1 %v2137_v0  ;;  %v2113_v0 = vsel %vm953_vm1, %v10323_v10, -inf  ;;  %v2110_v12 = vsel %vm953_vm1, %v10328_v59, -inf }
 0x37a   : > { %2108 = vmax.xlane.f32.xlu0 %v2107_v23 }
 0x37c   : > { %2132 = vmax.xlane.f32.xlu1 %v2131_v5 }
 0x37e   : > { %2117 = vmax.xlane.f32.xlu0 %v2116_v7 }
 0x380   : > { %2114 = vmax.xlane.f32.xlu1 %v2113_v0 }
 0x382   : > { %2111 = vmax.xlane.f32.xlu0 %v2110_v12 }
 0x383   : > { %v7995_v23 = vpop.f32.mrf.mxu1 }
 0x384   : > { %v10345_v7 = vadd.f32 %v7995_v23, %v10237_v44 }
 0x385   : > { %v2068_v41 = vpop.f32.mrf.mxu1 }
 0x386   : > { %v7979_v25 = vpop.f32.mrf.mxu0  ;;  %2135 = vmax.xlane.f32.xlu0 %v2134_v31 }
 0x387   : > { %v10342_v5 = vadd.f32 %v7979_v25, %v10237_v44  ;;  %v7996_v49 = vpop.f32.mrf.mxu1  ;;  %v2167_v44 = vsel %vm953_vm1, %v10345_v7, -inf }
 0x388   : > { %v1964_v20 = vpop.f32.mrf.mxu0  ;;  %v10356_v25 = vadd.f32 %v7996_v49, %v10244_v18 }
 0x389   : > { %v2146_v2 = vsel %vm953_vm1, %v10342_v5, -inf  ;;  %v2071_v0 = vpop.f32.mrf.mxu1  ;;  %v10350_v48 = vadd.f32 %v1964_v20, %v10260_v34  ;;  %v10363_v20 = vadd.f32 %v2068_v41, %v10260_v34 }
 0x38a   : > { %v7980_v12 = vpop.f32.mrf.mxu0  ;;  %2147 = vmax.xlane.f32.xlu0 %v2146_v2  ;;  %v10378_v34 = vadd.f32 %v2071_v0, %v10269_v14 }
 0x38b   : > { %v10353_v58 = vadd.f32 %v7980_v12, %v10244_v18  ;;  %v7999_v31 = vpop.f32.mrf.mxu1  ;;  %v2170_v12 = vsel %vm953_vm1, %v10356_v25, -inf  ;;  %v2140_v49 = vsel %vm953_vm1, %v10350_v48, -inf }
 0x38c   : > { %v1967_v23 = vpop.f32.mrf.mxu0 }
 0x38d   : > { %v2149_v8 = vsel %vm953_vm1, %v10353_v58, -inf  ;;  %v2084_v40 = vpop.f32.mrf.mxu1  ;;  %v10370_v21 = vadd.f32 %v1967_v23, %v10269_v14  ;;  %v10383_v23 = vadd.f32 %v7999_v31, %v10280_v57 }
 0x38e   : > { %2150 = vmax.xlane.f32.xlu1 %v2149_v8  ;;  %2168 = vmax.xlane.f32.xlu0 %v2167_v44  ;;  %v7983_v2 = vpop.f32.mrf.mxu0  ;;  %v2161_v8 = vsel %vm953_vm1, %v10363_v20, -inf  ;;  %v10393_v14 = vadd.f32 %v2084_v40, %v10298_v28 }
 0x38f   : > { %v8000_v18 = vpop.f32.mrf.mxu1  ;;  %v10375_v41 = vadd.f32 %v7983_v2, %v10280_v57  ;;  %v2143_v44 = vsel %vm953_vm1, %v10370_v21, -inf  ;;  %v2164_v2 = vsel %vm953_vm1, %v10378_v34, -inf  ;;  %v2179_v0 = vsel %vm972_vm2, %v10383_v23, -inf }
 0x390   : > { %v1980_v27 = vpop.f32.mrf.mxu0  ;;  %v2173_v18 = vsel %vm953_vm1, %v10393_v14, -inf }
 0x392   : > { %2171 = vmax.xlane.f32.xlu1 %v2170_v12  ;;  %2141 = vmax.xlane.f32.xlu0 %v2140_v49  ;;  %v7984_v55 = vpop.f32.mrf.mxu0  ;;  %v10386_v12 = vadd.f32 %v1980_v27, %v10298_v28  ;;  %v2087_v49 = vpop.f32.mrf.mxu1 }
 0x393   : > { %v2158_v55 = vsel %vm972_vm2, %v10375_v41, -inf  ;;  %v10400_v27 = vadd.f32 %v2087_v49, %v10315_v39 }
 0x394   : > { %v2152_v57 = vsel %vm953_vm1, %v10386_v12, -inf  ;;  %v1983_v31 = vpop.f32.mrf.mxu0 }
 0x395   : > { %v10407_v40 = vadd.f32 %v1983_v31, %v10315_v39 }
 0x396   : > { %2144 = vmax.xlane.f32.xlu1 %v2143_v44  ;;  %2162 = vmax.xlane.f32.xlu0 %v2161_v8  ;;  %v2176_v8 = vsel %vm953_vm1, %v10400_v27, -inf  ;;  %v10415_v44 = vpop.permute.xlu0 %2606 }
 0x397   : > { %v2155_v28 = vsel %vm953_vm1, %v10407_v40, -inf }
 0x39a   : > { %2165 = vmax.xlane.f32.xlu1 %v2164_v2  ;;  %2159 = vmax.xlane.f32.xlu0 %v2158_v55  ;;  %v10417_v55 = vpop.permute.xlu1 %2696 }
 0x39e   : > { %2180 = vmax.xlane.f32.xlu1 %v2179_v0  ;;  %2153 = vmax.xlane.f32.xlu0 %v2152_v57 }
 0x3a2   : > { %2174 = vmax.xlane.f32.xlu1 %v2173_v18  ;;  %2177 = vmax.xlane.f32.xlu0 %v2176_v8 }
 0x3a6   : > { %2156 = vmax.xlane.f32.xlu1 %v2155_v28 }
 0x3b7   : > { %2694 = vrot.lane.b32.xlu1 %v10049_v9, %s9323_s28 }
 0x3b8   : > { %2604 = vrot.lane.b32.xlu0 %v10032_v24, %s9323_s28 }
 0x3f3   : > { %v2106_v49 = vpop.xlane.xlu0 %2105 }
 0x3f4   : > { %v2184_v39 = vsub.f32 %v10250_v17, %v2106_v49  ;;  %v2130_v2 = vpop.xlane.xlu1 %2129 }
 0x3f5   : > { %v2192_v17 = vsub.f32 %v10253_v13, %v2130_v2 }
 0x3f6   : > { %v2214_v0 = vmul.f32 1.442695, %v2184_v39 }
 0x3f7   : > { %v2127_v57 = vpop.xlane.xlu0 %2126 }
 0x3f8   : > { %8913 = vpow2.f32 %v2214_v0  ;;  %v2191_v31 = vsub.f32 %v10247_v56, %v2127_v57 }
 0x3f9   : > { %v2103_v18 = vpop.xlane.xlu1 %2102 }
 0x3fa   : > { %v2228_v8 = vmul.f32 1.442695, %v2191_v31  ;;  %v2183_v57 = vsub.f32 %v10275_v61, %v2103_v18 }
 0x3fb   : > { %v2100_v28 = vpop.xlane.xlu0 %2099 }
 0x3fc   : > { %8915 = vpow2.f32 %v2228_v8  ;;  %v2182_v9 = vsub.f32 %v10272_v51, %v2100_v28  ;;  %v2230_v51 = vmul.f32 1.442695, %v2192_v17 }
 0x3fd   : > { %v2124_v24 = vpop.xlane.xlu1 %2123 }
 0x3fe   : > { %v2210_v26 = vmul.f32 1.442695, %v2182_v9 }
 0x3ff   : > { %v2121_v35 = vpop.xlane.xlu0 %2120 }
 0x400   : > { %8917 = vpow2.f32 %v2210_v26  ;;  %v2189_v11 = vsub.f32 %v10288_v46, %v2121_v35  ;;  %v2212_v46 = vmul.f32 1.442695, %v2183_v57 }
 0x401   : > { %v2139_v22 = vpop.xlane.xlu1 %2138 }
 0x402   : > { %v2224_v49 = vmul.f32 1.442695, %v2189_v11 }
 0x403   : > { %v2109_v39 = vpop.xlane.xlu0 %2108 }
 0x404   : > { %8919 = vpow2.f32 %v2224_v49  ;;  %v2185_v56 = vsub.f32 %v10303_v43, %v2109_v39  ;;  %v2190_v43 = vsub.f32 %v10283_v3, %v2124_v24  ;;  %v2195_v39 = vsub.f32 %v10293_v32, %v2139_v22 }
 0x405   : > { %v10425_v0 = vpop.eup %8913  ;;  %v2133_v31 = vpop.xlane.xlu1 %2132 }
 0x406   : > { %v2216_v8 = vmul.f32 1.442695, %v2185_v56  ;;  %v2272_v26 = vsel %vm953_vm1, %v10425_v0, 0.0  ;;  %v2236_v57 = vmul.f32 1.442695, %v2195_v39 }
 0x407   : > { %2273 = vadd.xlane.f32.xlu0 %v2272_v26  ;;  %v2118_v35 = vpop.xlane.xlu0 %2117 }
 0x408   : > { %8921 = vpow2.f32 %v2216_v8  ;;  %v2188_v13 = vsub.f32 %v10318_v33, %v2118_v35  ;;  %v2226_v33 = vmul.f32 1.442695, %v2190_v43  ;;  %v2193_v35 = vsub.f32 %v10310_v38, %v2133_v31 }
 0x409   : > { %v10431_v11 = vpop.eup %8915  ;;  %v2115_v2 = vpop.xlane.xlu1 %2114  ;;  %8923 = vpow2.f32 %v2230_v51 }
 0x40a   : > { %v2222_v28 = vmul.f32 1.442695, %v2188_v13  ;;  %v2187_v61 = vsub.f32 %v10323_v10, %v2115_v2  ;;  %v2293_v18 = vsel %vm953_vm1, %v10431_v11, 0.0 }
 0x40b   : > { %2294 = vadd.xlane.f32.xlu0 %v2293_v18  ;;  %v2112_v9 = vpop.xlane.xlu0 %2111 }
 0x40c   : > { %8925 = vpow2.f32 %v2222_v28  ;;  %v2220_v17 = vmul.f32 1.442695, %v2187_v61  ;;  %v2186_v51 = vsub.f32 %v10328_v59, %v2112_v9  ;;  %v2232_v28 = vmul.f32 1.442695, %v2193_v35 }
 0x40d   : > { %v10437_v49 = vpop.eup %8917  ;;  %8927 = vpow2.f32 %v2212_v46 }
 0x40e   : > { %8929 = vpow2.f32 %v2220_v17  ;;  %v2266_v3 = vsel %vm953_vm1, %v10437_v49, 0.0  ;;  %v2218_v13 = vmul.f32 1.442695, %v2186_v51 }
 0x40f   : > { %2267 = vadd.xlane.f32.xlu0 %v2266_v3  ;;  %v2136_v24 = vpop.xlane.xlu0 %2135  ;;  %8931 = vpow2.f32 %v2226_v33 }
 0x410   : > { %v2194_v10 = vsub.f32 %v10337_v63, %v2136_v24 }
 0x411   : > { %v10443_v56 = vpop.eup %8919 }
 0x412   : > { %v2234_v8 = vmul.f32 1.442695, %v2194_v10  ;;  %v2287_v26 = vsel %vm953_vm1, %v10443_v56, 0.0 }
 0x413   : > { %2288 = vadd.xlane.f32.xlu0 %v2287_v26  ;;  %v2148_v22 = vpop.xlane.xlu0 %2147 }
 0x414   : > { %8933 = vpow2.f32 %v2234_v8  ;;  %v2198_v61 = vsub.f32 %v10342_v5, %v2148_v22 }
 0x415   : > { %v10448_v32 = vpop.eup %8921  ;;  %8935 = vpow2.f32 %v2236_v57 }
 0x416   : > { %v2275_v63 = vsel %vm953_vm1, %v10448_v32, 0.0  ;;  %v10453_v46 = vpop.eup %8923  ;;  %8937 = vpow2.f32 %v2218_v13  ;;  %v2242_v3 = vmul.f32 1.442695, %v2198_v61 }
 0x417   : > { %v10455_v43 = vpop.xlane.xlu1 %2150  ;;  %2276 = vadd.xlane.f32.xlu1 %v2275_v63  ;;  %v2169_v59 = vpop.xlane.xlu0 %2168  ;;  %v2296_v38 = vsel %vm953_vm1, %v10453_v46, 0.0  ;;  %8939 = vpow2.f32 %v2232_v28 }
 0x418   : > { %v2205_v24 = vsub.f32 %v10345_v7, %v2169_v59 }
 0x419   : > { %v10457_v2 = vpop.eup %8925 }
 0x41a   : > { %v10460_v18 = vpop.eup %8927  ;;  %v2284_v31 = vsel %vm972_vm2, %v10457_v2, 0.0  ;;  %v2256_v13 = vmul.f32 1.442695, %v2205_v24 }
 0x41b   : > { %v10466_v9 = vpop.eup %8929  ;;  %v2172_v17 = vpop.xlane.xlu1 %2171  ;;  %2297 = vadd.xlane.f32.xlu1 %v2296_v38  ;;  %2285 = vadd.xlane.f32.xlu0 %v2284_v31  ;;  %v2269_v57 = vsel %vm953_vm1, %v10460_v18, 0.0 }
 0x41c   : > { %v2142_v33 = vpop.xlane.xlu0 %2141  ;;  %v2206_v39 = vsub.f32 %v10356_v25, %v2172_v17  ;;  %v10469_v5 = vpop.eup %8931  ;;  %v2281_v51 = vsel %vm953_vm1, %v10466_v9, 0.0 }
 0x41d   : > { %v2290_v7 = vsel %vm953_vm1, %v10469_v5, 0.0  ;;  %v2196_v63 = vsub.f32 %v10350_v48, %v2142_v33 }
 0x41e   : > { %v2258_v10 = vmul.f32 1.442695, %v2206_v39 }
 0x41f   : > { %v2145_v8 = vpop.xlane.xlu1 %2144  ;;  %2270 = vadd.xlane.f32.xlu1 %v2269_v57  ;;  %2282 = vadd.xlane.f32.xlu0 %v2281_v51  ;;  %v2238_v17 = vmul.f32 1.442695, %v2196_v63  ;;  %v2199_v57 = vsub.f32 %v10353_v58, %v10455_v43 }
 0x420   : > { %v2163_v26 = vpop.xlane.xlu0 %2162  ;;  %8941 = vpow2.f32 %v2258_v10  ;;  %v2197_v25 = vsub.f32 %v10370_v21, %v2145_v8 }
 0x421   : > { %v10477_v22 = vpop.eup %8933  ;;  %8943 = vpow2.f32 %v2242_v3  ;;  %v2203_v39 = vsub.f32 %v10363_v20, %v2163_v26 }
 0x422   : > { %v10481_v35 = vpop.eup %8935  ;;  %v2240_v59 = vmul.f32 1.442695, %v2197_v25  ;;  %v2302_v28 = vsel %vm953_vm1, %v10477_v22, 0.0 }
 0x423   : > { %v2166_v61 = vpop.xlane.xlu1 %2165  ;;  %2291 = vadd.xlane.f32.xlu1 %v2290_v7  ;;  %2303 = vadd.xlane.f32.xlu0 %v2302_v28  ;;  %v2305_v31 = vsel %vm972_vm2, %v10481_v35, 0.0  ;;  %v10490_v48 = vpop.eup %8937  ;;  %v2252_v51 = vmul.f32 1.442695, %v2203_v39 }
 0x424   : > { %v2160_v38 = vpop.xlane.xlu0 %2159  ;;  %8945 = vpow2.f32 %v2240_v59  ;;  %v2278_v20 = vsel %vm953_vm1, %v10490_v48, 0.0  ;;  %v2204_v58 = vsub.f32 %v10378_v34, %v2166_v61 }
 0x425   : > { %v2202_v21 = vsub.f32 %v10375_v41, %v2160_v38  ;;  %8947 = vpow2.f32 %v2256_v13  ;;  %v10495_v41 = vpop.eup %8939 }
 0x426   : > { %v2299_v28 = vsel %vm953_vm1, %v10495_v41, 0.0  ;;  %v2254_v34 = vmul.f32 1.442695, %v2204_v58 }
 0x427   : > { %v2250_v3 = vmul.f32 1.442695, %v2202_v21  ;;  %v2181_v33 = vpop.xlane.xlu1 %2180  ;;  %2306 = vadd.xlane.f32.xlu1 %v2305_v31 }
 0x428   : > { %v2154_v24 = vpop.xlane.xlu0 %2153  ;;  %v2209_v10 = vsub.f32 %v10383_v23, %v2181_v33  ;;  %v2244_v23 = vmul.f32 1.442695, %v2199_v57 }
 0x429   : > { %8949 = vpow2.f32 %v2250_v3  ;;  %v2200_v61 = vsub.f32 %v10386_v12, %v2154_v24 }
 0x42a   : > { %8951 = vpow2.f32 %v2238_v17  ;;  %v2264_v8 = vmul.f32 1.442695, %v2209_v10 }
 0x42b   : > { %v2175_v26 = vpop.xlane.xlu1 %2174  ;;  %2279 = vadd.xlane.f32.xlu1 %v2278_v20  ;;  %v2246_v10 = vmul.f32 1.442695, %v2200_v61 }
 0x42c   : > { %8953 = vpow2.f32 %v2264_v8  ;;  %v2207_v25 = vsub.f32 %v10393_v14, %v2175_v26  ;;  %v2178_v7 = vpop.xlane.xlu0 %2177 }
 0x42d   : > { %v10500_v13 = vpop.eup %8941  ;;  %8955 = vpow2.f32 %v2252_v51  ;;  %v2208_v38 = vsub.f32 %v10400_v27, %v2178_v7 }
 0x42e   : > { %v10503_v43 = vpop.eup %8943  ;;  %v2260_v63 = vmul.f32 1.442695, %v2207_v25  ;;  %v2338_v59 = vsel %vm953_vm1, %v10500_v13, 0.0 }
 0x42f   : > { %v2157_v21 = vpop.xlane.xlu1 %2156  ;;  %2339 = vadd.xlane.f32.xlu0 %v2338_v59  ;;  %2300 = vadd.xlane.f32.xlu1 %v2299_v28  ;;  %v2314_v3 = vsel %vm953_vm1, %v10503_v43, 0.0  ;;  %v2262_v33 = vmul.f32 1.442695, %v2208_v38 }
 0x430   : > { %8957 = vpow2.f32 %v2260_v63  ;;  %v2201_v14 = vsub.f32 %v10407_v40, %v2157_v21 }
 0x431   : > { %v10511_v31 = vpop.eup %8945  ;;  %8959 = vpow2.f32 %v2244_v23 }
 0x432   : > { %v2248_v17 = vmul.f32 1.442695, %v2201_v14  ;;  %v2311_v39 = vsel %vm953_vm1, %v10511_v31, 0.0  ;;  %v10518_v27 = vpop.eup %8947 }
 0x433   : > { %2312 = vadd.xlane.f32.xlu0 %v2311_v39  ;;  %2315 = vadd.xlane.f32.xlu1 %v2314_v3  ;;  %v2335_v12 = vsel %vm953_vm1, %v10518_v27, 0.0  ;;  %v9249_v39 = vld [vmem:[%s9827_s29 + $0x54] sm:$0xff]  }
 0x434   : > { %8961 = vpow2.f32 %v2248_v17  ;;  %v9250_v3 = vld [vmem:[%s9827_s29 + $0x38] sm:$0xff]  }
 0x435   : > { %8963 = vpow2.f32 %v2254_v34 }
 0x436   : > { %v10520_v40 = vpop.eup %8949  ;;  %8965 = vpow2.f32 %v2262_v33  ;;  %v9251_v33 = vld [vmem:[%s9381_s27 + $0x18] ss:$0 sps:$4 sm:$0x11]  }
 0x437   : > { %v10524_v24 = vpop.eup %8951  ;;  %2336 = vadd.xlane.f32.xlu1 %v2335_v12  ;;  %v2326_v57 = vsel %vm972_vm2, %v10520_v40, 0.0  ;;  %8967 = vpow2.f32 %v2246_v10  ;;  %v9252_v10 = vld [vmem:[%s9381_s27 + $0x34] ss:$0 sps:$4 sm:$0x11]  }
 0x438   : > { %2327 = vadd.xlane.f32.xlu0 %v2326_v57  ;;  %v2308_v8 = vsel %vm953_vm1, %v10524_v24, 0.0  ;;  %v9253_v12 = vld [vmem:[%s9381_s27 + $0x10] sm:$0xff]  }
 0x439   : > { %v10528_v51 = vpop.eup %8953  ;;  %v9254_v57 = vld [vmem:[%s9381_s27 + $0x2c] sm:$0xff]  }
 0x43a   : > { %v2347_v20 = vsel %vm972_vm2, %v10528_v51, 0.0  ;;  %v10534_v26 = vpop.eup %8955 }
 0x43b   : > { %2309 = vadd.xlane.f32.xlu1 %v2308_v8  ;;  %v2329_v23 = vsel %vm953_vm1, %v10534_v26, 0.0  ;;  %v9255_v8 = vld [vmem:[%s9381_s27 + $0x8] sm:$0xff]  }
 0x43c   : > { %2348 = vadd.xlane.f32.xlu0 %v2347_v20  ;;  %v9256_v20 = vld [vmem:[%s9381_s27 + $0x24] sm:$0xff]  }
 0x43d   : > { %v10536_v25 = vpop.eup %8957 }
 0x43e   : > { %v10538_v7 = vpop.eup %8959  ;;  %v2341_v58 = vsel %vm953_vm1, %v10536_v25, 0.0 }
 0x43f   : > { %2330 = vadd.xlane.f32.xlu1 %v2329_v23  ;;  %v2317_v59 = vsel %vm953_vm1, %v10538_v7, 0.0  ;;  %v9257_v23 = vld [vmem:[%s9381_s27] sm:$0xff]  }
 0x440   : > { %2342 = vadd.xlane.f32.xlu0 %v2341_v58  ;;  %v9258_v58 = vld [vmem:[%s9381_s27 + $0x1c] sm:$0xff]  }
 0x441   : > { %v10544_v63 = vpop.eup %8961 }
 0x442   : > { %v2323_v28 = vsel %vm953_vm1, %v10544_v63, 0.0  ;;  %v10550_v38 = vpop.eup %8963 }
 0x443   : > { %2318 = vadd.xlane.f32.xlu1 %v2317_v59  ;;  %v10552_v21 = vpop.eup %8965  ;;  %v2332_v14 = vsel %vm953_vm1, %v10550_v38, 0.0  ;;  %v9259_v59 = vld [vmem:[%s9381_s27 + $0x50] ss:$0 sps:$4 sm:$0x11]  }
 0x444   : > { %2324 = vadd.xlane.f32.xlu0 %v2323_v28  ;;  %v10556_v34 = vpop.eup %8967  ;;  %v2344_v61 = vsel %vm953_vm1, %v10552_v21, 0.0  ;;  %v9260_v28 = vld [vmem:[%s9381_s27 + $0x6c] ss:$0 sps:$4 sm:$0x11]  }
 0x445   : > { %v2320_v17 = vsel %vm953_vm1, %v10556_v34, 0.0 }
 0x447   : > { %2333 = vadd.xlane.f32.xlu1 %v2332_v14  ;;  %v9261_v14 = vld [vmem:[%s9381_s27 + $0x48] sm:$0xff]  }
 0x448   : > { %2345 = vadd.xlane.f32.xlu0 %v2344_v61  ;;  %v9262_v61 = vld [vmem:[%s9381_s27 + $0x64] sm:$0xff]  }
 0x44b   : > { %2321 = vadd.xlane.f32.xlu1 %v2320_v17  ;;  %v9263_v17 = vld [vmem:[%s9381_s27 + $0x40] sm:$0xff]  }
 0x45c   : > { %2692 = vrot.lane.b32.xlu1 %v9249_v39, %s9323_s28  ;;  %v9264_v39 = vld [vmem:[%s9381_s27 + $0x5c] sm:$0xff]  }
 0x45e   : > { %2602 = vrot.lane.b32.xlu0 %v9250_v3, %s9323_s28  ;;  %v10602_v3 = vpop.permute.xlu0 %2604 }
 0x460   : > { %3868 = vrot.lane.b32.xlu1 %v9252_v10, %s9325_s19 }
 0x462   : > { %3764 = vrot.lane.b32.xlu0 %v9251_v33, %s9325_s19 }
 0x464   : > { %3866 = vrot.lane.b32.xlu1 %v9254_v57, %s9325_s19  ;;  %v9266_v57 = vld [vmem:[%s9381_s27 + $0x54] sm:$0xff]  }
 0x466   : > { %3762 = vrot.lane.b32.xlu0 %v9253_v12, %s9325_s19  ;;  %v9265_v12 = vld [vmem:[%s9381_s27 + $0x38] sm:$0xff]  }
 0x468   : > { %3864 = vrot.lane.b32.xlu1 %v9256_v20, %s9325_s19 }
 0x46a   : > { %3760 = vrot.lane.b32.xlu0 %v9255_v8, %s9325_s19  ;;  %v10616_v8 = vpop.permute.xlu1 %2694 }
 0x46c   : > { %3862 = vrot.lane.b32.xlu1 %v9258_v58, %s9325_s19 }
 0x46e   : > { %3758 = vrot.lane.b32.xlu0 %v9257_v23, %s9325_s19 }
 0x470   : > { %3972 = vrot.lane.b32.xlu1 %v9259_v59, %s9325_s19 }
 0x472   : > { %3750 = vrot.lane.b32.xlu0 %v9411_v16, %s9325_s19 }
 0x474   : > { %3854 = vrot.lane.b32.xlu1 %v9417_v19, %s9325_s19 }
 0x476   : > { %3752 = vrot.lane.b32.xlu0 %v9457_v42, %s9325_s19 }
 0x478   : > { %3856 = vrot.lane.b32.xlu1 %v9459_v45, %s9325_s19 }
 0x47a   : > { %4076 = vrot.lane.b32.xlu0 %v9260_v28, %s9325_s19 }
 0x47c   : > { %4074 = vrot.lane.b32.xlu1 %v9262_v61, %s9325_s19 }
 0x47e   : > { %3970 = vrot.lane.b32.xlu0 %v9261_v14, %s9325_s19 }
 0x480   : > { %4072 = vrot.lane.b32.xlu1 %v9264_v39, %s9325_s19  ;;  %v9268_v39 = vld [vmem:[%s9827_s29 + $0x18] ss:$0 sps:$4 sm:$0x11]  }
 0x482   : > { %3968 = vrot.lane.b32.xlu0 %v9263_v17, %s9325_s19  ;;  %v9267_v17 = vld [vmem:[%s9827_s29 + $0x34] ss:$0 sps:$4 sm:$0x11]  }
 0x484   : > { %3756 = vrot.lane.b32.xlu1 %v9493_v62, %s9325_s19 }
 0x486   : > { %3754 = vrot.lane.b32.xlu0 %v9473_v52, %s9325_s19 }
 0x488   : > { %3860 = vrot.lane.b32.xlu1 %v9495_v1, %s9325_s19 }
 0x48a   : > { %3858 = vrot.lane.b32.xlu0 %v9477_v53, %s9325_s19 }
 0x48c   : > { %4070 = vrot.lane.b32.xlu1 %v9266_v57, %s9325_s19  ;;  %v9269_v57 = vld [vmem:[%s9827_s29 + $0x2c] sm:$0xff]  }
 0x48e   : > { %3966 = vrot.lane.b32.xlu0 %v9265_v12, %s9325_s19 }
 0x490   : > { %v2274_v33 = vpop.xlane.xlu0 %2273  ;;  %3960 = vrot.lane.b32.xlu1 %v9549_v36, %s9325_s19 }
 0x492   : > { %3958 = vrot.lane.b32.xlu0 %v9507_v6, %s9325_s19 }
 0x494   : > { %v2295_v10 = vpop.xlane.xlu0 %2294  ;;  %4064 = vrot.lane.b32.xlu1 %v9551_v37, %s9325_s19 }
 0x496   : > { %4062 = vrot.lane.b32.xlu0 %v12557_v4, %s9325_s19 }
 0x498   : > { %v2268_v20 = vpop.xlane.xlu0 %2267  ;;  %3964 = vrot.lane.b32.xlu1 %v12558_v29, %s9325_s19  ;;  %v9273_v29 = vld [vmem:[%s9827_s29 + $0x24] sm:$0xff]  }
 0x49a   : > { %3962 = vrot.lane.b32.xlu0 %v12559_v54, %s9325_s19 }
 0x49c   : > { %v2289_v58 = vpop.xlane.xlu0 %2288  ;;  %4068 = vrot.lane.b32.xlu1 %v12560_v47, %s9325_s19 }
 0x49e   : > { %4066 = vrot.lane.b32.xlu0 %v12561_v15, %s9325_s19 }
 0x4a0   : > { %v2277_v23 = vpop.xlane.xlu1 %2276  ;;  %4586 = vrot.lane.b32.xlu1 %v9267_v17, %s9325_s19  ;;  %v9272_v17 = vld [vmem:[%s9827_s29] sm:$0xff]  }
 0x4a1   : > { %8969 = vrcp.f32 %v2277_v23 }
 0x4a2   : > { %8971 = vrcp.f32 %v2268_v20  ;;  %4496 = vrot.lane.b32.xlu0 %v9268_v39, %s9325_s19  ;;  %v9270_v20 = vld [vmem:[%s9827_s29 + $0x10] sm:$0xff]  }
 0x4a3   : > { %8973 = vrcp.f32 %v2274_v33 }
 0x4a4   : > { %v2298_v59 = vpop.xlane.xlu1 %2297  ;;  %v2286_v28 = vpop.xlane.xlu0 %2285  ;;  %4584 = vrot.lane.b32.xlu1 %v9269_v57, %s9325_s19 }
 0x4a6   : > { %4494 = vrot.lane.b32.xlu0 %v9270_v20, %s9325_s19 }
 0x4a8   : > { %v2271_v14 = vpop.xlane.xlu1 %2270  ;;  %v2283_v33 = vpop.xlane.xlu0 %2282 }
 0x4a9   : > { %8975 = vrcp.f32 %v2271_v14 }
 0x4aa   : > { %8977 = vrcp.f32 %v2298_v59  ;;  %4490 = vrot.lane.b32.xlu0 %v9272_v17, %s9325_s19  ;;  %v9274_v17 = vld [vmem:[%s9827_s29 + $0x1c] sm:$0xff]  }
 0x4ab   : > { %8979 = vrcp.f32 %v2289_v58 }
 0x4ac   : > { %8981 = vrcp.f32 %v2295_v10  ;;  %v2292_v61 = vpop.xlane.xlu1 %2291  ;;  %v2304_v58 = vpop.xlane.xlu0 %2303 }
 0x4ad   : > { %8983 = vrcp.f32 %v2292_v61  ;;  %v9271_v61 = vld [vmem:[%s9827_s29 + $0x8] sm:$0xff]  }
 0x4ae   : > { %8985 = vrcp.f32 %v2286_v28  ;;  %v8970_v10 = vpop.eup %8969  ;;  %4492 = vrot.lane.b32.xlu1 %v9271_v61, %s9325_s19  ;;  %4580 = vrot.lane.b32.xlu0 %v9274_v17, %s9325_s19 }
 0x4af   : > { %8987 = vrcp.f32 %v2283_v33  ;;  %v8972_v23 = vpop.eup %8971  ;;  %v2381_v57 = vmul.f32 %v8970_v10, %v10448_v32 }
 0x4b0   : > { %v2307_v12 = vpop.xlane.xlu1 %2306  ;;  %v8974_v14 = vpop.eup %8973  ;;  %v2378_v28 = vmul.f32 %v8972_v23, %v10437_v49 }
 0x4b2   : > { %4582 = vrot.lane.b32.xlu1 %v9273_v29, %s9325_s19 }
 0x4b4   : > { %v2280_v59 = vpop.xlane.xlu1 %2279 }
 0x4b5   : > { %8989 = vrcp.f32 %v2280_v59  ;;  %v2380_v59 = vmul.f32 %v8974_v14, %v10425_v0  ;;  %v9275_v14 = vld [vmem:[%s9827_s29 + $0x50] ss:$0 sps:$4 sm:$0x11]  }
 0x4b6   : > { %v8976_v39 = vpop.eup %8975  ;;  %8991 = vrcp.f32 %v2307_v12  ;;  %4676 = vrot.lane.b32.xlu1 %v9275_v14, %s9325_s19 }
 0x4b7   : > { %v8978_v20 = vpop.eup %8977  ;;  %v2379_v33 = vmul.f32 %v8976_v39, %v10460_v18  ;;  %8993 = vrcp.f32 %v2304_v58  ;;  %v2407_v18 = vpack.c.bf16 %v2381_v57, %v2380_v59  ;;  %v9276_v57 = vld [vmem:[%s9827_s29 + $0x6c] ss:$0 sps:$4 sm:$0x11]  }
 0x4b8   : > { %v8980_v15 = vpop.eup %8979  ;;  %v2340_v54 = vpop.xlane.xlu0 %2339  ;;  %v2388_v49 = vmul.f32 %v8978_v20, %v10453_v46  ;;  %v9277_v59 = vld [vmem:[%s9827_s29 + $0x48] sm:$0xff]  }
 0x4b9   : > { %v2301_v61 = vpop.xlane.xlu1 %2300  ;;  %v8982_v47 = vpop.eup %8981  ;;  %v2406_v4 = vpack.c.bf16 %v2379_v33, %v2378_v28  ;;  %v2385_v0 = vmul.f32 %v8980_v15, %v10443_v56 }
 0x4ba   : > { %v8984_v32 = vpop.eup %8983  ;;  %8995 = vrcp.f32 %v2301_v61  ;;  %v2387_v10 = vmul.f32 %v8982_v47, %v10431_v11  ;;  %4766 = vrot.lane.b32.xlu1 %v9276_v57, %s9325_s19 }
 0x4bb   : > { %8009 = vmatprep.mubr.msk.bf16.mxu0 %vm953_vm1, %v2406_v4  ;;  %v2386_v12 = vmul.f32 %v8984_v32, %v10469_v5  ;;  %v8986_v4 = vpop.eup %8985 }
 0x4bc   : > { %v2313_v23 = vpop.xlane.xlu0 %2312  ;;  %8010 = vmatmul.mubr.msk.bf16.vlgmr.msra.gmra.mxu0 %vm953_vm1, %v2407_v18  ;;  %v2411_v46 = vpack.c.bf16 %v2388_v49, %v2387_v10  ;;  %v8988_v15 = vpop.eup %8987  ;;  %v2384_v11 = vmul.f32 %v8986_v4, %v10457_v2  ;;  %v12531_v4 = vmov 0.0  }
 0x4bd   : > { %v2316_v58 = vpop.xlane.xlu1 %2315  ;;  %8034 = vmatpush3.bf16.msra.mxu0 %v10197_v50  ;;  %v2410_v29 = vpack.c.bf16 %v2386_v12, %v2385_v0  ;;  %8997 = vrcp.f32 %v2313_v23  ;;  %v2383_v39 = vmul.f32 %v8988_v15, %v10466_v9 }
 0x4be   : > { %8035 = vmatprep.subr.bf16.mxu0 %v10415_v44  ;;  %v2409_v2 = vpack.c.bf16 %v2384_v11, %v2384_v11  ;;  %4674 = vrot.lane.b32.xlu1 %v9277_v59, %s9325_s19 }
 0x4bf   : > { %8025 = vmatprep.mubr.msk.bf16.mxu1 %vm953_vm1, %v2410_v29 }
 0x4c0   : > { %8026 = vmatmul.mubr.msk.bf16.vlgmr.msra.gmra.mxu1 %vm953_vm1, %v2411_v46 }
 0x4c1   : > { %v2337_v56 = vpop.xlane.xlu1 %2336  ;;  %8036 = vmatpush3.bf16.msra.mxu0 %v10415_v44  ;;  %8050 = vmatpush3.bf16.msra.mxu1 %v10201_v30  ;;  %v2328_v47 = vpop.xlane.xlu0 %2327 }
 0x4c2   : > { %v8990_v50 = vpop.eup %8989  ;;  %8037 = vmatprep.subr.bf16.mxu0 %v10602_v3  ;;  %8051 = vmatprep.subr.bf16.mxu1 %v10417_v55 }
 0x4c3   : > { %v2382_v5 = vmul.f32 %v8990_v50, %v10490_v48  ;;  %v8992_v44 = vpop.eup %8991 }
 0x4c4   : > { %v8994_v30 = vpop.eup %8993  ;;  %v2391_v9 = vmul.f32 %v8992_v44, %v10481_v35 }
 0x4c5   : > { %v2310_v20 = vpop.xlane.xlu1 %2309  ;;  %8038 = vmatpush3.bf16.msra.mxu0 %v10602_v3  ;;  %8052 = vmatpush3.bf16.msra.mxu1 %v10417_v55  ;;  %v2349_v28 = vpop.xlane.xlu0 %2348  ;;  %v2408_v33 = vpack.c.bf16 %v2383_v39, %v2382_v5  ;;  %v2390_v55 = vmul.f32 %v8994_v30, %v10477_v22  ;;  %v453_v39 = vld [vmem:[%s12493_s4 + $0x8] sm:$0xff] }
 0x4c6   : > { %8999 = vrcp.f32 %v2310_v20  ;;  %8053 = vmatprep.subr.bf16.mxu1 %v10616_v8  ;;  %v2413_v49 = vpack.c.bf16 %v2391_v9, %v2391_v9 }
 0x4c7   : > { %v8996_v48 = vpop.eup %8995  ;;  %8013 = vmatprep.mubr.msk.bf16.mxu0 %vm953_vm1, %v2408_v33  ;;  %9001 = vrcp.f32 %v2340_v54 }
 0x4c8   : > { %8014 = vmatmul.mubr.msk.bf16.gmra.mxu0 %vm953_vm1, %v2409_v2  ;;  %v2389_v3 = vmul.f32 %v8996_v48, %v10495_v41  ;;  %9003 = vrcp.f32 %v2316_v58 }
 0x4c9   : > { %v2331_v61 = vpop.xlane.xlu1 %2330  ;;  %8054 = vmatpush3.bf16.msra.mxu1 %v10616_v8  ;;  %v2343_v17 = vpop.xlane.xlu0 %2342  ;;  %9005 = vrcp.f32 %v2337_v56 }
 0x4ca   : > { %v2412_v32 = vpack.c.bf16 %v2390_v55, %v2389_v3  ;;  %v8998_v41 = vpop.eup %8997 }
 0x4cb   : > { %v2393_v12 = vmul.f32 %v8998_v41, %v10511_v31 }
 0x4cc   : > { %8029 = vmatprep.mubr.msk.bf16.mxu1 %vm953_vm1, %v2412_v32 }
 0x4cd   : > { %v2319_v35 = vpop.xlane.xlu1 %2318  ;;  %8030 = vmatmul.mubr.msk.bf16.gmra.mxu1 %vm953_vm1, %v2413_v49  ;;  %v2325_v18 = vpop.xlane.xlu0 %2324 }
 0x4ce   : > { %9007 = vrcp.f32 %v2319_v35 }
 0x4cf   : > { %9009 = vrcp.f32 %v2328_v47 }
 0x4d0   : > { %9011 = vrcp.f32 %v2331_v61 }
 0x4d1   : > { %9013 = vrcp.f32 %v2343_v17  ;;  %v2334_v22 = vpop.xlane.xlu1 %2333  ;;  %v2346_v8 = vpop.xlane.xlu0 %2345 }
 0x4d2   : > { %9015 = vrcp.f32 %v2334_v22 }
 0x4d3   : > { %v9000_v0 = vpop.eup %8999  ;;  %9017 = vrcp.f32 %v2346_v8 }
 0x4d4   : > { %9019 = vrcp.f32 %v2325_v18  ;;  %v2392_v54 = vmul.f32 %v9000_v0, %v10524_v24  ;;  %v9002_v29 = vpop.eup %9001 }
 0x4d5   : > { %v2322_v10 = vpop.xlane.xlu1 %2321  ;;  %v2603_v58 = vpop.permute.xlu0 %2602 }
 0x4d6   : > { %9021 = vrcp.f32 %v2322_v10  ;;  %v2414_v23 = vpack.c.bf16 %v2393_v12, %v2392_v54  ;;  %8039 = vmatprep.subr.bf16.mxu0 %v2603_v58  ;;  %v9004_v14 = vpop.eup %9003 }
 0x4d7   : > { %9023 = vrcp.f32 %v2349_v28  ;;  %8040 = vmatpush3.bf16.msra.mxu0 %v2603_v58  ;;  %v9006_v15 = vpop.eup %9005  ;;  %v2394_v56 = vmul.f32 %v9004_v14, %v10503_v43  ;;  %v2402_v28 = vmul.f32 %v9002_v29, %v10500_v13  ;;  %v452_v58 = vld [vmem:[%s12493_s4] sm:$0xff] }
 0x4d8   : > { %8041 = vmatprep.mubr.msk.bf16.mxu0 %vm953_vm1, %v2414_v23  ;;  %8065 = vmatprep.subr.mxu0 %v12531_v4  ;;  %v2401_v44 = vmul.f32 %v9006_v15, %v10518_v27 }
 0x4d9   : > { %v2693_v46 = vpop.permute.xlu1 %2692 }
 0x4da   : > { %8055 = vmatprep.subr.bf16.mxu1 %v2693_v46  ;;  %v2419_v27 = vpack.c.bf16 %v2402_v28, %v2401_v44  ;;  %v12608_v28 = vld [vmem:[#allocation18_spill] sm:$0xff] }
 0x4db   : > { %v9008_v24 = vpop.eup %9007  ;;  %8056 = vmatpush3.bf16.msra.mxu1 %v2693_v46 }
 0x4dc   : > { %v9010_v31 = vpop.eup %9009  ;;  %v2395_v47 = vmul.f32 %v9008_v24, %v10538_v7  ;;  %8088 = vmatprep.subr.mxu1 %v12531_v4 }
 0x4dd   : > { %v9012_v50 = vpop.eup %9011  ;;  %v2398_v59 = vmul.f32 %v9010_v31, %v10520_v40 }
 0x4de   : > { %v9014_v11 = vpop.eup %9013  ;;  %v2415_v5 = vpack.c.bf16 %v2395_v47, %v2394_v56  ;;  %v2399_v30 = vmul.f32 %v9012_v50, %v10534_v26 }
 0x4df   : > { %v9016_v57 = vpop.eup %9015  ;;  %v2403_v48 = vmul.f32 %v9014_v11, %v10536_v25  ;;  %v2417_v25 = vpack.c.bf16 %v2398_v59, %v2398_v59 }
 0x4e0   : > { %v9018_v20 = vpop.eup %9017  ;;  %8042 = vmatmul.mubr.msk.bf16.vlgmr.msra.gmra.mxu0 %vm953_vm1, %v2415_v5  ;;  %v2400_v43 = vmul.f32 %v9016_v57, %v10550_v38 }
 0x4e1   : > { %v9020_v7 = vpop.eup %9019  ;;  %v2404_v33 = vmul.f32 %v9018_v20, %v10552_v21  ;;  %8066 = vmatpush3.msra.mxu0 %v453_v39 }
 0x4e2   : > { %v2418_v2 = vpack.c.bf16 %v2400_v43, %v2399_v30  ;;  %8111 = vmatprep.subr.mxu0 %v12531_v4  ;;  %v2397_v13 = vmul.f32 %v9020_v7, %v10544_v63  ;;  %v3765_v30 = vpop.permute.xlu0 %3764  ;;  %v12607_v43 = vld [vmem:[#allocation21_spill] sm:$0xff]  ;;  %v3869_v7 = vpop.permute.xlu1 %3868 }
 0x4e3   : > { %v9022_v9 = vpop.eup %9021  ;;  %v2420_v26 = vpack.c.bf16 %v2404_v33, %v2403_v48  ;;  %v12609_v33 = vld [vmem:[#allocation10_spill] sm:$0xff] }
 0x4e4   : > { %v9024_v61 = vpop.eup %9023  ;;  %8057 = vmatprep.mubr.msk.bf16.mxu1 %vm953_vm1, %v2418_v2  ;;  %v2396_v38 = vmul.f32 %v9022_v9, %v10556_v34  ;;  %v12610_v2 = vld [vmem:[#allocation15_spill] sm:$0xff]  ;;  %v12611_v9 = vld [vmem:[#allocation22_spill] sm:$0xff] }
 0x4e5   : > { %8058 = vmatmul.mubr.msk.bf16.vlgmr.msra.gmra.mxu1 %vm953_vm1, %v2419_v27  ;;  %v2405_v3 = vmul.f32 %v9024_v61, %v10528_v51  ;;  %v12612_v27 = vld [vmem:[#allocation7_spill] sm:$0xff] }
 0x4e6   : > { %8061 = vmatprep.mubr.msk.bf16.mxu1 %vm953_vm1, %v2420_v26  ;;  %v2416_v21 = vpack.c.bf16 %v2397_v13, %v2396_v38  ;;  %8089 = vmatpush3.msra.mxu1 %v453_v39  ;;  %v12613_v61 = vld [vmem:[#allocation23_spill] sm:$0xff]  ;;  %v12614_v26 = vld [vmem:[#allocation20_spill] sm:$0xff]  ;;  %v3867_v38 = vpop.permute.xlu1 %3866 }
 0x4e7   : > { %8134 = vmatprep.subr.mxu1 %v12531_v4  ;;  %v2421_v40 = vpack.c.bf16 %v2405_v3, %v2405_v3 }
 0x4e8   : > { %8045 = vmatprep.mubr.msk.bf16.mxu0 %vm953_vm1, %v2416_v21  ;;  %v12615_v21 = vld [vmem:[#allocation8_spill] sm:$0xff] }
 0x4e9   : > { %8046 = vmatmul.mubr.msk.bf16.gmra.mxu0 %vm953_vm1, %v2417_v25  ;;  %v12616_v25 = vld [vmem:[#allocation14_spill] sm:$0xff] }
 0x4ea   : > { %8067 = vmatprep.mubr.msk.f32.mxu0 %vm9327_vm4, %v12531_v4  ;;  %v3865_v3 = vpop.permute.xlu1 %3864 }
 0x4ed   : > { %8062 = vmatmul.mubr.msk.bf16.gmra.mxu1 %vm953_vm1, %v2421_v40  ;;  %v12617_v40 = vld [vmem:[#allocation17_spill] sm:$0xff] }
 0x4ee   : > { %8090 = vmatprep.mubr.msk.f32.mxu1 %vm9327_vm4, %v12531_v4 }
 0x57c   : > { %v8011_v63 = vpop.f32.mrf.mxu0 }
 0x57e   : > { %v2482_v34 = vpop.f32.mrf.mxu0 }
 0x57f   : > { %8068 = vmatmul.mubr.msk.f32.vlgmr.msra.gmra.mxu0 %vm492_vm0, %v2482_v34 }
 0x580   : > { %v8012_v51 = vpop.f32.mrf.mxu0  ;;  %v8027_v55 = vpop.f32.mrf.mxu1  ;;  %8070 = vmatprep.mubr.msk.f32.mxu0 %vm9327_vm4, %v12531_v4  ;;  %8112 = vmatpush3.msra.mxu0 %v453_v39 }
 0x581   : > { %8157 = vmatprep.subr.mxu0 %v12531_v4 }
 0x582   : > { %v2485_v17 = vpop.f32.mrf.mxu0  ;;  %v2572_v32 = vpop.f32.mrf.mxu1 }
 0x583   : > { %8071 = vmatmul.mubr.msk.f32.gmra.mxu0 %vm492_vm0, %v2485_v17  ;;  %8091 = vmatmul.mubr.msk.f32.vlgmr.msra.gmra.mxu1 %vm492_vm0, %v2572_v32  ;;  %v3863_v17 = vpop.permute.xlu1 %3862  ;;  %v12620_v32 = vld [vmem:[#allocation19_spill] sm:$0xff] }
 0x584   : > { %v8028_v49 = vpop.f32.mrf.mxu1  ;;  %8073 = vmatprep.mubr.msk.f32.mxu0 %vm9327_vm4, %v12531_v4  ;;  %8093 = vmatprep.mubr.msk.f32.mxu1 %vm9327_vm4, %v12531_v4 }
 0x585   : > { %8135 = vmatpush3.msra.mxu1 %v453_v39 }
 0x586   : > { %v2575_v35 = vpop.f32.mrf.mxu1  ;;  %8180 = vmatprep.subr.mxu1 %v12531_v4 }
 0x587   : > { %8074 = vmatmul.mubr.msk.f32.gmra.mxu0 %vm492_vm0, %v8011_v63  ;;  %8094 = vmatmul.mubr.msk.f32.gmra.mxu1 %vm492_vm0, %v2575_v35  ;;  %v12618_v63 = vld [vmem:[#allocation24_spill] sm:$0xff] }
 0x588   : > { %v8015_v18 = vpop.f32.mrf.mxu0  ;;  %8076 = vmatprep.mubr.msk.f32.mxu0 %vm9327_vm4, %v12531_v4  ;;  %8096 = vmatprep.mubr.msk.f32.mxu1 %vm9327_vm4, %v12531_v4 }
 0x58a   : > { %v2498_v41 = vpop.f32.mrf.mxu0 }
 0x58b   : > { %8077 = vmatmul.mubr.msk.f32.gmra.mxu0 %vm492_vm0, %v8012_v51  ;;  %8097 = vmatmul.mubr.msk.f32.gmra.mxu1 %vm492_vm0, %v8027_v55  ;;  %v3788_v51 = vsel %vm492_vm0, %v3765_v30, 0  ;;  %v12619_v55 = vld [vmem:[#allocation11_spill] sm:$0xff] }
 0x58c   : > { %v8016_v22 = vpop.f32.mrf.mxu0  ;;  %8079 = vmatprep.mubr.msk.f32.mxu0 %vm9327_vm4, %v12531_v4  ;;  %8099 = vmatprep.mubr.msk.f32.mxu1 %vm9327_vm4, %v12531_v4 }
 0x58d   : > { %v8031_v8 = vpop.f32.mrf.mxu1 }
 0x58e   : > { %v2501_v12 = vpop.f32.mrf.mxu0 }
 0x58f   : > { %v2588_v0 = vpop.f32.mrf.mxu1  ;;  %8080 = vmatmul.mubr.msk.f32.gmra.mxu0 %vm492_vm0, %v2498_v41  ;;  %8100 = vmatmul.mubr.msk.f32.gmra.mxu1 %vm492_vm0, %v8028_v49  ;;  %v3892_v49 = vsel %vm492_vm0, %v3869_v7, 0  ;;  %v12622_v41 = vld [vmem:[#allocation12_spill] sm:$0xff] }
 0x590   : > { %8082 = vmatprep.mubr.msk.f32.mxu0 %vm9327_vm4, %v12531_v4  ;;  %8102 = vmatprep.mubr.msk.f32.mxu1 %vm9327_vm4, %v12531_v4 }
 0x591   : > { %v8032_v54 = vpop.f32.mrf.mxu1 }
 0x592   : > { %v12624_v54 = vld [vmem:[#allocation27_spill] sm:$0xff] }
 0x593   : > { %8083 = vmatmul.mubr.msk.f32.gmra.mxu0 %vm492_vm0, %v2501_v12  ;;  %8103 = vmatmul.mubr.msk.f32.gmra.mxu1 %vm492_vm0, %v2588_v0  ;;  %v2591_v10 = vpop.f32.mrf.mxu1  ;;  %v12623_v0 = vld [vmem:[#allocation9_spill] sm:$0xff] }
 0x594   : > { %8085 = vmatprep.mubr.msk.f32.mxu0 %vm9327_vm4, %v12531_v4  ;;  %8105 = vmatprep.mubr.msk.f32.mxu1 %vm9327_vm4, %v12531_v4 }
 0x597   : > { %8086 = vmatmul.mubr.msk.f32.gmra.mxu0 %vm492_vm0, %v8015_v18  ;;  %8106 = vmatmul.mubr.msk.f32.gmra.mxu1 %vm492_vm0, %v2591_v10  ;;  %v12621_v18 = vld [vmem:[#allocation29_spill] sm:$0xff]  ;;  %v3889_v10 = vsel %vm492_vm0, %v3867_v38, 0 }
 0x598   : > { %8108 = vmatprep.mubr.msk.f32.mxu1 %vm9327_vm4, %v12531_v4  ;;  %8113 = vmatprep.mubr.msk.f32.mxu0 %vm9327_vm4, %v12531_v4 }
 0x59b   : > { %8109 = vmatmul.mubr.msk.f32.gmra.mxu1 %vm492_vm0, %v8031_v8  ;;  %v3973_v8 = vpop.permute.xlu1 %3972 }
 0x59c   : > { %8136 = vmatprep.mubr.msk.f32.mxu1 %vm9327_vm4, %v12531_v4 }
 0x5a0   : > { %v8043_v23 = vpop.f32.mrf.mxu0 }
 0x5a2   : > { %v2662_v29 = vpop.f32.mrf.mxu0 }
 0x5a3   : > { %8114 = vmatmul.mubr.msk.f32.vlgmr.msra.gmra.mxu0 %vm492_vm0, %v2662_v29  ;;  %v12626_v29 = vld [vmem:[#allocation16_spill] sm:$0xff] }
 0x5a4   : > { %v8044_v14 = vpop.f32.mrf.mxu0  ;;  %8158 = vmatpush3.msra.mxu0 %v452_v58  ;;  %8116 = vmatprep.mubr.msk.f32.mxu0 %vm9327_vm4, %v12531_v4 }
 0x5a5   : > { %v8059_v46 = vpop.f32.mrf.mxu1  ;;  %8203 = vmatprep.subr.mxu0 %v12531_v4 }
 0x5a6   : > { %v2665_v15 = vpop.f32.mrf.mxu0 }
 0x5a7   : > { %v2752_v24 = vpop.f32.mrf.mxu1  ;;  %8117 = vmatmul.mubr.msk.f32.gmra.mxu0 %vm492_vm0, %v2665_v15  ;;  %v12627_v15 = vld [vmem:[#allocation32_spill] sm:$0xff] }
 0x5a8   : > { %8137 = vmatmul.mubr.msk.f32.vlgmr.msra.gmra.mxu1 %vm492_vm0, %v2752_v24  ;;  %8119 = vmatprep.mubr.msk.f32.mxu0 %vm9327_vm4, %v12531_v4  ;;  %v12628_v24 = vld [vmem:[#allocation25_spill] sm:$0xff] }
 0x5a9   : > { %v8047_v31 = vpop.f32.mrf.mxu0  ;;  %v8060_v56 = vpop.f32.mrf.mxu1  ;;  %8181 = vmatpush3.msra.mxu1 %v452_v58  ;;  %8139 = vmatprep.mubr.msk.f32.mxu1 %vm9327_vm4, %v12531_v4 }
 0x5aa   : > { %8226 = vmatprep.subr.mxu1 %v12531_v4 }
 0x5ab   : > { %v2678_v47 = vpop.f32.mrf.mxu0  ;;  %v2755_v50 = vpop.f32.mrf.mxu1  ;;  %8120 = vmatmul.mubr.msk.f32.gmra.mxu0 %vm492_vm0, %v8043_v23  ;;  %v12625_v23 = vld [vmem:[#allocation26_spill] sm:$0xff] }
 0x5ac   : > { %8140 = vmatmul.mubr.msk.f32.gmra.mxu1 %vm492_vm0, %v2755_v50  ;;  %8122 = vmatprep.mubr.msk.f32.mxu0 %vm9327_vm4, %v12531_v4  ;;  %v12630_v50 = vld [vmem:[#allocation30_spill] sm:$0xff] }
 0x5ad   : > { %v8048_v11 = vpop.f32.mrf.mxu0  ;;  %v8063_v5 = vpop.f32.mrf.mxu1  ;;  %8142 = vmatprep.mubr.msk.f32.mxu1 %vm9327_vm4, %v12531_v4 }
 0x5af   : > { %v2768_v39 = vpop.f32.mrf.mxu1  ;;  %8123 = vmatmul.mubr.msk.f32.gmra.mxu0 %vm492_vm0, %v8044_v14  ;;  %v2681_v44 = vpop.f32.mrf.mxu0 }
 0x5b0   : > { %8143 = vmatmul.mubr.msk.f32.gmra.mxu1 %vm492_vm0, %v8059_v46  ;;  %8125 = vmatprep.mubr.msk.f32.mxu0 %vm9327_vm4, %v12531_v4 }
 0x5b1   : > { %v8064_v57 = vpop.f32.mrf.mxu1  ;;  %8145 = vmatprep.mubr.msk.f32.mxu1 %vm9327_vm4, %v12531_v4 }
 0x5b3   : > { %8126 = vmatmul.mubr.msk.f32.gmra.mxu0 %vm492_vm0, %v2678_v47  ;;  %v2771_v20 = vpop.f32.mrf.mxu1  ;;  %v12629_v47 = vld [vmem:[#allocation34_spill] sm:$0xff] }
 0x5b4   : > { %8146 = vmatmul.mubr.msk.f32.gmra.mxu1 %vm492_vm0, %v8060_v56  ;;  %8128 = vmatprep.mubr.msk.f32.mxu0 %vm9327_vm4, %v12531_v4  ;;  %v3886_v56 = vsel %vm492_vm0, %v3865_v3, 0 }
 0x5b5   : > { %8148 = vmatprep.mubr.msk.f32.mxu1 %vm9327_vm4, %v12531_v4 }
 0x5b7   : > { %8129 = vmatmul.mubr.msk.f32.gmra.mxu0 %vm492_vm0, %v2681_v44  ;;  %v12632_v44 = vld [vmem:[#allocation33_spill] sm:$0xff] }
 0x5b8   : > { %8149 = vmatmul.mubr.msk.f32.gmra.mxu1 %vm492_vm0, %v2768_v39  ;;  %8131 = vmatprep.mubr.msk.f32.mxu0 %vm9327_vm4, %v12531_v4  ;;  %v12631_v39 = vld [vmem:[#allocation31_spill] sm:$0xff] }
 0x5b9   : > { %8151 = vmatprep.mubr.msk.f32.mxu1 %vm9327_vm4, %v12531_v4 }
 0x5bb   : > { %8132 = vmatmul.mubr.msk.f32.gmra.mxu0 %vm492_vm0, %v8047_v31 }
 0x5bc   : > { %8152 = vmatmul.mubr.msk.f32.gmra.mxu1 %vm492_vm0, %v2771_v20  ;;  %8159 = vmatprep.mubr.msk.f32.mxu0 %vm9327_vm4, %v12531_v4 }
 0x5bd   : > { %8154 = vmatprep.mubr.msk.f32.mxu1 %vm9327_vm4, %v12531_v4 }
 0x5bf   : > { %8160 = vmatmul.mubr.msk.f32.vlgmr.msra.gmra.mxu0 %vm492_vm0, %v10174_v60  ;;  %v3763_v60 = vpop.permute.xlu0 %3762 }
 0x5c0   : > { %8155 = vmatmul.mubr.msk.f32.gmra.mxu1 %vm492_vm0, %v8063_v5  ;;  %8204 = vmatpush3.msra.mxu0 %v452_v58  ;;  %v3785_v22 = vsel %vm492_vm0, %v3763_v60, 0 }
 0x5c1   : > { %8162 = vmatprep.mubr.msk.f32.mxu0 %vm9327_vm4, %v12531_v4  ;;  %8182 = vmatprep.mubr.msk.f32.mxu1 %vm9327_vm4, %v12531_v4 }
 0x5c2   : > { %8721 = vmatprep.subr.msk.bf16.mxu0 %vm492_vm0, %v3765_v30  ;;  %v12633_v30 = vld [vmem:[#allocation28_spill] sm:$0xff] }
 0x5c3   : > { %8163 = vmatmul.mubr.msk.f32.gmra.mxu0 %vm492_vm0, %v12607_v43  ;;  %v3761_v48 = vpop.permute.xlu0 %3760  ;;  %v3883_v43 = vsel %vm492_vm0, %v3863_v17, 0 }
 0x5c4   : > { %8183 = vmatmul.mubr.msk.f32.vlgmr.msra.gmra.mxu1 %vm492_vm0, %v12608_v28  ;;  %8165 = vmatprep.mubr.msk.f32.mxu0 %vm9327_vm4, %v12531_v4  ;;  %v3782_v14 = vsel %vm492_vm0, %v3761_v48, 0  ;;  %v3996_v28 = vsel %vm492_vm0, %v3973_v8, 0 }
 0x5c5   : > { %8227 = vmatpush3.msra.mxu1 %v452_v58  ;;  %8185 = vmatprep.mubr.msk.f32.mxu1 %vm9327_vm4, %v12531_v4  ;;  %v3855_v58 = vpop.permute.xlu1 %3854 }
 0x5c6   : > { %8725 = vmatprep.subr.msk.bf16.mxu1 %vm492_vm0, %v3869_v7 }
 0x5c7   : > { %8166 = vmatmul.mubr.msk.f32.gmra.mxu0 %vm492_vm0, %v12609_v33  ;;  %v10840_v59 = vpop.permute.xlu0 %3758 }
 0x5c8   : > { %8186 = vmatmul.mubr.msk.f32.gmra.mxu1 %vm492_vm0, %v12610_v2  ;;  %8168 = vmatprep.mubr.msk.f32.mxu0 %vm9327_vm4, %v12531_v4  ;;  %v3779_v5 = vsel %vm492_vm0, %v10840_v59, 0 }
 0x5c9   : > { %8188 = vmatprep.mubr.msk.f32.mxu1 %vm9327_vm4, %v12531_v4  ;;  %v3857_v31 = vpop.permute.xlu1 %3856 }
 0x5cb   : > { %8169 = vmatmul.mubr.msk.f32.gmra.mxu0 %vm492_vm0, %v12611_v9  ;;  %v10852_v13 = vpop.permute.xlu0 %3750 }
 0x5cc   : > { %8189 = vmatmul.mubr.msk.f32.gmra.mxu1 %vm492_vm0, %v12612_v27  ;;  %8171 = vmatprep.mubr.msk.f32.mxu0 %vm9327_vm4, %v12531_v4 }
 0x5cd   : > { %8191 = vmatprep.mubr.msk.f32.mxu1 %vm9327_vm4, %v12531_v4  ;;  %v4075_v57 = vpop.permute.xlu1 %4074 }
 0x5cf   : > { %8172 = vmatmul.mubr.msk.f32.gmra.mxu0 %vm492_vm0, %v12613_v61  ;;  %v10868_v34 = vpop.permute.xlu0 %3752 }
 0x5d0   : > { %8192 = vmatmul.mubr.msk.f32.gmra.mxu1 %vm492_vm0, %v12614_v26  ;;  %8174 = vmatprep.mubr.msk.f32.mxu0 %vm9327_vm4, %v12531_v4 }
 0x5d1   : > { %8194 = vmatprep.mubr.msk.f32.mxu1 %vm9327_vm4, %v12531_v4  ;;  %v4073_v7 = vpop.permute.xlu1 %4072 }
 0x5d3   : > { %8175 = vmatmul.mubr.msk.f32.gmra.mxu0 %vm492_vm0, %v12615_v21  ;;  %v4077_v35 = vpop.permute.xlu0 %4076 }
 0x5d4   : > { %8195 = vmatmul.mubr.msk.f32.gmra.mxu1 %vm492_vm0, %v12616_v25  ;;  %8177 = vmatprep.mubr.msk.f32.mxu0 %vm9327_vm4, %v12531_v4  ;;  %v4100_v33 = vsel %vm492_vm0, %v4077_v35, 0 }
 0x5d5   : > { %8197 = vmatprep.mubr.msk.f32.mxu1 %vm9327_vm4, %v12531_v4  ;;  %v3757_v2 = vpop.permute.xlu1 %3756 }
 0x5d7   : > { %8178 = vmatmul.mubr.msk.f32.gmra.mxu0 %vm492_vm0, %v12617_v40  ;;  %v3971_v12 = vpop.permute.xlu0 %3970 }
 0x5d8   : > { %8198 = vmatmul.mubr.msk.f32.gmra.mxu1 %vm492_vm0, %v12618_v63  ;;  %8205 = vmatprep.mubr.msk.f32.mxu0 %vm9327_vm4, %v12531_v4  ;;  %v3993_v9 = vsel %vm492_vm0, %v3971_v12, 0 }
 0x5d9   : > { %8200 = vmatprep.mubr.msk.f32.mxu1 %vm9327_vm4, %v12531_v4  ;;  %v3861_v27 = vpop.permute.xlu1 %3860 }
 0x5db   : > { %8206 = vmatmul.mubr.msk.f32.vlgmr.msra.gmra.mxu0 %vm492_vm0, %v12619_v55  ;;  %v3969_v46 = vpop.permute.xlu0 %3968 }
 0x5dc   : > { %8250 = vmatpush3.bf16.xpose.msra.mxu0 %v3788_v51  ;;  %8201 = vmatmul.mubr.msk.f32.gmra.mxu1 %vm492_vm0, %v12620_v32  ;;  %v3990_v26 = vsel %vm492_vm0, %v3969_v46, 0 }
 0x5dd   : > { %8208 = vmatprep.mubr.msk.f32.mxu0 %vm9327_vm4, %v12531_v4  ;;  %8228 = vmatprep.mubr.msk.f32.mxu1 %vm9327_vm4, %v12531_v4 }
 0x5de   : > { %8722 = vmatprep.subr.msk.bf16.mxu0 %vm492_vm0, %v3763_v60 }
 0x5df   : > { %8209 = vmatmul.mubr.msk.f32.gmra.mxu0 %vm492_vm0, %v12621_v18  ;;  %v3755_v11 = vpop.permute.xlu0 %3754 }
 0x5e0   : > { %8229 = vmatmul.mubr.msk.f32.vlgmr.msra.gmra.mxu1 %vm492_vm0, %v12622_v41  ;;  %8211 = vmatprep.mubr.msk.f32.mxu0 %vm9327_vm4, %v12531_v4 }
 0x5e1   : > { %8266 = vmatpush3.bf16.xpose.msra.mxu1 %v3892_v49  ;;  %8231 = vmatprep.mubr.msk.f32.mxu1 %vm9327_vm4, %v12531_v4 }
 0x5e2   : > { %8726 = vmatprep.subr.msk.bf16.mxu1 %vm492_vm0, %v3867_v38  ;;  %v4094_v38 = vsel %vm492_vm0, %v4073_v7, 0 }
 0x5e3   : > { %8212 = vmatmul.mubr.msk.f32.gmra.mxu0 %vm492_vm0, %v12623_v0  ;;  %v3859_v20 = vpop.permute.xlu0 %3858 }
 0x5e4   : > { %8252 = vmatpush3.bf16.xpose.msra.mxu0 %v3785_v22  ;;  %8232 = vmatmul.mubr.msk.f32.gmra.mxu1 %vm492_vm0, %v12624_v54 }
 0x5e5   : > { %8214 = vmatprep.mubr.msk.f32.mxu0 %vm9327_vm4, %v12531_v4  ;;  %8234 = vmatprep.mubr.msk.f32.mxu1 %vm9327_vm4, %v12531_v4 }
 0x5e6   : > { %8723 = vmatprep.subr.msk.bf16.mxu0 %vm492_vm0, %v3761_v48 }
 0x5e7   : > { %8215 = vmatmul.mubr.msk.f32.gmra.mxu0 %vm492_vm0, %v12625_v23  ;;  %v3967_v60 = vpop.permute.xlu0 %3966 }
 0x5e8   : > { %8235 = vmatmul.mubr.msk.f32.gmra.mxu1 %vm492_vm0, %v12626_v29  ;;  %8217 = vmatprep.mubr.msk.f32.mxu0 %vm9327_vm4, %v12531_v4  ;;  %v3987_v21 = vsel %vm492_vm0, %v3967_v60, 0 }
 0x5e9   : > { %8268 = vmatpush3.bf16.xpose.msra.mxu1 %v3889_v10  ;;  %8237 = vmatprep.mubr.msk.f32.mxu1 %vm9327_vm4, %v12531_v4 }
 0x5ea   : > { %8727 = vmatprep.subr.msk.bf16.mxu1 %vm492_vm0, %v3865_v3 }
 0x5eb   : > { %8218 = vmatmul.mubr.msk.f32.gmra.mxu0 %vm492_vm0, %v12627_v15  ;;  %v3959_v48 = vpop.permute.xlu0 %3958 }
 0x5ec   : > { %8254 = vmatpush3.bf16.xpose.msra.mxu0 %v3782_v14  ;;  %8238 = vmatmul.mubr.msk.f32.gmra.mxu1 %vm492_vm0, %v12628_v24 }
 0x5ed   : > { %8220 = vmatprep.mubr.msk.f32.mxu0 %vm9327_vm4, %v12531_v4  ;;  %8240 = vmatprep.mubr.msk.f32.mxu1 %vm9327_vm4, %v12531_v4 }
 0x5ee   : > { %8724 = vmatprep.subr.msk.bf16.mxu0 %vm492_vm0, %v10840_v59  ;;  %v4097_v59 = vsel %vm492_vm0, %v4075_v57, 0 }
 0x5ef   : > { %8221 = vmatmul.mubr.msk.f32.gmra.mxu0 %vm492_vm0, %v12629_v47  ;;  %v4063_v61 = vpop.permute.xlu0 %4062 }
 0x5f0   : > { %8241 = vmatmul.mubr.msk.f32.gmra.mxu1 %vm492_vm0, %v12630_v50  ;;  %8223 = vmatprep.mubr.msk.f32.mxu0 %vm9327_vm4, %v12531_v4 }
 0x5f1   : > { %8270 = vmatpush3.bf16.xpose.msra.mxu1 %v3886_v56  ;;  %8243 = vmatprep.mubr.msk.f32.mxu1 %vm9327_vm4, %v12531_v4 }
 0x5f2   : > { %8728 = vmatprep.subr.msk.bf16.mxu1 %vm492_vm0, %v3863_v17 }
 0x5f3   : > { %8224 = vmatmul.mubr.msk.f32.gmra.mxu0 %vm492_vm0, %v12631_v39  ;;  %v3963_v40 = vpop.permute.xlu0 %3962 }
 0x5f4   : > { %8256 = vmatpush3.bf16.xpose.msra.mxu0 %v3779_v5  ;;  %8244 = vmatmul.mubr.msk.f32.gmra.mxu1 %vm492_vm0, %v12632_v44 }
 0x5f5   : > { %8246 = vmatprep.mubr.msk.f32.mxu1 %vm9327_vm4, %v12531_v4  ;;  %8257 = vmatprep.mubr.msk.bf16.mxu0 %vm492_vm0, %v10852_v13  ;;  %v4071_v13 = vpop.permute.xlu1 %4070 }
 0x5f6   : > { %8729 = vmatprep.subr.msk.bf16.mxu0 %vm492_vm0, %v3973_v8  ;;  %v4091_v3 = vsel %vm492_vm0, %v4071_v13, 0 }
 0x5f8   : > { %8247 = vmatmul.mubr.msk.f32.gmra.mxu1 %vm492_vm0, %v12633_v30 }
 0x5f9   : > { %8272 = vmatpush3.bf16.xpose.msra.mxu1 %v3883_v43  ;;  %8273 = vmatprep.mubr.msk.bf16.mxu1 %vm492_vm0, %v3855_v58  ;;  %v3961_v25 = vpop.permute.xlu1 %3960 }
 0x5fa   : > { %8733 = vmatprep.subr.msk.bf16.mxu1 %vm492_vm0, %v4077_v35 }
 0x5fb   : > { %8258 = vmatmul.mubr.msk.bf16.vlgmr.msra.gmra.mxu0 %vm492_vm0, %v10868_v34  ;;  %v4067_v34 = vpop.permute.xlu0 %4066 }
 0x5fc   : > { %8282 = vmatpush3.bf16.xpose.msra.mxu0 %v3996_v28  ;;  %8261 = vmatprep.mubr.msk.bf16.mxu0 %vm492_vm0, %v3755_v11 }
 0x5fd   : > { %8730 = vmatprep.subr.msk.bf16.mxu0 %vm492_vm0, %v3971_v12  ;;  %v4065_v63 = vpop.permute.xlu1 %4064 }
 0x600   : > { %8274 = vmatmul.mubr.msk.bf16.vlgmr.msra.gmra.mxu1 %vm492_vm0, %v3857_v31 }
 0x601   : > { %8298 = vmatpush3.bf16.xpose.msra.mxu1 %v4100_v33  ;;  %8277 = vmatprep.mubr.msk.bf16.mxu1 %vm492_vm0, %v3859_v20  ;;  %v3965_v51 = vpop.permute.xlu1 %3964 }
 0x602   : > { %8734 = vmatprep.subr.msk.bf16.mxu1 %vm492_vm0, %v4075_v57 }
 0x603   : > { %8262 = vmatmul.mubr.msk.bf16.gmra.mxu0 %vm492_vm0, %v3757_v2 }
 0x604   : > { %8284 = vmatpush3.bf16.xpose.msra.mxu0 %v3993_v9  ;;  %8289 = vmatprep.mubr.msk.bf16.mxu0 %vm492_vm0, %v3959_v48 }
 0x605   : > { %8731 = vmatprep.subr.msk.bf16.mxu0 %vm492_vm0, %v3969_v46  ;;  %v4069_v55 = vpop.permute.xlu1 %4068 }
 0x608   : > { %8278 = vmatmul.mubr.msk.bf16.gmra.mxu1 %vm492_vm0, %v3861_v27 }
 0x609   : > { %8300 = vmatpush3.bf16.xpose.msra.mxu1 %v4097_v59  ;;  %8305 = vmatprep.mubr.msk.bf16.mxu1 %vm492_vm0, %v4063_v61 }
 0x60a   : > { %8735 = vmatprep.subr.msk.bf16.mxu1 %vm492_vm0, %v4073_v7 }
 0x60c   : > { %8286 = vmatpush3.bf16.xpose.msra.mxu0 %v3990_v26 }
 0x60d   : > { %8732 = vmatprep.subr.msk.bf16.mxu0 %vm492_vm0, %v3967_v60 }
 0x611   : > { %8302 = vmatpush3.bf16.xpose.msra.mxu1 %v4094_v38 }
 0x612   : > { %8736 = vmatprep.subr.msk.bf16.mxu1 %vm492_vm0, %v4071_v13 }
 0x614   : > { %8288 = vmatpush3.bf16.xpose.msra.mxu0 %v3987_v21 }
 0x619   : > { %8304 = vmatpush3.bf16.xpose.msra.mxu1 %v4091_v3 }
 0x61b   : > { %8290 = vmatmul.mubr.msk.bf16.vlgmr.msra.gmra.mxu0 %vm492_vm0, %v3961_v25 }
 0x61c   : > { %8293 = vmatprep.mubr.msk.bf16.mxu0 %vm492_vm0, %v3963_v40 }
 0x620   : > { %8306 = vmatmul.mubr.msk.bf16.vlgmr.msra.gmra.mxu1 %vm492_vm0, %v4065_v63 }
 0x621   : > { %8309 = vmatprep.mubr.msk.bf16.mxu1 %vm492_vm0, %v4067_v34 }
 0x623   : > { %8294 = vmatmul.mubr.msk.bf16.gmra.mxu0 %vm492_vm0, %v3965_v51 }
 0x628   : > { %8310 = vmatmul.mubr.msk.bf16.gmra.mxu1 %vm492_vm0, %v4069_v55 }
 0x63f   : > { %v2869_v17 = vpop.f32.mrf.mxu0 }
 0x641   : > { %v8069_v32 = vpop.f32.mrf.mxu0 }
 0x642   : > { %v4497_v32 = vpop.permute.xlu0 %4496 }
 0x643   : > { %v10978_v49 = vpop.f32.mrf.mxu0  ;;  %v10980_v35 = vpop.f32.mrf.mxu1 }
 0x645   : > { %v8072_v18 = vpop.f32.mrf.mxu0  ;;  %v8092_v41 = vpop.f32.mrf.mxu1 }
 0x646   : > { %v12634_v41 = vld [vmem:[#allocation13_spill] sm:$0xff] }
 0x647   : > { %v10982_v22 = vpop.f32.mrf.mxu0  ;;  %v10984_v8 = vpop.f32.mrf.mxu1 }
 0x649   : > { %v8075_v0 = vpop.f32.mrf.mxu0  ;;  %v8095_v54 = vpop.f32.mrf.mxu1 }
 0x64a   : > { %v4514_v0 = vand.u32 %v4497_v32, %v12634_v41  ;;  %v4587_v54 = vpop.permute.xlu1 %4586 }
 0x64b   : > { %v10986_v12 = vpop.f32.mrf.mxu0  ;;  %v10988_v10 = vpop.f32.mrf.mxu1 }
 0x64c   : > { %8313 = vmatprep.subr.bf16.mxu0 %v4514_v0 }
 0x64d   : > { %v8078_v23 = vpop.f32.mrf.mxu0  ;;  %v8098_v58 = vpop.f32.mrf.mxu1  ;;  %8314 = vmatpush3.bf16.msra.mxu0 %v4514_v0 }
 0x64e   : > { %v4604_v58 = vand.u32 %v4587_v54, %v12634_v41 }
 0x64f   : > { %v10990_v29 = vpop.f32.mrf.mxu0  ;;  %v10992_v14 = vpop.f32.mrf.mxu1 }
 0x650   : > { %8329 = vmatprep.subr.bf16.mxu1 %v4604_v58 }
 0x651   : > { %v8081_v46 = vpop.f32.mrf.mxu0  ;;  %v8101_v15 = vpop.f32.mrf.mxu1  ;;  %8330 = vmatpush3.bf16.msra.mxu1 %v4604_v58 }
 0x653   : > { %v10994_v24 = vpop.f32.mrf.mxu0  ;;  %v10996_v31 = vpop.f32.mrf.mxu1 }
 0x655   : > { %v8084_v56 = vpop.f32.mrf.mxu0  ;;  %v8104_v47 = vpop.f32.mrf.mxu1 }
 0x656   : > { %v4495_v47 = vpop.permute.xlu0 %4494 }
 0x657   : > { %v10998_v50 = vpop.f32.mrf.mxu0  ;;  %v11000_v11 = vpop.f32.mrf.mxu1  ;;  %8315 = vmatprep.subr.bf16.mxu0 %v4495_v47 }
 0x658   : > { %8316 = vmatpush3.bf16.msra.mxu0 %v4495_v47 }
 0x659   : > { %v8087_v5 = vpop.f32.mrf.mxu0  ;;  %v8107_v39 = vpop.f32.mrf.mxu1 }
 0x65a   : > { %v4585_v39 = vpop.permute.xlu1 %4584 }
 0x65b   : > { %v11002_v57 = vpop.f32.mrf.mxu1  ;;  %8331 = vmatprep.subr.bf16.mxu1 %v4585_v39 }
 0x65c   : > { %8332 = vmatpush3.bf16.msra.mxu1 %v4585_v39 }
 0x65d   : > { %v8110_v44 = vpop.f32.mrf.mxu1 }
 0x663   : > { %v11004_v20 = vpop.f32.mrf.mxu0 }
 0x665   : > { %v8115_v30 = vpop.f32.mrf.mxu0 }
 0x667   : > { %v11006_v43 = vpop.f32.mrf.mxu0 }
 0x668   : > { %v11008_v7 = vpop.f32.mrf.mxu1 }
 0x669   : > { %v8118_v28 = vpop.f32.mrf.mxu0 }
 0x66a   : > { %v8138_v60 = vpop.f32.mrf.mxu1 }
 0x66b   : > { %v11010_v33 = vpop.f32.mrf.mxu0 }
 0x66c   : > { %v11012_v2 = vpop.f32.mrf.mxu1 }
 0x66d   : > { %v8121_v48 = vpop.f32.mrf.mxu0 }
 0x66e   : > { %v8141_v9 = vpop.f32.mrf.mxu1  ;;  %v4491_v48 = vpop.permute.xlu0 %4490 }
 0x66f   : > { %v11014_v27 = vpop.f32.mrf.mxu0 }
 0x670   : > { %v11016_v59 = vpop.f32.mrf.mxu1 }
 0x671   : > { %v8124_v61 = vpop.f32.mrf.mxu0 }
 0x672   : > { %v8144_v26 = vpop.f32.mrf.mxu1  ;;  %v4493_v61 = vpop.permute.xlu1 %4492 }
 0x673   : > { %v11018_v38 = vpop.f32.mrf.mxu0  ;;  %8317 = vmatprep.subr.bf16.mxu0 %v4493_v61 }
 0x674   : > { %v11020_v13 = vpop.f32.mrf.mxu1  ;;  %8318 = vmatpush3.bf16.msra.mxu0 %v4493_v61 }
 0x675   : > { %v8127_v21 = vpop.f32.mrf.mxu0  ;;  %8319 = vmatprep.subr.bf16.mxu0 %v4491_v48 }
 0x676   : > { %v8147_v25 = vpop.f32.mrf.mxu1 }
 0x677   : > { %v11022_v3 = vpop.f32.mrf.mxu0 }
 0x678   : > { %v11024_v40 = vpop.f32.mrf.mxu1  ;;  %8320 = vmatpush3.bf16.msra.mxu0 %v4491_v48 }
 0x679   : > { %v8130_v63 = vpop.f32.mrf.mxu0 }
 0x67a   : > { %v8150_v34 = vpop.f32.mrf.mxu1 }
 0x67b   : > { %v11026_v51 = vpop.f32.mrf.mxu0  ;;  %v4581_v34 = vpop.permute.xlu0 %4580 }
 0x67c   : > { %v11028_v55 = vpop.f32.mrf.mxu1 }
 0x67d   : > { %v8133_v18 = vpop.f32.mrf.mxu0 }
 0x67e   : > { %v8153_v23 = vpop.f32.mrf.mxu1  ;;  %v4583_v18 = vpop.permute.xlu1 %4582 }
 0x67f   : > { %v3353_v46 = vpop.f32.mrf.mxu0  ;;  %8333 = vmatprep.subr.bf16.mxu1 %v4583_v18 }
 0x680   : > { %v11032_v15 = vadd.f32 %v3353_v46, %v2869_v17  ;;  %v11034_v56 = vpop.f32.mrf.mxu1  ;;  %8334 = vmatpush3.bf16.msra.mxu1 %v4583_v18 }
 0x681   : > { %v8161_v5 = vpop.f32.mrf.mxu0  ;;  %8335 = vmatprep.subr.bf16.mxu1 %v4581_v34 }
 0x682   : > { %v8156_v44 = vpop.f32.mrf.mxu1  ;;  %v4677_v46 = vpop.permute.xlu1 %4676 }
 0x683   : > { %v3358_v30 = vpop.f32.mrf.mxu0  ;;  %v11055_v47 = vand.u32 %v4677_v46, %v12634_v41 }
 0x684   : > { %v11037_v28 = vadd.f32 %v3358_v30, %v10978_v49  ;;  %v3474_v60 = vpop.f32.mrf.mxu1  ;;  %8336 = vmatpush3.bf16.msra.mxu1 %v4581_v34 }
 0x685   : > { %v11040_v17 = vadd.f32 %v3474_v60, %v10980_v35  ;;  %v8164_v9 = vpop.f32.mrf.mxu0  ;;  %8345 = vmatprep.subr.bf16.mxu0 %v11055_v47 }
 0x686   : > { %v8184_v26 = vpop.f32.mrf.mxu1 }
 0x687   : > { %v3363_v21 = vpop.f32.mrf.mxu0 }
 0x688   : > { %v11043_v25 = vadd.f32 %v3363_v21, %v10982_v22  ;;  %v3479_v63 = vpop.f32.mrf.mxu1 }
 0x689   : > { %v11046_v49 = vadd.f32 %v3479_v63, %v10984_v8  ;;  %v8167_v32 = vpop.f32.mrf.mxu0 }
 0x68a   : > { %v8187_v35 = vpop.f32.mrf.mxu1 }
 0x68b   : > { %12635 = vst [vmem:[#allocation21_spill] sm:$0xff] %v11046_v49  ;;  %v3368_v0 = vpop.f32.mrf.mxu0 }
 0x68c   : > { %v11049_v54 = vadd.f32 %v3368_v0, %v10986_v12  ;;  %v3484_v23 = vpop.f32.mrf.mxu1 }
 0x68d   : > { %v11052_v22 = vadd.f32 %v3484_v23, %v10988_v10  ;;  %v8170_v58 = vpop.f32.mrf.mxu0  ;;  %v4767_v10 = vpop.permute.xlu1 %4766 }
 0x68e   : > { %12636 = vst [vmem:[#allocation18_spill] sm:$0xff] %v11049_v54  ;;  %v8190_v8 = vpop.f32.mrf.mxu1  ;;  %v11065_v48 = vand.u32 %v4767_v10, %v12634_v41 }
 0x68f   : > { %12637 = vst [vmem:[#allocation10_spill] sm:$0xff] %v11052_v22  ;;  %v3373_v5 = vpop.f32.mrf.mxu0 }
 0x690   : > { %v11058_v39 = vadd.f32 %v3373_v5, %v10990_v29  ;;  %v3489_v44 = vpop.f32.mrf.mxu1  ;;  %8361 = vmatprep.subr.bf16.mxu1 %v11065_v48 }
 0x691   : > { %v11062_v12 = vadd.f32 %v3489_v44, %v10992_v14  ;;  %v8173_v30 = vpop.f32.mrf.mxu0 }
 0x692   : > { %12638 = vst [vmem:[#allocation15_spill] sm:$0xff] %v11058_v39  ;;  %v8193_v60 = vpop.f32.mrf.mxu1 }
 0x693   : > { %12639 = vst [vmem:[#allocation22_spill] sm:$0xff] %v11062_v12  ;;  %v3378_v9 = vpop.f32.mrf.mxu0 }
 0x694   : > { %v11068_v61 = vadd.f32 %v3378_v9, %v10994_v24  ;;  %v3494_v26 = vpop.f32.mrf.mxu1 }
 0x695   : > { %v11072_v29 = vadd.f32 %v3494_v26, %v10996_v31  ;;  %v8176_v21 = vpop.f32.mrf.mxu0 }
 0x696   : > { %12640 = vst [vmem:[#allocation7_spill] sm:$0xff] %v11068_v61  ;;  %v8196_v63 = vpop.f32.mrf.mxu1 }
 0x697   : > { %12641 = vst [vmem:[#allocation23_spill] sm:$0xff] %v11072_v29  ;;  %v3383_v14 = vpop.f32.mrf.mxu0 }
 0x698   : > { %v11075_v34 = vadd.f32 %v3383_v14, %v10998_v50  ;;  %v3499_v32 = vpop.f32.mrf.mxu1 }
 0x699   : > { %v11078_v18 = vadd.f32 %v3499_v32, %v11000_v11  ;;  %v8179_v35 = vpop.f32.mrf.mxu0 }
 0x69a   : > { %12642 = vst [vmem:[#allocation20_spill] sm:$0xff] %v11075_v34  ;;  %v8199_v0 = vpop.f32.mrf.mxu1 }
 0x69b   : > { %12643 = vst [vmem:[#allocation8_spill] sm:$0xff] %v11078_v18  ;;  %v3595_v24 = vpop.f32.mrf.mxu0 }
 0x69c   : > { %v11081_v23 = vadd.f32 %v3595_v24, %v11004_v20  ;;  %v3504_v58 = vpop.f32.mrf.mxu1 }
 0x69d   : > { %v11084_v31 = vadd.f32 %v3504_v58, %v11002_v57  ;;  %v8207_v46 = vpop.f32.mrf.mxu0 }
 0x69e   : > { %12644 = vst [vmem:[#allocation14_spill] sm:$0xff] %v11081_v23  ;;  %v8202_v8 = vpop.f32.mrf.mxu1 }
 0x69f   : > { %12645 = vst [vmem:[#allocation17_spill] sm:$0xff] %v11084_v31  ;;  %v3600_v5 = vpop.f32.mrf.mxu0 }
 0x6a0   : > { %v11087_v50 = vadd.f32 %v3600_v5, %v11006_v43  ;;  %v3716_v44 = vpop.f32.mrf.mxu1 }
 0x6a1   : > { %v11090_v11 = vadd.f32 %v3716_v44, %v11008_v7  ;;  %v8210_v30 = vpop.f32.mrf.mxu0 }
 0x6a2   : > { %12646 = vst [vmem:[#allocation24_spill] sm:$0xff] %v11087_v50  ;;  %v8230_v10 = vpop.f32.mrf.mxu1 }
 0x6a3   : > { %12647 = vst [vmem:[#allocation11_spill] sm:$0xff] %v11090_v11  ;;  %v3605_v60 = vpop.f32.mrf.mxu0 }
 0x6a4   : > { %v11093_v20 = vadd.f32 %v3605_v60, %v11010_v33  ;;  %v3721_v9 = vpop.f32.mrf.mxu1 }
 0x6a5   : > { %v11096_v57 = vadd.f32 %v3721_v9, %v11012_v2  ;;  %v8213_v26 = vpop.f32.mrf.mxu0 }
 0x6a6   : > { %12648 = vst [vmem:[#allocation19_spill] sm:$0xff] %v11093_v20  ;;  %v8233_v21 = vpop.f32.mrf.mxu1 }
 0x6a7   : > { %12649 = vst [vmem:[#allocation29_spill] sm:$0xff] %v11096_v57  ;;  %v3610_v63 = vpop.f32.mrf.mxu0 }
 0x6a8   : > { %v11099_v43 = vadd.f32 %v3610_v63, %v11014_v27  ;;  %v3726_v14 = vpop.f32.mrf.mxu1 }
 0x6a9   : > { %v11102_v7 = vadd.f32 %v3726_v14, %v11016_v59  ;;  %v8216_v32 = vpop.f32.mrf.mxu0 }
 0x6aa   : > { %12650 = vst [vmem:[#allocation12_spill] sm:$0xff] %v11099_v43  ;;  %v8236_v35 = vpop.f32.mrf.mxu1 }
 0x6ab   : > { %12651 = vst [vmem:[#allocation9_spill] sm:$0xff] %v11102_v7  ;;  %v3615_v0 = vpop.f32.mrf.mxu0 }
 0x6ac   : > { %v11105_v33 = vadd.f32 %v3615_v0, %v11018_v38  ;;  %v3731_v24 = vpop.f32.mrf.mxu1 }
 0x6ad   : > { %v11108_v2 = vadd.f32 %v3731_v24, %v11020_v13  ;;  %v8219_v58 = vpop.f32.mrf.mxu0 }
 0x6ae   : > { %12652 = vst [vmem:[#allocation27_spill] sm:$0xff] %v11105_v33  ;;  %v8239_v46 = vpop.f32.mrf.mxu1 }
 0x6af   : > { %12653 = vst [vmem:[#allocation26_spill] sm:$0xff] %v11108_v2  ;;  %v3620_v8 = vpop.f32.mrf.mxu0  ;;  %v11214_v2 = vld [vmem:[%s12492_s3 + $0x98] sm:$0xff] }
 0x6b0   : > { %v11111_v27 = vadd.f32 %v3620_v8, %v11022_v3  ;;  %v3736_v5 = vpop.f32.mrf.mxu1 }
 0x6b1   : > { %v11114_v59 = vadd.f32 %v3736_v5, %v11024_v40  ;;  %v8222_v44 = vpop.f32.mrf.mxu0  ;;  %v11128_v40 = vld [vmem:[%s12492_s3 + $0x80] sm:$0xff] }
 0x6b2   : > { %12654 = vst [vmem:[#allocation16_spill] sm:$0xff] %v11111_v27  ;;  %v8242_v30 = vpop.f32.mrf.mxu1 }
 0x6b3   : > { %12655 = vst [vmem:[#allocation32_spill] sm:$0xff] %v11114_v59  ;;  %v3625_v10 = vpop.f32.mrf.mxu0  ;;  %v11151_v30 = vld [vmem:[%s12492_s3 + $0x88] sm:$0xff] }
 0x6b4   : > { %v11117_v38 = vadd.f32 %v3625_v10, %v11026_v51  ;;  %v3741_v60 = vpop.f32.mrf.mxu1  ;;  %v11156_v10 = vld [vmem:[%s12492_s3 + $0x78] sm:$0xff] }
 0x6b5   : > { %v11120_v13 = vadd.f32 %v3741_v60, %v11028_v55  ;;  %v8225_v9 = vpop.f32.mrf.mxu0 }
 0x6b6   : > { %12656 = vst [vmem:[#allocation25_spill] sm:$0xff] %v11117_v38  ;;  %v8245_v26 = vpop.f32.mrf.mxu1 }
 0x6b7   : > { %12657 = vst [vmem:[#allocation34_spill] sm:$0xff] %v11120_v13 }
 0x6b8   : > { %v3746_v21 = vpop.f32.mrf.mxu1 }
 0x6b9   : > { %v11123_v3 = vadd.f32 %v3746_v21, %v11034_v56  ;;  %v11138_v56 = vld [vmem:[%s12492_s3 + $0x70] sm:$0xff] }
 0x6ba   : > { %v8248_v63 = vpop.f32.mrf.mxu1 }
 0x6bb   : > { %12658 = vst [vmem:[#allocation30_spill] sm:$0xff] %v11123_v3  ;;  %v8259_v14 = vpop.f32.mrf.mxu0 }
 0x6bc   : > { %v11131_v51 = vadd.f32 %v8259_v14, %v11128_v40 }
 0x6bd   : > { %v3824_v32 = vpop.f32.mrf.mxu0 }
 0x6be   : > { %v4172_v55 = vsel %vm953_vm1, %v11131_v51, -inf  ;;  %v11144_v8 = vadd.f32 %v3824_v32, %v11138_v56 }
 0x6bf   : > { %4173 = vmax.xlane.f32.xlu0 %v4172_v55  ;;  %v8260_v35 = vpop.f32.mrf.mxu0 }
 0x6c0   : > { %v8275_v0 = vpop.f32.mrf.mxu1  ;;  %v4166_v55 = vsel %vm953_vm1, %v11144_v8, -inf  ;;  %v11177_v4 = vadd.f32 %v8260_v35, %v11151_v30  ;;  %v11195_v35 = vld [vmem:[%s12492_s3 + $0x90] sm:$0xff] }
 0x6c1   : > { %v11141_v24 = vadd.f32 %v8275_v0, %v11128_v40  ;;  %v3827_v58 = vpop.f32.mrf.mxu0 }
 0x6c2   : > { %v3928_v46 = vpop.f32.mrf.mxu1  ;;  %v11162_v63 = vadd.f32 %v3827_v58, %v11156_v10  ;;  %v4175_v59 = vsel %vm953_vm1, %v11177_v4, -inf }
 0x6c3   : > { %v4193_v5 = vsel %vm953_vm1, %v11141_v24, -inf  ;;  %v8263_v44 = vpop.f32.mrf.mxu0  ;;  %v11165_v14 = vadd.f32 %v3928_v46, %v11138_v56 }
 0x6c4   : > { %v8276_v60 = vpop.f32.mrf.mxu1  ;;  %4194 = vmax.xlane.f32.xlu0 %v4193_v5  ;;  %v4169_v3 = vsel %vm953_vm1, %v11162_v63, -inf }
 0x6c5   : > { %v11159_v9 = vadd.f32 %v8276_v60, %v11151_v30  ;;  %v3840_v26 = vpop.f32.mrf.mxu0  ;;  %v11174_v60 = vld [vmem:[%s12492_s3 + $0xa0] sm:$0x1] }
 0x6c6   : > { %v3931_v21 = vpop.f32.mrf.mxu1 }
 0x6c7   : > { %v4196_v32 = vsel %vm953_vm1, %v11159_v9, -inf  ;;  %v8264_v0 = vpop.f32.mrf.mxu0  ;;  %v11180_v46 = vadd.f32 %v3931_v21, %v11156_v10 }
 0x6c8   : > { %4197 = vmax.xlane.f32.xlu1 %v4196_v32  ;;  %4167 = vmax.xlane.f32.xlu0 %v4166_v55  ;;  %v8279_v5 = vpop.f32.mrf.mxu1  ;;  %v4187_v32 = vsel %vm953_vm1, %v11165_v14, -inf  ;;  %v11187_v0 = vadd.f32 %v8263_v44, %v11174_v60  ;;  %v11204_v44 = vadd.f32 %v3840_v26, %v11195_v35 }
 0x6c9   : > { %v11190_v13 = vadd.f32 %v8279_v5, %v11174_v60  ;;  %v4190_v21 = vsel %vm953_vm1, %v11180_v46, -inf }
 0x6ca   : > { %v3944_v58 = vpop.f32.mrf.mxu1  ;;  %v4178_v26 = vsel %vm953_vm1, %v11204_v44, -inf }
 0x6cb   : > { %v4205_v5 = vsel %vm972_vm2, %v11190_v13, -inf }
 0x6cc   : > { %4170 = vmax.xlane.f32.xlu1 %v4169_v3  ;;  %4188 = vmax.xlane.f32.xlu0 %v4187_v32  ;;  %v8280_v55 = vpop.f32.mrf.mxu1  ;;  %v4184_v3 = vsel %vm972_vm2, %v11187_v0, -inf  ;;  %v11209_v32 = vadd.f32 %v3944_v58, %v11195_v35 }
 0x6cd   : > { %v3843_v55 = vpop.f32.mrf.mxu0 }
 0x6ce   : > { %v4199_v58 = vsel %vm953_vm1, %v11209_v32, -inf }
 0x6d0   : > { %4191 = vmax.xlane.f32.xlu1 %v4190_v21  ;;  %4176 = vmax.xlane.f32.xlu0 %v4175_v59  ;;  %v3947_v21 = vpop.f32.mrf.mxu1  ;;  %v11217_v59 = vadd.f32 %v3843_v55, %v11214_v2 }
 0x6d1   : > { %v11222_v7 = vadd.f32 %v3947_v21, %v11214_v2 }
 0x6d3   : > { %v4202_v57 = vsel %vm953_vm1, %v11222_v7, -inf }
 0x6d4   : > { %4185 = vmax.xlane.f32.xlu0 %v4184_v3  ;;  %4206 = vmax.xlane.f32.xlu1 %v4205_v5  ;;  %v4181_v3 = vsel %vm953_vm1, %v11217_v59, -inf }
 0x6d8   : > { %4179 = vmax.xlane.f32.xlu0 %v4178_v26  ;;  %4200 = vmax.xlane.f32.xlu1 %v4199_v58 }
 0x6db   : > { %v8291_v5 = vpop.f32.mrf.mxu0 }
 0x6dc   : > { %v11231_v55 = vadd.f32 %v8291_v5, %v11128_v40  ;;  %4203 = vmax.xlane.f32.xlu0 %v4202_v57  ;;  %4182 = vmax.xlane.f32.xlu1 %v4181_v3 }
 0x6dd   : > { %v4032_v11 = vpop.f32.mrf.mxu0 }
 0x6de   : > { %v4214_v21 = vsel %vm953_vm1, %v11231_v55, -inf  ;;  %v11239_v27 = vadd.f32 %v4032_v11, %v11138_v56 }
 0x6df   : > { %v8292_v38 = vpop.f32.mrf.mxu0 }
 0x6e0   : > { %v11236_v26 = vadd.f32 %v8292_v38, %v11151_v30  ;;  %4215 = vmax.xlane.f32.xlu0 %v4214_v21  ;;  %v8307_v58 = vpop.f32.mrf.mxu1 }
 0x6e1   : > { %v11242_v41 = vadd.f32 %v8307_v58, %v11128_v40  ;;  %v4035_v5 = vpop.f32.mrf.mxu0  ;;  %v4208_v58 = vsel %vm953_vm1, %v11239_v27, -inf }
 0x6e2   : > { %v4136_v33 = vpop.f32.mrf.mxu1  ;;  %v4217_v57 = vsel %vm953_vm1, %v11236_v26, -inf  ;;  %v11255_v40 = vadd.f32 %v4035_v5, %v11156_v10 }
 0x6e3   : > { %4218 = vmax.xlane.f32.xlu1 %v4217_v57  ;;  %v4235_v3 = vsel %vm953_vm1, %v11242_v41, -inf  ;;  %v8295_v43 = vpop.f32.mrf.mxu0  ;;  %v11249_v21 = vadd.f32 %v4136_v33, %v11138_v56 }
 0x6e4   : > { %4236 = vmax.xlane.f32.xlu0 %v4235_v3  ;;  %v8308_v38 = vpop.f32.mrf.mxu1  ;;  %v4211_v33 = vsel %vm953_vm1, %v11255_v40, -inf  ;;  %v11269_v5 = vadd.f32 %v8295_v43, %v11174_v60 }
 0x6e5   : > { %v11252_v11 = vadd.f32 %v8308_v38, %v11151_v30  ;;  %v4048_v20 = vpop.f32.mrf.mxu0  ;;  %v4229_v30 = vsel %vm953_vm1, %v11249_v21, -inf }
 0x6e6   : > { %v4139_v57 = vpop.f32.mrf.mxu1 }
 0x6e7   : > { %v4238_v50 = vsel %vm953_vm1, %v11252_v11, -inf  ;;  %v8296_v23 = vpop.f32.mrf.mxu0  ;;  %v11264_v56 = vadd.f32 %v4139_v57, %v11156_v10  ;;  %v4226_v10 = vsel %vm972_vm2, %v11269_v5, -inf }
 0x6e8   : > { %4209 = vmax.xlane.f32.xlu0 %v4208_v58  ;;  %4239 = vmax.xlane.f32.xlu1 %v4238_v50  ;;  %v8311_v3 = vpop.f32.mrf.mxu1  ;;  %v11279_v58 = vadd.f32 %v4048_v20, %v11195_v35 }
 0x6e9   : > { %v11272_v23 = vadd.f32 %v8311_v3, %v11174_v60  ;;  %v4232_v50 = vsel %vm953_vm1, %v11264_v56, -inf }
 0x6ea   : > { %v4152_v38 = vpop.f32.mrf.mxu1 }
 0x6eb   : > { %v11282_v43 = vadd.f32 %v4152_v38, %v11195_v35  ;;  %v4247_v60 = vsel %vm972_vm2, %v11272_v23, -inf }
 0x6ec   : > { %4212 = vmax.xlane.f32.xlu1 %v4211_v33  ;;  %4230 = vmax.xlane.f32.xlu0 %v4229_v30  ;;  %v8312_v31 = vpop.f32.mrf.mxu1  ;;  %v4051_v33 = vpop.f32.mrf.mxu0 }
 0x6ed   : > { %v4220_v31 = vsel %vm953_vm1, %v11279_v58, -inf  ;;  %v11292_v20 = vadd.f32 %v4051_v33, %v11214_v2  ;;  %v4241_v30 = vsel %vm953_vm1, %v11282_v43, -inf }
 0x6ee   : > { %v4155_v57 = vpop.f32.mrf.mxu1 }
 0x6ef   : > { %v11289_v3 = vadd.f32 %v4155_v57, %v11214_v2  ;;  %v4223_v38 = vsel %vm953_vm1, %v11292_v20, -inf }
 0x6f0   : > { %4233 = vmax.xlane.f32.xlu1 %v4232_v50  ;;  %4227 = vmax.xlane.f32.xlu0 %v4226_v10  ;;  %v9278_v50 = vld [vmem:[%s9827_s29 + $0x40] sm:$0xff]  }
 0x6f1   : > { %v4244_v35 = vsel %vm953_vm1, %v11289_v3, -inf  ;;  %v9279_v10 = vld [vmem:[%s9827_s29 + $0x64] sm:$0xff]  }
 0x6f4   : > { %4221 = vmax.xlane.f32.xlu0 %v4220_v31  ;;  %4248 = vmax.xlane.f32.xlu1 %v4247_v60  ;;  %v11305_v60 = vpop.permute.xlu1 %4674 }
 0x6f8   : > { %4245 = vmax.xlane.f32.xlu0 %v4244_v35  ;;  %4242 = vmax.xlane.f32.xlu1 %v4241_v30 }
 0x6fc   : > { %4224 = vmax.xlane.f32.xlu1 %v4223_v38 }
 0x70d   : > { %4672 = vrot.lane.b32.xlu1 %v9278_v50, %s9325_s19 }
 0x70e   : > { %4764 = vrot.lane.b32.xlu0 %v9279_v10, %s9325_s19 }
 0x748   : > { %v4174_v2 = vpop.xlane.xlu0 %4173 }
 0x749   : > { %v4252_v57 = vsub.f32 %v11131_v51, %v4174_v2 }
 0x74b   : > { %v4282_v31 = vmul.f32 1.442695, %v4252_v57 }
 0x74d   : > { %9025 = vpow2.f32 %v4282_v31  ;;  %v4195_v33 = vpop.xlane.xlu0 %4194 }
 0x74e   : > { %v4259_v35 = vsub.f32 %v11141_v24, %v4195_v33 }
 0x750   : > { %v4296_v30 = vmul.f32 1.442695, %v4259_v35 }
 0x751   : > { %v4198_v18 = vpop.xlane.xlu1 %4197  ;;  %v4168_v34 = vpop.xlane.xlu0 %4167 }
 0x752   : > { %9027 = vpow2.f32 %v4296_v30  ;;  %v4250_v38 = vsub.f32 %v11144_v8, %v4168_v34  ;;  %v4260_v2 = vsub.f32 %v11159_v9, %v4198_v18 }
 0x754   : > { %v4278_v50 = vmul.f32 1.442695, %v4250_v38  ;;  %v4298_v8 = vmul.f32 1.442695, %v4260_v2 }
 0x755   : > { %v4171_v29 = vpop.xlane.xlu1 %4170  ;;  %v4189_v61 = vpop.xlane.xlu0 %4188 }
 0x756   : > { %v4257_v10 = vsub.f32 %v11165_v14, %v4189_v61  ;;  %9029 = vpow2.f32 %v4278_v50  ;;  %v4251_v35 = vsub.f32 %v11162_v63, %v4171_v29 }
 0x758   : > { %v4292_v51 = vmul.f32 1.442695, %v4257_v10  ;;  %v4280_v38 = vmul.f32 1.442695, %v4251_v35 }
 0x759   : > { %v4192_v57 = vpop.xlane.xlu1 %4191  ;;  %v4177_v31 = vpop.xlane.xlu0 %4176 }
 0x75a   : > { %v11311_v12 = vpop.eup %9025  ;;  %v4253_v24 = vsub.f32 %v11177_v4, %v4177_v31  ;;  %9031 = vpow2.f32 %v4292_v51  ;;  %v4258_v50 = vsub.f32 %v11180_v46, %v4192_v57 }
 0x75b   : > { %v4340_v33 = vsel %vm953_vm1, %v11311_v12, 0.0 }
 0x75c   : > { %v4284_v34 = vmul.f32 1.442695, %v4253_v24  ;;  %4341 = vadd.xlane.f32.xlu0 %v4340_v33  ;;  %v4294_v63 = vmul.f32 1.442695, %v4258_v50 }
 0x75d   : > { %v4207_v61 = vpop.xlane.xlu1 %4206  ;;  %v4186_v14 = vpop.xlane.xlu0 %4185 }
 0x75e   : > { %v4256_v30 = vsub.f32 %v11187_v0, %v4186_v14  ;;  %9033 = vpow2.f32 %v4284_v34  ;;  %v4263_v0 = vsub.f32 %v11190_v13, %v4207_v61 }
 0x75f   : > { %v11318_v18 = vpop.eup %9027  ;;  %9035 = vpow2.f32 %v4298_v8 }
 0x760   : > { %v4290_v9 = vmul.f32 1.442695, %v4256_v30  ;;  %v4361_v4 = vsel %vm953_vm1, %v11318_v18, 0.0  ;;  %v4304_v35 = vmul.f32 1.442695, %v4263_v0 }
 0x761   : > { %v4201_v10 = vpop.xlane.xlu1 %4200  ;;  %4362 = vadd.xlane.f32.xlu0 %v4361_v4  ;;  %v4180_v51 = vpop.xlane.xlu0 %4179 }
 0x762   : > { %9037 = vpow2.f32 %v4290_v9  ;;  %v4254_v14 = vsub.f32 %v11204_v44, %v4180_v51 }
 0x763   : > { %v11323_v29 = vpop.eup %9029  ;;  %9039 = vpow2.f32 %v4280_v38 }
 0x764   : > { %v4334_v31 = vsel %vm953_vm1, %v11323_v29, 0.0  ;;  %9041 = vpow2.f32 %v4294_v63  ;;  %v4286_v9 = vmul.f32 1.442695, %v4254_v14 }
 0x765   : > { %v4183_v2 = vpop.xlane.xlu1 %4182  ;;  %v4204_v24 = vpop.xlane.xlu0 %4203  ;;  %4335 = vadd.xlane.f32.xlu0 %v4334_v31 }
 0x766   : > { %v4255_v33 = vsub.f32 %v11217_v59, %v4183_v2  ;;  %v4262_v46 = vsub.f32 %v11222_v7, %v4204_v24  ;;  %v4261_v59 = vsub.f32 %v11209_v32, %v4201_v10 }
 0x767   : > { %v11330_v57 = vpop.eup %9031 }
 0x768   : > { %v4288_v34 = vmul.f32 1.442695, %v4255_v33  ;;  %v4302_v8 = vmul.f32 1.442695, %v4262_v46  ;;  %v4355_v13 = vsel %vm953_vm1, %v11330_v57, 0.0 }
 0x769   : > { %v4216_v61 = vpop.xlane.xlu0 %4215  ;;  %4356 = vadd.xlane.f32.xlu0 %v4355_v13  ;;  %v4300_v51 = vmul.f32 1.442695, %v4261_v59 }
 0x76a   : > { %9043 = vpow2.f32 %v4288_v34  ;;  %v4266_v63 = vsub.f32 %v11231_v55, %v4216_v61 }
 0x76b   : > { %v11335_v30 = vpop.eup %9033  ;;  %9045 = vpow2.f32 %v4302_v8 }
 0x76c   : > { %v11338_v7 = vpop.xlane.xlu1 %4218  ;;  %9047 = vpow2.f32 %v4304_v35  ;;  %v4343_v4 = vsel %vm953_vm1, %v11335_v30, 0.0  ;;  %v11342_v44 = vpop.eup %9035  ;;  %v4310_v46 = vmul.f32 1.442695, %v4266_v63 }
 0x76d   : > { %v4237_v38 = vpop.xlane.xlu0 %4236  ;;  %4344 = vadd.xlane.f32.xlu1 %v4343_v4  ;;  %9049 = vpow2.f32 %v4286_v9  ;;  %v4364_v32 = vsel %vm953_vm1, %v11342_v44, 0.0 }
 0x76e   : > { %9051 = vpow2.f32 %v4300_v51  ;;  %v4273_v34 = vsub.f32 %v11242_v41, %v4237_v38 }
 0x76f   : > { %v11344_v50 = vpop.eup %9037 }
 0x770   : > { %v4352_v10 = vsel %vm972_vm2, %v11344_v50, 0.0  ;;  %v11351_v31 = vpop.eup %9039  ;;  %v4324_v41 = vmul.f32 1.442695, %v4273_v34 }
 0x771   : > { %v4240_v0 = vpop.xlane.xlu1 %4239  ;;  %v4210_v2 = vpop.xlane.xlu0 %4209  ;;  %4365 = vadd.xlane.f32.xlu1 %v4364_v32  ;;  %4353 = vadd.xlane.f32.xlu0 %v4352_v10  ;;  %v4337_v8 = vsel %vm953_vm1, %v11351_v31, 0.0 }
 0x772   : > { %v4274_v24 = vsub.f32 %v11252_v11, %v4240_v0  ;;  %v11357_v14 = vpop.eup %9041  ;;  %v4264_v4 = vsub.f32 %v11239_v27, %v4210_v2 }
 0x773   : > { %v4358_v51 = vsel %vm953_vm1, %v11357_v14, 0.0 }
 0x774   : > { %v4326_v33 = vmul.f32 1.442695, %v4274_v24  ;;  %v4306_v24 = vmul.f32 1.442695, %v4264_v4 }
 0x775   : > { %v4213_v55 = vpop.xlane.xlu1 %4212  ;;  %v4231_v35 = vpop.xlane.xlu0 %4230  ;;  %4338 = vadd.xlane.f32.xlu1 %v4337_v8 }
 0x776   : > { %9053 = vpow2.f32 %v4326_v33  ;;  %v4265_v13 = vsub.f32 %v11255_v40, %v4213_v55  ;;  %v4271_v27 = vsub.f32 %v11249_v21, %v4231_v35 }
 0x777   : > { %v11360_v61 = vpop.eup %9043  ;;  %9055 = vpow2.f32 %v4310_v46 }
 0x778   : > { %v4308_v11 = vmul.f32 1.442695, %v4265_v13  ;;  %v4349_v59 = vsel %vm953_vm1, %v11360_v61, 0.0  ;;  %v11364_v9 = vpop.eup %9045  ;;  %v4320_v34 = vmul.f32 1.442695, %v4271_v27 }
 0x779   : > { %v4234_v38 = vpop.xlane.xlu1 %4233  ;;  %4350 = vadd.xlane.f32.xlu0 %v4349_v59  ;;  %v4228_v63 = vpop.xlane.xlu0 %4227  ;;  %4359 = vadd.xlane.f32.xlu1 %v4358_v51  ;;  %v4370_v10 = vsel %vm953_vm1, %v11364_v9, 0.0 }
 0x77a   : > { %v11369_v40 = vpop.eup %9047  ;;  %9057 = vpow2.f32 %v4308_v11  ;;  %v4270_v0 = vsub.f32 %v11269_v5, %v4228_v63  ;;  %v4267_v5 = vsub.f32 %v11236_v26, %v11338_v7  ;;  %v4272_v35 = vsub.f32 %v11264_v56, %v4234_v38 }
 0x77b   : > { %9059 = vpow2.f32 %v4324_v41  ;;  %v4373_v33 = vsel %vm972_vm2, %v11369_v40, 0.0  ;;  %v11377_v46 = vpop.eup %9049 }
 0x77c   : > { %v4318_v32 = vmul.f32 1.442695, %v4270_v0  ;;  %v4346_v8 = vsel %vm953_vm1, %v11377_v46, 0.0  ;;  %v11383_v13 = vpop.eup %9051  ;;  %v4312_v59 = vmul.f32 1.442695, %v4267_v5 }
 0x77d   : > { %v4249_v2 = vpop.xlane.xlu1 %4248  ;;  %4371 = vadd.xlane.f32.xlu0 %v4370_v10  ;;  %4374 = vadd.xlane.f32.xlu1 %v4373_v33  ;;  %v4367_v26 = vsel %vm953_vm1, %v11383_v13, 0.0  ;;  %v4322_v63 = vmul.f32 1.442695, %v4272_v35 }
 0x77e   : > { %9061 = vpow2.f32 %v4318_v32  ;;  %v4277_v38 = vsub.f32 %v11272_v23, %v4249_v2 }
 0x77f   : > { %9063 = vpow2.f32 %v4306_v24  ;;  %v4222_v24 = vpop.xlane.xlu0 %4221 }
 0x780   : > { %9065 = vpow2.f32 %v4320_v34  ;;  %v4332_v27 = vmul.f32 1.442695, %v4277_v38  ;;  %v4268_v33 = vsub.f32 %v11279_v58, %v4222_v24 }
 0x781   : > { %v4243_v55 = vpop.xlane.xlu1 %4242  ;;  %4347 = vadd.xlane.f32.xlu1 %v4346_v8  ;;  %9067 = vpow2.f32 %v4312_v59 }
 0x782   : > { %v4314_v34 = vmul.f32 1.442695, %v4268_v33  ;;  %v4275_v8 = vsub.f32 %v11282_v43, %v4243_v55  ;;  %v9280_v33 = vld [vmem:[%s9827_s29 + $0x5c] sm:$0xff]  }
 0x783   : > { %v11385_v21 = vpop.eup %9053 }
 0x784   : > { %v4406_v11 = vsel %vm953_vm1, %v11385_v21, 0.0  ;;  %v11392_v7 = vpop.eup %9055  ;;  %v4328_v58 = vmul.f32 1.442695, %v4275_v8 }
 0x785   : > { %v4225_v41 = vpop.xlane.xlu1 %4224  ;;  %4407 = vadd.xlane.f32.xlu0 %v4406_v11  ;;  %4368 = vadd.xlane.f32.xlu1 %v4367_v26  ;;  %v4382_v32 = vsel %vm953_vm1, %v11392_v7, 0.0 }
 0x786   : > { %v4269_v4 = vsub.f32 %v11292_v20, %v4225_v41 }
 0x787   : > { %v11395_v51 = vpop.eup %9057 }
 0x788   : > { %v4316_v0 = vmul.f32 1.442695, %v4269_v4  ;;  %v4379_v56 = vsel %vm953_vm1, %v11395_v51, 0.0  ;;  %v11402_v10 = vpop.eup %9059 }
 0x789   : > { %4380 = vadd.xlane.f32.xlu0 %v4379_v56  ;;  %4383 = vadd.xlane.f32.xlu1 %v4382_v32  ;;  %v4403_v5 = vsel %vm953_vm1, %v11402_v10, 0.0 }
 0x78a   : > { %9069 = vpow2.f32 %v4316_v0 }
 0x78b   : > { %v11404_v20 = vpop.eup %9061  ;;  %9071 = vpow2.f32 %v4322_v63 }
 0x78c   : > { %v4394_v23 = vsel %vm972_vm2, %v11404_v20, 0.0  ;;  %v11411_v2 = vpop.eup %9063  ;;  %9073 = vpow2.f32 %v4332_v27 }
 0x78d   : > { %4404 = vadd.xlane.f32.xlu1 %v4403_v5  ;;  %4395 = vadd.xlane.f32.xlu0 %v4394_v23  ;;  %v4376_v35 = vsel %vm953_vm1, %v11411_v2, 0.0  ;;  %v11416_v11 = vpop.eup %9065  ;;  %9075 = vpow2.f32 %v4314_v34  ;;  %v9281_v5 = vld [vmem:[%s9827_s29 + $0x38] sm:$0xff]   ;;  %v4246_v23 = vpop.xlane.xlu0 %4245 }
 0x78e   : > { %v4397_v59 = vsel %vm953_vm1, %v11416_v11, 0.0  ;;  %v11420_v41 = vpop.eup %9067  ;;  %9077 = vpow2.f32 %v4328_v58  ;;  %v4276_v34 = vsub.f32 %v11289_v3, %v4246_v23  ;;  %v9284_v23 = vld [vmem:[%s9381_s27 + $0x2c] sm:$0xff]  }
 0x78f   : > { %v4385_v55 = vsel %vm953_vm1, %v11420_v41, 0.0 }
 0x790   : > { %v4330_v8 = vmul.f32 1.442695, %v4276_v34 }
 0x791   : > { %4377 = vadd.xlane.f32.xlu1 %v4376_v35 }
 0x792   : > { %9079 = vpow2.f32 %v4330_v8 }
 0x795   : > { %4398 = vadd.xlane.f32.xlu1 %v4397_v59  ;;  %v11453_v59 = vpop.permute.xlu0 %4764 }
 0x797   : > { %v11422_v26 = vpop.eup %9069 }
 0x798   : > { %v4391_v4 = vsel %vm953_vm1, %v11422_v26, 0.0  ;;  %v11426_v43 = vpop.eup %9071 }
 0x799   : > { %4392 = vadd.xlane.f32.xlu0 %v4391_v4  ;;  %4386 = vadd.xlane.f32.xlu1 %v4385_v55  ;;  %v4400_v63 = vsel %vm953_vm1, %v11426_v43, 0.0  ;;  %v11432_v0 = vpop.eup %9073  ;;  %v9282_v55 = vld [vmem:[%s9827_s29 + $0x54] sm:$0xff]  }
 0x79a   : > { %v4415_v56 = vsel %vm972_vm2, %v11432_v0, 0.0  ;;  %v11436_v38 = vpop.eup %9075 }
 0x79b   : > { %v4388_v32 = vsel %vm953_vm1, %v11436_v38, 0.0  ;;  %v11440_v24 = vpop.eup %9077 }
 0x79c   : > { %v4409_v27 = vsel %vm953_vm1, %v11440_v24, 0.0 }
 0x79d   : > { %4401 = vadd.xlane.f32.xlu1 %v4400_v63 }
 0x79f   : > { %v11449_v35 = vpop.eup %9079 }
 0x7a0   : > { %v4412_v58 = vsel %vm953_vm1, %v11449_v35, 0.0 }
 0x7a1   : > { %4416 = vadd.xlane.f32.xlu1 %v4415_v56  ;;  %v11457_v56 = vpop.permute.xlu1 %4672 }
 0x7a5   : > { %4389 = vadd.xlane.f32.xlu1 %v4388_v32 }
 0x7a9   : > { %4410 = vadd.xlane.f32.xlu1 %v4409_v27 }
 0x7af   : > { %4762 = vrot.lane.b32.xlu0 %v9280_v33, %s9325_s19 }
 0x7b3   : > { %5478 = vrot.lane.b32.xlu0 %v9284_v23, %s9328_s18  ;;  %v9289_v23 = vld [vmem:[%s9381_s27 + $0x8] sm:$0xff]  }
 0x7ba   : > { %4670 = vrot.lane.b32.xlu1 %v9281_v5, %s9325_s19  ;;  %v9283_v5 = vld [vmem:[%s9381_s27 + $0x18] ss:$0 sps:$4 sm:$0x11]  }
 0x7de   : > { %4413 = vadd.xlane.f32.xlu1 %v4412_v58  ;;  %v9285_v58 = vld [vmem:[%s9381_s27 + $0x34] ss:$0 sps:$4 sm:$0x11]  }
 0x7e5   : > { %v4342_v4 = vpop.xlane.xlu0 %4341 }
 0x7ea   : > { %v4363_v63 = vpop.xlane.xlu0 %4362 }
 0x7ee   : > { %v4336_v3 = vpop.xlane.xlu0 %4335 }
 0x7ef   : > { %4760 = vrot.lane.b32.xlu1 %v9282_v55, %s9325_s19  ;;  %v9286_v55 = vld [vmem:[%s9381_s27 + $0x24] sm:$0xff]   ;;  %s12373_s19 = scalar_lea.vmem %s12495_s6, %s8754_s15 }
 0x7f0   : > { %5476 = vrot.lane.b32.xlu0 %v9286_v55, %s9328_s18 }
 0x7f2   : > { %v4357_v33 = vpop.xlane.xlu0 %4356 }
 0x7f3   : > { %5376 = vrot.lane.b32.xlu1 %v9283_v5, %s9328_s18 }
 0x7f6   : > { %v4345_v32 = vpop.xlane.xlu1 %4344 }
 0x7f7   : > { %9081 = vrcp.f32 %v4345_v32  ;;  %5480 = vrot.lane.b32.xlu1 %v9285_v58, %s9328_s18 }
 0x7f8   : > { %9083 = vrcp.f32 %v4336_v3  ;;  %v9287_v3 = vld [vmem:[%s9381_s27 + $0x10] sm:$0xff]  }
 0x7f9   : > { %9085 = vrcp.f32 %v4342_v4  ;;  %v9288_v4 = vld [vmem:[%s9381_s27 + $0x1c] sm:$0xff]  }
 0x7fa   : > { %v4366_v27 = vpop.xlane.xlu1 %4365  ;;  %v4354_v8 = vpop.xlane.xlu0 %4353  ;;  %5474 = vrot.lane.b32.xlu0 %v9288_v4, %s9328_s18  ;;  %v9291_v4 = vld [vmem:[%s9381_s27] sm:$0xff]  }
 0x7fb   : > { %5374 = vrot.lane.b32.xlu1 %v9287_v3, %s9328_s18 }
 0x7fe   : > { %v4339_v34 = vpop.xlane.xlu1 %4338 }
 0x7ff   : > { %9087 = vrcp.f32 %v4339_v34  ;;  %5372 = vrot.lane.b32.xlu1 %v9289_v23, %s9328_s18  ;;  %v9290_v34 = vld [vmem:[%s9381_s27 + $0x50] ss:$0 sps:$4 sm:$0x11]  }
 0x800   : > { %9089 = vrcp.f32 %v4366_v27  ;;  %5584 = vrot.lane.b32.xlu0 %v9290_v34, %s9328_s18 }
 0x801   : > { %9091 = vrcp.f32 %v4357_v33 }
 0x802   : > { %9093 = vrcp.f32 %v4363_v63  ;;  %v4360_v32 = vpop.xlane.xlu1 %4359  ;;  %v4351_v5 = vpop.xlane.xlu0 %4350 }
 0x803   : > { %9095 = vrcp.f32 %v4360_v32  ;;  %5370 = vrot.lane.b32.xlu1 %v9291_v4, %s9328_s18 }
 0x804   : > { %9097 = vrcp.f32 %v4354_v8  ;;  %v9082_v33 = vpop.eup %9081  ;;  %5466 = vrot.lane.b32.xlu0 %v9417_v19, %s9328_s18 }
 0x805   : > { %9099 = vrcp.f32 %v4351_v5  ;;  %v9084_v63 = vpop.eup %9083  ;;  %v4449_v39 = vmul.f32 %v9082_v33, %v11335_v30 }
 0x806   : > { %v4375_v27 = vpop.xlane.xlu1 %4374  ;;  %v4372_v58 = vpop.xlane.xlu0 %4371  ;;  %v4446_v23 = vmul.f32 %v9084_v63, %v11323_v29 }
 0x807   : > { %v9086_v32 = vpop.eup %9085  ;;  %5362 = vrot.lane.b32.xlu1 %v9411_v16, %s9328_s18 }
 0x808   : > { %v4448_v22 = vmul.f32 %v9086_v32, %v11311_v12  ;;  %5468 = vrot.lane.b32.xlu0 %v9459_v45, %s9328_s18  ;;  %v9292_v45 = vld [vmem:[%s9381_s27 + $0x64] sm:$0xff]  }
 0x80a   : > { %v4348_v55 = vpop.xlane.xlu1 %4347  ;;  %v4475_v33 = vpack.c.bf16 %v4449_v39, %v4448_v22 }
 0x80b   : > { %9101 = vrcp.f32 %v4348_v55  ;;  %5364 = vrot.lane.b32.xlu1 %v9457_v42, %s9328_s18 }
 0x80c   : > { %v9088_v3 = vpop.eup %9087  ;;  %9103 = vrcp.f32 %v4375_v27  ;;  %5686 = vrot.lane.b32.xlu0 %v9292_v45, %s9328_s18 }
 0x80d   : > { %v9090_v8 = vpop.eup %9089  ;;  %9105 = vrcp.f32 %v4372_v58  ;;  %v4447_v5 = vmul.f32 %v9088_v3, %v11351_v31  ;;  %v9293_v58 = vld [vmem:[%s9381_s27 + $0x6c] ss:$0 sps:$4 sm:$0x11]  }
 0x80e   : > { %v9092_v34 = vpop.eup %9091  ;;  %v4369_v55 = vpop.xlane.xlu1 %4368  ;;  %v4456_v4 = vmul.f32 %v9090_v8, %v11342_v44 }
 0x80f   : > { %v9094_v54 = vpop.eup %9093  ;;  %9107 = vrcp.f32 %v4369_v55  ;;  %v4474_v30 = vpack.c.bf16 %v4447_v5, %v4446_v23  ;;  %v11484_v49 = vpop.xlane.xlu0 %4407  ;;  %v4453_v19 = vmul.f32 %v9092_v34, %v11330_v57  ;;  %5688 = vrot.lane.b32.xlu1 %v9293_v58, %s9328_s18  ;;  %v9295_v34 = vld [vmem:[%s9381_s27 + $0x48] sm:$0xff]  }
 0x810   : > { %v9096_v27 = vpop.eup %9095  ;;  %v4455_v29 = vmul.f32 %v9094_v54, %v11318_v18 }
 0x811   : > { %8321 = vmatprep.mubr.msk.bf16.mxu0 %vm953_vm1, %v4474_v30  ;;  %v4454_v12 = vmul.f32 %v9096_v27, %v11357_v14  ;;  %v9098_v16 = vpop.eup %9097  ;;  %v9296_v30 = vld [vmem:[%s9381_s27 + $0x40] sm:$0xff]  }
 0x812   : > { %v4384_v22 = vpop.xlane.xlu1 %4383  ;;  %8322 = vmatmul.mubr.msk.bf16.vlgmr.msra.gmra.mxu0 %vm953_vm1, %v4475_v33  ;;  %v4479_v44 = vpack.c.bf16 %v4456_v4, %v4455_v29  ;;  %v9100_v54 = vpop.eup %9099  ;;  %v4452_v42 = vmul.f32 %v9098_v16, %v11344_v50  ;;  %v9297_v33 = vld [vmem:[%s9381_s27 + $0x54] sm:$0xff]  }
 0x813   : > { %8346 = vmatpush3.bf16.msra.mxu0 %v11055_v47  ;;  %v4478_v39 = vpack.c.bf16 %v4454_v12, %v4453_v19  ;;  %v4381_v18 = vpop.xlane.xlu0 %4380  ;;  %v4451_v63 = vmul.f32 %v9100_v54, %v11360_v61  ;;  %5582 = vrot.lane.b32.xlu1 %v9295_v34, %s9328_s18  ;;  %v9298_v29 = vld [vmem:[%s9381_s27 + $0x38] sm:$0xff]   ;;  %v9308_v34 = vld [vmem:[%s9827_s29 + $0x50] ss:$0 sps:$4 sm:$0x11]  }
 0x814   : > { %8347 = vmatprep.subr.bf16.mxu0 %v11305_v60  ;;  %9109 = vrcp.f32 %v4381_v18 }
 0x815   : > { %8337 = vmatprep.mubr.msk.bf16.mxu1 %vm953_vm1, %v4478_v39 }
 0x816   : > { %v11502_v57 = vpop.xlane.xlu1 %4404  ;;  %8338 = vmatmul.mubr.msk.bf16.vlgmr.msra.gmra.mxu1 %vm953_vm1, %v4479_v44 }
 0x817   : > { %8348 = vmatpush3.bf16.msra.mxu0 %v11305_v60  ;;  %8362 = vmatpush3.bf16.msra.mxu1 %v11065_v48  ;;  %v9294_v60 = vld [vmem:[%s9381_s27 + $0x5c] sm:$0xff]   ;;  %v4396_v8 = vpop.xlane.xlu0 %4395 }
 0x818   : > { %v9102_v47 = vpop.eup %9101  ;;  %8349 = vmatprep.subr.bf16.mxu0 %v11457_v56  ;;  %8363 = vmatprep.subr.bf16.mxu1 %v11453_v59 }
 0x819   : > { %v9104_v31 = vpop.eup %9103  ;;  %v4450_v14 = vmul.f32 %v9102_v47, %v11377_v46  ;;  %5684 = vrot.lane.b32.xlu0 %v9294_v60, %s9328_s18  ;;  %v4477_v46 = vpack.c.bf16 %v4452_v42, %v4452_v42  ;;  %5580 = vrot.lane.b32.xlu1 %v9296_v30, %s9328_s18 }
 0x81a   : > { %v9106_v48 = vpop.eup %9105  ;;  %v4378_v32 = vpop.xlane.xlu1 %4377  ;;  %v4459_v61 = vmul.f32 %v9104_v31, %v11369_v40 }
 0x81b   : > { %9111 = vrcp.f32 %v4378_v32  ;;  %8350 = vmatpush3.bf16.msra.mxu0 %v11457_v56  ;;  %8364 = vmatpush3.bf16.msra.mxu1 %v11453_v59  ;;  %v4476_v50 = vpack.c.bf16 %v4451_v63, %v4450_v14  ;;  %v4458_v5 = vmul.f32 %v9106_v48, %v11364_v9  ;;  %v12663_v14 = vld [vmem:[#allocation3_spill] sm:$0xff]  ;;  %v9299_v63 = vld [vmem:[%s9827_s29 + $0x18] ss:$0 sps:$4 sm:$0x11]   ;;  %v12664_v32 = vld [vmem:[#allocation4_spill] sm:$0xff] }
 0x81c   : > { %v9108_v3 = vpop.eup %9107  ;;  %v4481_v56 = vpack.c.bf16 %v4459_v61, %v4459_v61  ;;  %v9301_v61 = vld [vmem:[%s9827_s29 + $0x34] ss:$0 sps:$4 sm:$0x11]  }
 0x81d   : > { %8325 = vmatprep.mubr.msk.bf16.mxu0 %vm953_vm1, %v4476_v50  ;;  %v4457_v23 = vmul.f32 %v9108_v3, %v11383_v13  ;;  %5368 = vrot.lane.b32.xlu0 %v9493_v62, %s9328_s18  ;;  %v9300_v50 = vld [vmem:[%s9827_s29 + $0x10] sm:$0xff]  }
 0x81e   : > { %v4399_v55 = vpop.xlane.xlu1 %4398  ;;  %8326 = vmatmul.mubr.msk.bf16.gmra.mxu0 %vm953_vm1, %v4477_v46  ;;  %5366 = vrot.lane.b32.xlu1 %v9473_v52, %s9328_s18 }
 0x81f   : > { %v4480_v59 = vpack.c.bf16 %v4458_v5, %v4457_v23  ;;  %9113 = vrcp.f32 %v4399_v55  ;;  %v9306_v23 = vld [vmem:[%s9827_s29 + $0x48] sm:$0xff]   ;;  %v9307_v5 = vld [vmem:[%s9827_s29] sm:$0xff]   ;;  %v454_v55 = vld [vmem:[%s12493_s4 + $0x10] sm:$0xff] }
 0x821   : > { %8341 = vmatprep.mubr.msk.bf16.mxu1 %vm953_vm1, %v4480_v59  ;;  %5472 = vrot.lane.b32.xlu0 %v9495_v1, %s9328_s18  ;;  %v9110_v62 = vpop.eup %9109  ;;  %v9309_v59 = vld [vmem:[%s9827_s29 + $0x6c] ss:$0 sps:$4 sm:$0x11]  }
 0x822   : > { %v4393_v40 = vpop.xlane.xlu0 %4392  ;;  %v4387_v13 = vpop.xlane.xlu1 %4386  ;;  %8342 = vmatmul.mubr.msk.bf16.gmra.mxu1 %vm953_vm1, %v4481_v56  ;;  %v4461_v1 = vmul.f32 %v9110_v62, %v11395_v51  ;;  %5470 = vrot.lane.b32.xlu1 %v9477_v53, %s9328_s18 }
 0x823   : > { %9115 = vrcp.f32 %v4387_v13 }
 0x824   : > { %9117 = vrcp.f32 %v4384_v22 }
 0x825   : > { %5682 = vrot.lane.b32.xlu0 %v9297_v33, %s9328_s18 }
 0x826   : > { %v4763_v9 = vpop.permute.xlu0 %4762  ;;  %v4402_v27 = vpop.xlane.xlu1 %4401  ;;  %5578 = vrot.lane.b32.xlu1 %v9298_v29, %s9328_s18 }
 0x827   : > { %8365 = vmatprep.subr.bf16.mxu1 %v4763_v9  ;;  %9119 = vrcp.f32 %v4402_v27 }
 0x828   : > { %8366 = vmatpush3.bf16.msra.mxu1 %v4763_v9  ;;  %v9112_v4 = vpop.eup %9111  ;;  %9121 = vrcp.f32 %v4396_v8  ;;  %v9305_v8 = vld [vmem:[%s9827_s29 + $0x8] sm:$0xff]  }
 0x829   : > { %v4460_v19 = vmul.f32 %v9112_v4, %v11411_v2  ;;  %5572 = vrot.lane.b32.xlu0 %v9549_v36, %s9328_s18  ;;  %9123 = vrcp.f32 %v4393_v40  ;;  %v12659_v36 = vld [vmem:[#allocation5_spill] sm:$0xff] }
 0x82a   : > { %v11541_v12 = vpop.xlane.xlu1 %4416  ;;  %5570 = vrot.lane.b32.xlu1 %v9507_v6, %s9328_s18  ;;  %v12661_v6 = vld [vmem:[#allocation6_spill] sm:$0xff] }
 0x82b   : > { %v4482_v52 = vpack.c.bf16 %v4461_v1, %v4460_v19 }
 0x82c   : > { %v9114_v51 = vpop.eup %9113 }
 0x82d   : > { %8353 = vmatprep.mubr.msk.bf16.mxu0 %vm953_vm1, %v4482_v52  ;;  %5676 = vrot.lane.b32.xlu0 %v9551_v37, %s9328_s18  ;;  %v4467_v45 = vmul.f32 %v9114_v51, %v11416_v11  ;;  %v12660_v37 = vld [vmem:[#allocation2_spill] sm:$0xff]  ;;  %v12662_v11 = vmov 0.0  }
 0x82e   : > { %v4390_v22 = vpop.xlane.xlu1 %4389  ;;  %5674 = vrot.lane.b32.xlu1 %v12660_v37, %s9328_s18 }
 0x82f   : > { %9125 = vrcp.f32 %v4390_v22 }
 0x830   : > { %v9116_v53 = vpop.eup %9115  ;;  %9127 = vrcp.f32 %v11502_v57 }
 0x831   : > { %5576 = vrot.lane.b32.xlu0 %v12659_v36, %s9328_s18  ;;  %v9118_v39 = vpop.eup %9117  ;;  %v4463_v16 = vmul.f32 %v9116_v53, %v11420_v41  ;;  %9129 = vrcp.f32 %v11484_v49 }
 0x832   : > { %v4411_v2 = vpop.xlane.xlu1 %4410  ;;  %v4462_v47 = vmul.f32 %v9118_v39, %v11392_v7  ;;  %5574 = vrot.lane.b32.xlu1 %v12663_v14, %s9328_s18  ;;  %9131 = vrcp.f32 %v11541_v12 }
 0x833   : > { %9133 = vrcp.f32 %v4411_v2 }
 0x834   : > { %v9120_v44 = vpop.eup %9119  ;;  %v4483_v41 = vpack.c.bf16 %v4463_v16, %v4462_v47 }
 0x835   : > { %v4468_v54 = vmul.f32 %v9120_v44, %v11426_v43  ;;  %5680 = vrot.lane.b32.xlu0 %v12661_v6, %s9328_s18  ;;  %v9122_v31 = vpop.eup %9121 }
 0x836   : > { %v4671_v18 = vpop.permute.xlu1 %4670  ;;  %v9124_v43 = vpop.eup %9123  ;;  %v4466_v48 = vmul.f32 %v9122_v31, %v11404_v20  ;;  %5678 = vrot.lane.b32.xlu1 %v12664_v32, %s9328_s18  ;;  %v9303_v20 = vld [vmem:[%s9827_s29 + $0x2c] sm:$0xff]  }
 0x837   : > { %8351 = vmatprep.subr.bf16.mxu0 %v4671_v18  ;;  %v4486_v42 = vpack.c.bf16 %v4468_v54, %v4467_v45  ;;  %v4465_v60 = vmul.f32 %v9124_v43, %v11422_v26  ;;  %v9302_v26 = vld [vmem:[%s9827_s29 + $0x24] sm:$0xff]   ;;  %v11664_v31 = vpop.permute.xlu0 %5478 }
 0x838   : > { %8352 = vmatpush3.bf16.msra.mxu0 %v4671_v18  ;;  %v4485_v46 = vpack.c.bf16 %v4466_v48, %v4466_v48 }
 0x839   : > { %8369 = vmatprep.mubr.msk.bf16.mxu1 %vm953_vm1, %v4486_v42  ;;  %8377 = vmatprep.subr.mxu0 %v12662_v11 }
 0x83a   : > { %6108 = vrot.lane.b32.xlu0 %v9299_v63, %s9328_s18  ;;  %6198 = vrot.lane.b32.xlu1 %v9301_v61, %s9328_s18 }
 0x83b   : > { %8354 = vmatmul.mubr.msk.bf16.vlgmr.msra.gmra.mxu0 %vm953_vm1, %v4483_v41 }
 0x83c   : > { %v9126_v7 = vpop.eup %9125  ;;  %8378 = vmatpush3.msra.mxu0 %v454_v55 }
 0x83d   : > { %v4464_v58 = vmul.f32 %v9126_v7, %v11436_v38  ;;  %v9304_v38 = vld [vmem:[%s9827_s29 + $0x1c] sm:$0xff]   ;;  %8423 = vmatprep.subr.mxu0 %v12662_v11  ;;  %v9128_v56 = vpop.eup %9127 }
 0x83e   : > { %6106 = vrot.lane.b32.xlu0 %v9300_v50, %s9328_s18  ;;  %6196 = vrot.lane.b32.xlu1 %v9303_v20, %s9328_s18  ;;  %v9130_v30 = vpop.eup %9129  ;;  %v4469_v13 = vmul.f32 %v9128_v56, %v11402_v10 }
 0x83f   : > { %v4484_v3 = vpack.c.bf16 %v4465_v60, %v4464_v58  ;;  %v4470_v62 = vmul.f32 %v9130_v30, %v11385_v21  ;;  %v9132_v49 = vpop.eup %9131 }
 0x840   : > { %v9134_v57 = vpop.eup %9133  ;;  %v4473_v4 = vmul.f32 %v9132_v49, %v11432_v0 }
 0x841   : > { %8357 = vmatprep.mubr.msk.bf16.mxu0 %vm953_vm1, %v4484_v3  ;;  %v4487_v27 = vpack.c.bf16 %v4470_v62, %v4469_v13  ;;  %v4471_v10 = vmul.f32 %v9134_v57, %v11440_v24 }
 0x842   : > { %6194 = vrot.lane.b32.xlu0 %v9302_v26, %s9328_s18  ;;  %6104 = vrot.lane.b32.xlu1 %v9305_v8, %s9328_s18  ;;  %v4489_v1 = vpack.c.bf16 %v4473_v4, %v4473_v4 }
 0x843   : > { %8358 = vmatmul.mubr.msk.bf16.gmra.mxu0 %vm953_vm1, %v4485_v46 }
 0x844   : > { %8379 = vmatprep.mubr.msk.f32.mxu0 %vm9327_vm4, %v12662_v11 }
 0x846   : > { %6192 = vrot.lane.b32.xlu0 %v9304_v38, %s9328_s18  ;;  %6102 = vrot.lane.b32.xlu1 %v9307_v5, %s9328_s18 }
 0x84a   : > { %6286 = vrot.lane.b32.xlu0 %v9306_v23, %s9328_s18  ;;  %6288 = vrot.lane.b32.xlu1 %v9308_v34, %s9328_s18 }
 0x84e   : > { %6378 = vrot.lane.b32.xlu1 %v9309_v59, %s9328_s18 }
 0x862   : > { %v11666_v43 = vpop.permute.xlu0 %5476 }
 0x867   : > { %v4414_v40 = vpop.xlane.xlu1 %4413 }
 0x868   : > { %9135 = vrcp.f32 %v4414_v40 }
 0x86b   : > { %v4761_v9 = vpop.permute.xlu1 %4760 }
 0x86c   : > { %8367 = vmatprep.subr.bf16.mxu1 %v4761_v9  ;;  %v11672_v48 = vpop.permute.xlu0 %5474 }
 0x86d   : > { %8368 = vmatpush3.bf16.msra.mxu1 %v4761_v9 }
 0x86e   : > { %8400 = vmatprep.subr.mxu1 %v12662_v11 }
 0x86f   : > { %v5377_v29 = vpop.permute.xlu1 %5376 }
 0x870   : > { %8370 = vmatmul.mubr.msk.bf16.vlgmr.msra.gmra.mxu1 %vm953_vm1, %v4487_v27  ;;  %v5400_v63 = vsel %vm492_vm0, %v5377_v29, 0 }
 0x871   : > { %8401 = vmatpush3.msra.mxu1 %v454_v55 }
 0x872   : > { %8446 = vmatprep.subr.mxu1 %v12662_v11  ;;  %v5585_v26 = vpop.permute.xlu0 %5584 }
 0x873   : > { %v11627_v53 = vpop.permute.xlu1 %5480  ;;  %v5608_v13 = vsel %vm492_vm0, %v5585_v26, 0 }
 0x875   : > { %v9136_v33 = vpop.eup %9135 }
 0x876   : > { %v4472_v19 = vmul.f32 %v9136_v33, %v11449_v35  ;;  %v11688_v8 = vpop.permute.xlu0 %5466 }
 0x877   : > { %v5375_v18 = vpop.permute.xlu1 %5374 }
 0x878   : > { %v4488_v21 = vpack.c.bf16 %v4472_v19, %v4471_v10  ;;  %v5397_v46 = vsel %vm492_vm0, %v5375_v18, 0  ;;  %v5504_v19 = vsel %vm492_vm0, %v11627_v53, 0 }
 0x87a   : > { %8373 = vmatprep.mubr.msk.bf16.mxu1 %vm953_vm1, %v4488_v21 }
 0x87b   : > { %8374 = vmatmul.mubr.msk.bf16.gmra.mxu1 %vm953_vm1, %v4489_v1  ;;  %v5373_v47 = vpop.permute.xlu1 %5372 }
 0x87c   : > { %8402 = vmatprep.mubr.msk.f32.mxu1 %vm9327_vm4, %v12662_v11  ;;  %v5394_v23 = vsel %vm492_vm0, %v5373_v47, 0 }
 0x87f   : > { %v5371_v42 = vpop.permute.xlu1 %5370 }
 0x880   : > { %v5391_v59 = vsel %vm492_vm0, %v5371_v42, 0 }
 0x883   : > { %v5363_v41 = vpop.permute.xlu1 %5362 }
 0x887   : > { %v5365_v58 = vpop.permute.xlu1 %5364 }
 0x88b   : > { %v11676_v50 = vpop.permute.xlu1 %5688 }
 0x88f   : > { %v5583_v38 = vpop.permute.xlu1 %5582 }
 0x890   : > { %v5605_v49 = vsel %vm492_vm0, %v5583_v38, 0 }
 0x893   : > { %v5581_v5 = vpop.permute.xlu1 %5580 }
 0x894   : > { %v5602_v33 = vsel %vm492_vm0, %v5581_v5, 0 }
 0x897   : > { %v5367_v56 = vpop.permute.xlu1 %5366 }
 0x89b   : > { %v11706_v30 = vpop.permute.xlu1 %5470 }
 0x89f   : > { %v5579_v62 = vpop.permute.xlu1 %5578 }
 0x8a3   : > { %v5571_v57 = vpop.permute.xlu1 %5570 }
 0x8d2   : > { %v8323_v12 = vpop.f32.mrf.mxu0 }
 0x8d4   : > { %v4550_v52 = vpop.f32.mrf.mxu0 }
 0x8d5   : > { %8380 = vmatmul.mubr.msk.f32.vlgmr.msra.gmra.mxu0 %vm492_vm0, %v4550_v52 }
 0x8d6   : > { %v8324_v22 = vpop.f32.mrf.mxu0  ;;  %v8339_v0 = vpop.f32.mrf.mxu1  ;;  %8382 = vmatprep.mubr.msk.f32.mxu0 %vm9327_vm4, %v12662_v11  ;;  %8424 = vmatpush3.msra.mxu0 %v454_v55 }
 0x8d7   : > { %8737 = vmatprep.subr.msk.bf16.mxu0 %vm492_vm0, %v5377_v29 }
 0x8d8   : > { %v4553_v24 = vpop.f32.mrf.mxu0  ;;  %v4640_v35 = vpop.f32.mrf.mxu1 }
 0x8d9   : > { %8383 = vmatmul.mubr.msk.f32.gmra.mxu0 %vm492_vm0, %v4553_v24  ;;  %8403 = vmatmul.mubr.msk.f32.vlgmr.msra.gmra.mxu1 %vm492_vm0, %v4640_v35 }
 0x8da   : > { %v8340_v51 = vpop.f32.mrf.mxu1  ;;  %8385 = vmatprep.mubr.msk.f32.mxu0 %vm9327_vm4, %v12662_v11  ;;  %8405 = vmatprep.mubr.msk.f32.mxu1 %vm9327_vm4, %v12662_v11 }
 0x8db   : > { %8447 = vmatpush3.msra.mxu1 %v454_v55  ;;  %v11695_v55 = vpop.permute.xlu0 %5468 }
 0x8dc   : > { %v4643_v2 = vpop.f32.mrf.mxu1  ;;  %8741 = vmatprep.subr.msk.bf16.mxu1 %vm492_vm0, %v11627_v53 }
 0x8dd   : > { %8386 = vmatmul.mubr.msk.f32.gmra.mxu0 %vm492_vm0, %v8323_v12  ;;  %8406 = vmatmul.mubr.msk.f32.gmra.mxu1 %vm492_vm0, %v4643_v2  ;;  %v5599_v12 = vsel %vm492_vm0, %v5579_v62, 0 }
 0x8de   : > { %v8327_v36 = vpop.f32.mrf.mxu0  ;;  %8388 = vmatprep.mubr.msk.f32.mxu0 %vm9327_vm4, %v12662_v11  ;;  %8408 = vmatprep.mubr.msk.f32.mxu1 %vm9327_vm4, %v12662_v11 }
 0x8df   : > { %v11703_v40 = vpop.permute.xlu0 %5686 }
 0x8e0   : > { %v4566_v39 = vpop.f32.mrf.mxu0 }
 0x8e1   : > { %8389 = vmatmul.mubr.msk.f32.gmra.mxu0 %vm492_vm0, %v8324_v22  ;;  %8409 = vmatmul.mubr.msk.f32.gmra.mxu1 %vm492_vm0, %v8339_v0  ;;  %v5675_v22 = vpop.permute.xlu1 %5674  ;;  %v5501_v0 = vsel %vm492_vm0, %v11664_v31, 0 }
 0x8e2   : > { %v8328_v44 = vpop.f32.mrf.mxu0  ;;  %v8343_v16 = vpop.f32.mrf.mxu1  ;;  %8391 = vmatprep.mubr.msk.f32.mxu0 %vm9327_vm4, %v12662_v11  ;;  %8411 = vmatprep.mubr.msk.f32.mxu1 %vm9327_vm4, %v12662_v11 }
 0x8e3   : > { %v11709_v9 = vpop.permute.xlu0 %5684 }
 0x8e4   : > { %v4656_v45 = vpop.f32.mrf.mxu1  ;;  %v4569_v37 = vpop.f32.mrf.mxu0 }
 0x8e5   : > { %8392 = vmatmul.mubr.msk.f32.gmra.mxu0 %vm492_vm0, %v4566_v39  ;;  %8412 = vmatmul.mubr.msk.f32.gmra.mxu1 %vm492_vm0, %v8340_v51  ;;  %v5575_v51 = vpop.permute.xlu1 %5574  ;;  %v5498_v39 = vsel %vm492_vm0, %v11666_v43, 0 }
 0x8e6   : > { %v8344_v54 = vpop.f32.mrf.mxu1  ;;  %8394 = vmatprep.mubr.msk.f32.mxu0 %vm9327_vm4, %v12662_v11  ;;  %8414 = vmatprep.mubr.msk.f32.mxu1 %vm9327_vm4, %v12662_v11 }
 0x8e7   : > { %v5369_v27 = vpop.permute.xlu0 %5368  ;;  %v5712_v54 = vsel %vm492_vm0, %v11676_v50, 0 }
 0x8e8   : > { %v4659_v6 = vpop.f32.mrf.mxu1 }
 0x8e9   : > { %8395 = vmatmul.mubr.msk.f32.gmra.mxu0 %vm492_vm0, %v4569_v37  ;;  %8415 = vmatmul.mubr.msk.f32.gmra.mxu1 %vm492_vm0, %v4656_v45  ;;  %v5495_v45 = vsel %vm492_vm0, %v11672_v48, 0  ;;  %v5709_v37 = vsel %vm492_vm0, %v11703_v40, 0 }
 0x8ea   : > { %8397 = vmatprep.mubr.msk.f32.mxu0 %vm9327_vm4, %v12662_v11  ;;  %8417 = vmatprep.mubr.msk.f32.mxu1 %vm9327_vm4, %v12662_v11 }
 0x8eb   : > { %v5473_v4 = vpop.permute.xlu0 %5472 }
 0x8ed   : > { %8398 = vmatmul.mubr.msk.f32.gmra.mxu0 %vm492_vm0, %v8327_v36  ;;  %8418 = vmatmul.mubr.msk.f32.gmra.mxu1 %vm492_vm0, %v4659_v6 }
 0x8ee   : > { %8420 = vmatprep.mubr.msk.f32.mxu1 %vm9327_vm4, %v12662_v11  ;;  %8425 = vmatprep.mubr.msk.f32.mxu0 %vm9327_vm4, %v12662_v11 }
 0x8ef   : > { %v5683_v52 = vpop.permute.xlu0 %5682 }
 0x8f0   : > { %v5703_v6 = vsel %vm492_vm0, %v5683_v52, 0 }
 0x8f1   : > { %8421 = vmatmul.mubr.msk.f32.gmra.mxu1 %vm492_vm0, %v8343_v16 }
 0x8f2   : > { %8448 = vmatprep.mubr.msk.f32.mxu1 %vm9327_vm4, %v12662_v11 }
 0x8f3   : > { %v5573_v35 = vpop.permute.xlu0 %5572 }
 0x8f7   : > { %v5677_v36 = vpop.permute.xlu0 %5676 }
 0x8fb   : > { %v8355_v14 = vpop.f32.mrf.mxu0  ;;  %v5577_v44 = vpop.permute.xlu0 %5576 }
 0x8fd   : > { %v4730_v7 = vpop.f32.mrf.mxu0 }
 0x8fe   : > { %8426 = vmatmul.mubr.msk.f32.vlgmr.msra.gmra.mxu0 %vm492_vm0, %v4730_v7 }
 0x8ff   : > { %8470 = vmatpush3.bf16.xpose.msra.mxu0 %v5400_v63  ;;  %v8356_v60 = vpop.f32.mrf.mxu0  ;;  %8428 = vmatprep.mubr.msk.f32.mxu0 %vm9327_vm4, %v12662_v11 }
 0x900   : > { %8738 = vmatprep.subr.msk.bf16.mxu0 %vm492_vm0, %v5375_v18  ;;  %v5706_v18 = vsel %vm492_vm0, %v11709_v9, 0 }
 0x901   : > { %v4733_v32 = vpop.f32.mrf.mxu0 }
 0x902   : > { %8429 = vmatmul.mubr.msk.f32.gmra.mxu0 %vm492_vm0, %v4733_v32 }
 0x903   : > { %v8359_v3 = vpop.f32.mrf.mxu0  ;;  %8431 = vmatprep.mubr.msk.f32.mxu0 %vm9327_vm4, %v12662_v11 }
 0x905   : > { %v4746_v61 = vpop.f32.mrf.mxu0 }
 0x906   : > { %8432 = vmatmul.mubr.msk.f32.gmra.mxu0 %vm492_vm0, %v8355_v14 }
 0x907   : > { %8472 = vmatpush3.bf16.xpose.msra.mxu0 %v5397_v46  ;;  %v8360_v20 = vpop.f32.mrf.mxu0  ;;  %8434 = vmatprep.mubr.msk.f32.mxu0 %vm9327_vm4, %v12662_v11  ;;  %v12665_v46 = vld [vmem:[#allocation21_spill] sm:$0xff] }
 0x908   : > { %8739 = vmatprep.subr.msk.bf16.mxu0 %vm492_vm0, %v5373_v47  ;;  %v5679_v47 = vpop.permute.xlu1 %5678 }
 0x909   : > { %v4749_v34 = vpop.f32.mrf.mxu0 }
 0x90a   : > { %8435 = vmatmul.mubr.msk.f32.gmra.mxu0 %vm492_vm0, %v8356_v60 }
 0x90b   : > { %8437 = vmatprep.mubr.msk.f32.mxu0 %vm9327_vm4, %v12662_v11 }
 0x90e   : > { %8438 = vmatmul.mubr.msk.f32.gmra.mxu0 %vm492_vm0, %v4746_v61 }
 0x90f   : > { %8474 = vmatpush3.bf16.xpose.msra.mxu0 %v5394_v23  ;;  %8440 = vmatprep.mubr.msk.f32.mxu0 %vm9327_vm4, %v12662_v11  ;;  %v12667_v23 = vld [vmem:[#allocation10_spill] sm:$0xff] }
 0x910   : > { %8740 = vmatprep.subr.msk.bf16.mxu0 %vm492_vm0, %v5371_v42  ;;  %v5681_v42 = vpop.permute.xlu0 %5680 }
 0x912   : > { %8441 = vmatmul.mubr.msk.f32.gmra.mxu0 %vm492_vm0, %v4749_v34 }
 0x913   : > { %8443 = vmatprep.mubr.msk.f32.mxu0 %vm9327_vm4, %v12662_v11 }
 0x916   : > { %8444 = vmatmul.mubr.msk.f32.gmra.mxu0 %vm492_vm0, %v8359_v3 }
 0x917   : > { %8476 = vmatpush3.bf16.xpose.msra.mxu0 %v5391_v59  ;;  %8477 = vmatprep.mubr.msk.bf16.mxu0 %vm492_vm0, %v5363_v41 }
 0x918   : > { %8745 = vmatprep.subr.msk.bf16.mxu0 %vm492_vm0, %v5585_v26 }
 0x91e   : > { %8478 = vmatmul.mubr.msk.bf16.vlgmr.msra.gmra.mxu0 %vm492_vm0, %v5365_v58 }
 0x91f   : > { %8502 = vmatpush3.bf16.xpose.msra.mxu0 %v5608_v13  ;;  %8481 = vmatprep.mubr.msk.bf16.mxu0 %vm492_vm0, %v5367_v56  ;;  %v12668_v56 = vld [vmem:[#allocation15_spill] sm:$0xff] }
 0x920   : > { %8746 = vmatprep.subr.msk.bf16.mxu0 %vm492_vm0, %v5583_v38 }
 0x926   : > { %8482 = vmatmul.mubr.msk.bf16.gmra.mxu0 %vm492_vm0, %v5369_v27 }
 0x927   : > { %8504 = vmatpush3.bf16.xpose.msra.mxu0 %v5605_v49  ;;  %8509 = vmatprep.mubr.msk.bf16.mxu0 %vm492_vm0, %v5571_v57  ;;  %v12670_v49 = vld [vmem:[#allocation7_spill] sm:$0xff] }
 0x928   : > { %8747 = vmatprep.subr.msk.bf16.mxu0 %vm492_vm0, %v5581_v5 }
 0x92f   : > { %8506 = vmatpush3.bf16.xpose.msra.mxu0 %v5602_v33  ;;  %v12671_v33 = vld [vmem:[#allocation23_spill] sm:$0xff] }
 0x930   : > { %v8371_v10 = vpop.f32.mrf.mxu1  ;;  %8748 = vmatprep.subr.msk.bf16.mxu0 %vm492_vm0, %v5579_v62 }
 0x932   : > { %v4820_v21 = vpop.f32.mrf.mxu1 }
 0x933   : > { %8449 = vmatmul.mubr.msk.f32.vlgmr.msra.gmra.mxu1 %vm492_vm0, %v4820_v21 }
 0x934   : > { %8486 = vmatpush3.bf16.xpose.msra.mxu1 %v5504_v19  ;;  %v8372_v1 = vpop.f32.mrf.mxu1  ;;  %8451 = vmatprep.mubr.msk.f32.mxu1 %vm9327_vm4, %v12662_v11 }
 0x935   : > { %8742 = vmatprep.subr.msk.bf16.mxu1 %vm492_vm0, %v11664_v31 }
 0x936   : > { %v4823_v29 = vpop.f32.mrf.mxu1 }
 0x937   : > { %8452 = vmatmul.mubr.msk.f32.gmra.mxu1 %vm492_vm0, %v4823_v29  ;;  %8508 = vmatpush3.bf16.xpose.msra.mxu0 %v5599_v12  ;;  %v12672_v12 = vld [vmem:[#allocation20_spill] sm:$0xff] }
 0x938   : > { %8454 = vmatprep.mubr.msk.f32.mxu1 %vm9327_vm4, %v12662_v11  ;;  %v12674_v29 = vld [vmem:[#allocation8_spill] sm:$0xff] }
 0x93b   : > { %v8375_v24 = vpop.f32.mrf.mxu1  ;;  %8455 = vmatmul.mubr.msk.f32.gmra.mxu1 %vm492_vm0, %v8371_v10 }
 0x93c   : > { %8488 = vmatpush3.bf16.xpose.msra.mxu1 %v5501_v0  ;;  %8457 = vmatprep.mubr.msk.f32.mxu1 %vm9327_vm4, %v12662_v11 }
 0x93d   : > { %v4836_v53 = vpop.f32.mrf.mxu1  ;;  %8743 = vmatprep.subr.msk.bf16.mxu1 %vm492_vm0, %v11666_v43 }
 0x93e   : > { %8510 = vmatmul.mubr.msk.bf16.vlgmr.msra.gmra.mxu0 %vm492_vm0, %v5573_v35 }
 0x93f   : > { %v8376_v2 = vpop.f32.mrf.mxu1  ;;  %8458 = vmatmul.mubr.msk.f32.gmra.mxu1 %vm492_vm0, %v8372_v1  ;;  %8513 = vmatprep.mubr.msk.bf16.mxu0 %vm492_vm0, %v5575_v51  ;;  %v12676_v51 = vld [vmem:[#allocation17_spill] sm:$0xff] }
 0x940   : > { %8460 = vmatprep.mubr.msk.f32.mxu1 %vm9327_vm4, %v12662_v11 }
 0x941   : > { %v4839_v16 = vpop.f32.mrf.mxu1 }
 0x943   : > { %8461 = vmatmul.mubr.msk.f32.gmra.mxu1 %vm492_vm0, %v4836_v53 }
 0x944   : > { %8490 = vmatpush3.bf16.xpose.msra.mxu1 %v5498_v39  ;;  %8463 = vmatprep.mubr.msk.f32.mxu1 %vm9327_vm4, %v12662_v11  ;;  %v12678_v39 = vld [vmem:[#allocation14_spill] sm:$0xff] }
 0x945   : > { %8744 = vmatprep.subr.msk.bf16.mxu1 %vm492_vm0, %v11672_v48 }
 0x946   : > { %8514 = vmatmul.mubr.msk.bf16.gmra.mxu0 %vm492_vm0, %v5577_v44 }
 0x947   : > { %8464 = vmatmul.mubr.msk.f32.gmra.mxu1 %vm492_vm0, %v4839_v16 }
 0x948   : > { %8466 = vmatprep.mubr.msk.f32.mxu1 %vm9327_vm4, %v12662_v11 }
 0x94b   : > { %8467 = vmatmul.mubr.msk.f32.gmra.mxu1 %vm492_vm0, %v8375_v24 }
 0x94c   : > { %8492 = vmatpush3.bf16.xpose.msra.mxu1 %v5495_v45  ;;  %8493 = vmatprep.mubr.msk.bf16.mxu1 %vm492_vm0, %v11688_v8  ;;  %v12666_v8 = vld [vmem:[#allocation18_spill] sm:$0xff] }
 0x94d   : > { %8749 = vmatprep.subr.msk.bf16.mxu1 %vm492_vm0, %v11676_v50 }
 0x953   : > { %8494 = vmatmul.mubr.msk.bf16.vlgmr.msra.gmra.mxu1 %vm492_vm0, %v11695_v55 }
 0x954   : > { %8518 = vmatpush3.bf16.xpose.msra.mxu1 %v5712_v54  ;;  %8497 = vmatprep.mubr.msk.bf16.mxu1 %vm492_vm0, %v11706_v30  ;;  %v12680_v54 = vld [vmem:[#allocation24_spill] sm:$0xff] }
 0x955   : > { %8750 = vmatprep.subr.msk.bf16.mxu1 %vm492_vm0, %v11703_v40  ;;  %v12669_v40 = vld [vmem:[#allocation22_spill] sm:$0xff] }
 0x95b   : > { %8498 = vmatmul.mubr.msk.bf16.gmra.mxu1 %vm492_vm0, %v5473_v4 }
 0x95c   : > { %8520 = vmatpush3.bf16.xpose.msra.mxu1 %v5709_v37  ;;  %8525 = vmatprep.mubr.msk.bf16.mxu1 %vm492_vm0, %v5675_v22 }
 0x95d   : > { %8751 = vmatprep.subr.msk.bf16.mxu1 %vm492_vm0, %v11709_v9 }
 0x964   : > { %8522 = vmatpush3.bf16.xpose.msra.mxu1 %v5706_v18 }
 0x965   : > { %8752 = vmatprep.subr.msk.bf16.mxu1 %vm492_vm0, %v5683_v52 }
 0x96c   : > { %8524 = vmatpush3.bf16.xpose.msra.mxu1 %v5703_v6 }
 0x973   : > { %8526 = vmatmul.mubr.msk.bf16.vlgmr.msra.gmra.mxu1 %vm492_vm0, %v5677_v36 }
 0x974   : > { %8529 = vmatprep.mubr.msk.bf16.mxu1 %vm492_vm0, %v5679_v47  ;;  %v12682_v47 = vld [vmem:[#allocation19_spill] sm:$0xff] }
 0x97b   : > { %8530 = vmatmul.mubr.msk.bf16.gmra.mxu1 %vm492_vm0, %v5681_v42 }
 0x995   : > { %v4937_v31 = vpop.f32.mrf.mxu0 }
 0x996   : > { %v11783_v41 = vadd.f32 %v4937_v31, %v11032_v15 }
 0x997   : > { %v8381_v43 = vpop.f32.mrf.mxu0 }
 0x999   : > { %v4942_v14 = vpop.f32.mrf.mxu0  ;;  %v5058_v63 = vpop.f32.mrf.mxu1 }
 0x99a   : > { %v11786_v7 = vadd.f32 %v4942_v14, %v11037_v28  ;;  %v11789_v58 = vadd.f32 %v5058_v63, %v11040_v17  ;;  %v12684_v14 = vld [vmem:[#allocation12_spill] sm:$0xff] }
 0x99b   : > { %v8384_v60 = vpop.f32.mrf.mxu0  ;;  %v8404_v48 = vpop.f32.mrf.mxu1 }
 0x99d   : > { %v4947_v32 = vpop.f32.mrf.mxu0  ;;  %v5063_v50 = vpop.f32.mrf.mxu1 }
 0x99e   : > { %v11792_v3 = vadd.f32 %v4947_v32, %v11043_v25  ;;  %v11795_v61 = vadd.f32 %v5063_v50, %v12665_v46  ;;  %v12686_v32 = vld [vmem:[#allocation27_spill] sm:$0xff]  ;;  %v6199_v46 = vpop.permute.xlu1 %6198 }
 0x99f   : > { %v8387_v15 = vpop.f32.mrf.mxu0  ;;  %v8407_v26 = vpop.f32.mrf.mxu1 }
 0x9a0   : > { %v6109_v15 = vpop.permute.xlu0 %6108 }
 0x9a1   : > { %v4952_v20 = vpop.f32.mrf.mxu0  ;;  %v5068_v38 = vpop.f32.mrf.mxu1 }
 0x9a2   : > { %v11798_v28 = vadd.f32 %v4952_v20, %v12666_v8  ;;  %v11801_v17 = vadd.f32 %v5068_v38, %v12667_v23  ;;  %v12688_v20 = vld [vmem:[#allocation13_spill] sm:$0xff] }
 0x9a3   : > { %v8390_v5 = vpop.f32.mrf.mxu0  ;;  %v8410_v34 = vpop.f32.mrf.mxu1  ;;  %v6216_v38 = vand.u32 %v6199_v46, %v12688_v20  ;;  %v6126_v8 = vand.u32 %v6109_v15, %v12688_v20  ;;  %v12695_v15 = vld [vmem:[#allocation29_spill] sm:$0xff] }
 0x9a4   : > { %v12689_v5 = vld [vmem:[#allocation16_spill] sm:$0xff] }
 0x9a5   : > { %v4957_v55 = vpop.f32.mrf.mxu0  ;;  %v5073_v59 = vpop.f32.mrf.mxu1  ;;  %8533 = vmatprep.subr.bf16.mxu0 %v6126_v8  ;;  %8549 = vmatprep.subr.bf16.mxu1 %v6216_v38 }
 0x9a6   : > { %v11804_v25 = vadd.f32 %v4957_v55, %v12668_v56  ;;  %v11807_v30 = vadd.f32 %v5073_v59, %v12669_v40  ;;  %v6197_v55 = vpop.permute.xlu1 %6196  ;;  %8534 = vmatpush3.bf16.msra.mxu0 %v6126_v8  ;;  %8550 = vmatpush3.bf16.msra.mxu1 %v6216_v38  ;;  %v6107_v59 = vpop.permute.xlu0 %6106 }
 0x9a7   : > { %v8393_v13 = vpop.f32.mrf.mxu0  ;;  %v8413_v9 = vpop.f32.mrf.mxu1  ;;  %8535 = vmatprep.subr.bf16.mxu0 %v6107_v59  ;;  %8551 = vmatprep.subr.bf16.mxu1 %v6197_v55 }
 0x9a8   : > { %v12691_v13 = vld [vmem:[#allocation25_spill] sm:$0xff] }
 0x9a9   : > { %v4962_v62 = vpop.f32.mrf.mxu0  ;;  %v5078_v27 = vpop.f32.mrf.mxu1 }
 0x9aa   : > { %v11810_v57 = vadd.f32 %v4962_v62, %v12670_v49  ;;  %v11813_v4 = vadd.f32 %v5078_v27, %v12671_v33  ;;  %v6105_v62 = vpop.permute.xlu1 %6104  ;;  %8536 = vmatpush3.bf16.msra.mxu0 %v6107_v59  ;;  %8552 = vmatpush3.bf16.msra.mxu1 %v6197_v55  ;;  %v11850_v49 = vld [vmem:[%s12492_s3 + $0xb8] sm:$0xff]  ;;  %v6195_v33 = vpop.permute.xlu0 %6194 }
 0x9ab   : > { %v8396_v10 = vpop.f32.mrf.mxu0  ;;  %v8416_v19 = vpop.f32.mrf.mxu1  ;;  %8537 = vmatprep.subr.bf16.mxu0 %v6105_v62  ;;  %8553 = vmatprep.subr.bf16.mxu1 %v6195_v33 }
 0x9ad   : > { %v4967_v21 = vpop.f32.mrf.mxu0  ;;  %v5083_v1 = vpop.f32.mrf.mxu1 }
 0x9ae   : > { %v11816_v52 = vadd.f32 %v4967_v21, %v12672_v12  ;;  %v11819_v22 = vadd.f32 %v5083_v1, %v12674_v29  ;;  %8538 = vmatpush3.bf16.msra.mxu0 %v6105_v62  ;;  %v6103_v10 = vpop.permute.xlu1 %6102  ;;  %v11855_v21 = vld [vmem:[%s12492_s3 + $0xa8] sm:$0xff]  ;;  %8554 = vmatpush3.bf16.msra.mxu1 %v6195_v33  ;;  %v11863_v29 = vld [vmem:[%s12492_s3 + $0xc0] sm:$0xff] }
 0x9af   : > { %v8399_v0 = vpop.f32.mrf.mxu0  ;;  %v8419_v24 = vpop.f32.mrf.mxu1  ;;  %8539 = vmatprep.subr.bf16.mxu0 %v6103_v10 }
 0x9b0   : > { %12673 = vst [vmem:[#allocation31_spill] sm:$0xff] %v11816_v52  ;;  %12675 = vst [vmem:[#allocation33_spill] sm:$0xff] %v11819_v22 }
 0x9b1   : > { %v5088_v35 = vpop.f32.mrf.mxu1 }
 0x9b2   : > { %v11822_v53 = vadd.f32 %v5088_v35, %v12676_v51  ;;  %8540 = vmatpush3.bf16.msra.mxu0 %v6103_v10  ;;  %v6193_v35 = vpop.permute.xlu0 %6192  ;;  %v6289_v51 = vpop.permute.xlu1 %6288 }
 0x9b3   : > { %v8422_v2 = vpop.f32.mrf.mxu1  ;;  %8555 = vmatprep.subr.bf16.mxu1 %v6193_v35 }
 0x9b4   : > { %12677 = vst [vmem:[#allocation28_spill] sm:$0xff] %v11822_v53  ;;  %8556 = vmatpush3.bf16.msra.mxu1 %v6193_v35 }
 0x9be   : > { %v5179_v36 = vpop.f32.mrf.mxu0 }
 0x9bf   : > { %v11825_v44 = vadd.f32 %v5179_v36, %v12678_v39  ;;  %v11871_v36 = vand.u32 %v6289_v51, %v12688_v20 }
 0x9c0   : > { %v8427_v16 = vpop.f32.mrf.mxu0 }
 0x9c1   : > { %12679 = vst [vmem:[#allocation5_spill] sm:$0xff] %v11825_v44  ;;  %8565 = vmatprep.subr.bf16.mxu0 %v11871_v36 }
 0x9c2   : > { %v5184_v45 = vpop.f32.mrf.mxu0 }
 0x9c3   : > { %v11828_v37 = vadd.f32 %v5184_v45, %v12680_v54 }
 0x9c4   : > { %v8430_v18 = vpop.f32.mrf.mxu0 }
 0x9c5   : > { %12681 = vst [vmem:[#allocation2_spill] sm:$0xff] %v11828_v37  ;;  %v6379_v18 = vpop.permute.xlu1 %6378 }
 0x9c6   : > { %v5189_v6 = vpop.f32.mrf.mxu0 }
 0x9c7   : > { %v11831_v42 = vadd.f32 %v5189_v6, %v12682_v47  ;;  %v11882_v47 = vand.u32 %v6379_v18, %v12688_v20 }
 0x9c8   : > { %v8433_v31 = vpop.f32.mrf.mxu0 }
 0x9c9   : > { %12683 = vst [vmem:[#allocation6_spill] sm:$0xff] %v11831_v42  ;;  %8581 = vmatprep.subr.bf16.mxu1 %v11882_v47 }
 0x9ca   : > { %v5194_v43 = vpop.f32.mrf.mxu0 }
 0x9cb   : > { %v11834_v63 = vadd.f32 %v5194_v43, %v12684_v14 }
 0x9cc   : > { %v8436_v60 = vpop.f32.mrf.mxu0 }
 0x9cd   : > { %12685 = vst [vmem:[#allocation3_spill] sm:$0xff] %v11834_v63  ;;  %v12693_v60 = vld [vmem:[#allocation11_spill] sm:$0xff] }
 0x9ce   : > { %v5199_v48 = vpop.f32.mrf.mxu0 }
 0x9cf   : > { %v11837_v50 = vadd.f32 %v5199_v48, %v12686_v32 }
 0x9d0   : > { %v8439_v26 = vpop.f32.mrf.mxu0 }
 0x9d1   : > { %12687 = vst [vmem:[#allocation4_spill] sm:$0xff] %v11837_v50 }
 0x9d2   : > { %v5204_v23 = vpop.f32.mrf.mxu0 }
 0x9d3   : > { %v11842_v34 = vadd.f32 %v5204_v23, %v12689_v5  ;;  %v12697_v23 = vld [vmem:[#allocation9_spill] sm:$0xff] }
 0x9d4   : > { %v8442_v56 = vpop.f32.mrf.mxu0 }
 0x9d5   : > { %12690 = vst [vmem:[#allocation21_spill] sm:$0xff] %v11842_v34 }
 0x9d6   : > { %v5209_v40 = vpop.f32.mrf.mxu0 }
 0x9d7   : > { %v11845_v9 = vadd.f32 %v5209_v40, %v12691_v13  ;;  %v12699_v40 = vld [vmem:[#allocation26_spill] sm:$0xff] }
 0x9d8   : > { %v8445_v27 = vpop.f32.mrf.mxu0 }
 0x9d9   : > { %12692 = vst [vmem:[#allocation18_spill] sm:$0xff] %v11845_v9 }
 0x9de   : > { %v8479_v19 = vpop.f32.mrf.mxu0 }
 0x9df   : > { %v11858_v1 = vadd.f32 %v8479_v19, %v11850_v49  ;;  %v12701_v19 = vld [vmem:[#allocation32_spill] sm:$0xff] }
 0x9e0   : > { %v5436_v12 = vpop.f32.mrf.mxu0 }
 0x9e1   : > { %v11866_v0 = vadd.f32 %v5436_v12, %v11855_v21  ;;  %v5784_v24 = vsel %vm953_vm1, %v11858_v1, -inf }
 0x9e2   : > { %5785 = vmax.xlane.f32.xlu0 %v5784_v24  ;;  %v8480_v2 = vpop.f32.mrf.mxu0 }
 0x9e3   : > { %v11874_v39 = vadd.f32 %v8480_v2, %v11863_v29  ;;  %v5778_v16 = vsel %vm953_vm1, %v11866_v0, -inf }
 0x9e4   : > { %5779 = vmax.xlane.f32.xlu1 %v5778_v16  ;;  %v5439_v45 = vpop.f32.mrf.mxu0  ;;  %v12703_v16 = vld [vmem:[#allocation34_spill] sm:$0xff] }
 0x9e5   : > { %v5787_v54 = vsel %vm953_vm1, %v11874_v39, -inf }
 0x9e6   : > { %v8483_v6 = vpop.f32.mrf.mxu0 }
 0x9e8   : > { %5788 = vmax.xlane.f32.xlu1 %v5787_v54  ;;  %v5452_v31 = vpop.f32.mrf.mxu0 }
 0x9ea   : > { %v8484_v43 = vpop.f32.mrf.mxu0 }
 0x9ec   : > { %v5455_v20 = vpop.f32.mrf.mxu0 }
 0x9f3   : > { %v5300_v14 = vpop.f32.mrf.mxu1 }
 0x9f4   : > { %v11886_v48 = vadd.f32 %v5300_v14, %v12693_v60 }
 0x9f5   : > { %v8450_v32 = vpop.f32.mrf.mxu1 }
 0x9f6   : > { %12694 = vst [vmem:[#allocation10_spill] sm:$0xff] %v11886_v48  ;;  %v12705_v32 = vld [vmem:[#allocation30_spill] sm:$0xff] }
 0x9f7   : > { %v5305_v46 = vpop.f32.mrf.mxu1 }
 0x9f8   : > { %v11889_v26 = vadd.f32 %v5305_v46, %v12695_v15 }
 0x9f9   : > { %v8453_v38 = vpop.f32.mrf.mxu1 }
 0x9fa   : > { %12696 = vst [vmem:[#allocation15_spill] sm:$0xff] %v11889_v26  ;;  %v9312_v26 = vld [vmem:[%s9827_s29 + $0x5c] sm:$0xff]  }
 0x9fb   : > { %v5310_v8 = vpop.f32.mrf.mxu1 }
 0x9fc   : > { %v11892_v5 = vadd.f32 %v5310_v8, %v12697_v23 }
 0x9fd   : > { %v8456_v55 = vpop.f32.mrf.mxu1 }
 0x9fe   : > { %12698 = vst [vmem:[#allocation22_spill] sm:$0xff] %v11892_v5  ;;  %v8511_v59 = vpop.f32.mrf.mxu0 }
 0x9ff   : > { %v5315_v56 = vpop.f32.mrf.mxu1 }
 0xa00   : > { %v11895_v13 = vadd.f32 %v5315_v56, %v12699_v40  ;;  %v11897_v62 = vpop.f32.mrf.mxu0  ;;  %v11925_v40 = vld [vmem:[%s12492_s3 + $0xb0] sm:$0xff] }
 0xa01   : > { %v8459_v27 = vpop.f32.mrf.mxu1 }
 0xa02   : > { %12700 = vst [vmem:[#allocation7_spill] sm:$0xff] %v11895_v13  ;;  %v8512_v33 = vpop.f32.mrf.mxu0 }
 0xa03   : > { %v5320_v10 = vpop.f32.mrf.mxu1 }
 0xa04   : > { %v11900_v12 = vadd.f32 %v5320_v10, %v12701_v19  ;;  %v11902_v24 = vpop.f32.mrf.mxu0 }
 0xa05   : > { %v8462_v35 = vpop.f32.mrf.mxu1 }
 0xa06   : > { %12702 = vst [vmem:[#allocation23_spill] sm:$0xff] %v11900_v12  ;;  %v11904_v51 = vpop.f32.mrf.mxu0  ;;  %v11933_v35 = vld [vmem:[%s12492_s3 + $0xd8] sm:$0x1] }
 0xa07   : > { %v5325_v2 = vpop.f32.mrf.mxu1 }
 0xa08   : > { %v11907_v54 = vadd.f32 %v5325_v2, %v12703_v16  ;;  %v11909_v18 = vpop.f32.mrf.mxu0  ;;  %v11936_v2 = vadd.f32 %v5439_v45, %v11925_v40 }
 0xa09   : > { %v8465_v43 = vpop.f32.mrf.mxu1 }
 0xa0a   : > { %12704 = vst [vmem:[#allocation20_spill] sm:$0xff] %v11907_v54  ;;  %v8516_v14 = vpop.f32.mrf.mxu0  ;;  %v12000_v54 = vadd.f32 %v11897_v62, %v11855_v21 }
 0xa0b   : > { %v5330_v60 = vpop.f32.mrf.mxu1 }
 0xa0c   : > { %v11912_v46 = vadd.f32 %v5330_v60, %v12705_v32  ;;  %v11946_v32 = vadd.f32 %v8483_v6, %v11933_v35  ;;  %v5820_v62 = vsel %vm953_vm1, %v12000_v54, -inf }
 0xa0d   : > { %v8468_v15 = vpop.f32.mrf.mxu1 }
 0xa0e   : > { %12706 = vst [vmem:[#allocation8_spill] sm:$0xff] %v11912_v46  ;;  %v5796_v6 = vsel %vm972_vm2, %v11946_v32, -inf  ;;  %v11982_v46 = vadd.f32 %v8511_v59, %v11850_v49 }
 0xa13   : > { %v8495_v38 = vpop.f32.mrf.mxu1 }
 0xa14   : > { %v11915_v8 = vadd.f32 %v8495_v38, %v11850_v49 }
 0xa15   : > { %v5540_v23 = vpop.f32.mrf.mxu1 }
 0xa16   : > { %v11918_v55 = vadd.f32 %v5540_v23, %v11855_v21  ;;  %v5805_v56 = vsel %vm953_vm1, %v11915_v8, -inf  ;;  %v5781_v23 = vsel %vm953_vm1, %v11936_v2, -inf }
 0xa17   : > { %5806 = vmax.xlane.f32.xlu0 %v5805_v56  ;;  %v8496_v27 = vpop.f32.mrf.mxu1  ;;  %v449_v56 = vld [vmem:[%s12492_s3 + $0xc8] sm:$0xff] }
 0xa18   : > { %v11928_v10 = vadd.f32 %v8496_v27, %v11863_v29  ;;  %v5799_v14 = vsel %vm953_vm1, %v11918_v55, -inf }
 0xa19   : > { %v5543_v19 = vpop.f32.mrf.mxu1 }
 0xa1a   : > { %v11939_v16 = vadd.f32 %v5543_v19, %v11925_v40  ;;  %v5808_v43 = vsel %vm953_vm1, %v11928_v10, -inf }
 0xa1b   : > { %5809 = vmax.xlane.f32.xlu1 %v5808_v43  ;;  %5800 = vmax.xlane.f32.xlu0 %v5799_v14  ;;  %v8499_v60 = vpop.f32.mrf.mxu1  ;;  %v11964_v14 = vadd.f32 %v5452_v31, %v449_v56 }
 0xa1c   : > { %v11949_v15 = vadd.f32 %v8499_v60, %v11933_v35  ;;  %v5802_v38 = vsel %vm953_vm1, %v11939_v16, -inf  ;;  %v11969_v60 = vld [vmem:[%s12492_s3 + $0xd0] sm:$0xff] }
 0xa1d   : > { %v5556_v45 = vpop.f32.mrf.mxu1  ;;  %v5790_v31 = vsel %vm953_vm1, %v11964_v14, -inf }
 0xa1e   : > { %v11958_v19 = vadd.f32 %v5556_v45, %v449_v56  ;;  %v5817_v43 = vsel %vm972_vm2, %v11949_v15, -inf }
 0xa1f   : > { %5803 = vmax.xlane.f32.xlu1 %v5802_v38  ;;  %5782 = vmax.xlane.f32.xlu0 %v5781_v23  ;;  %v8500_v27 = vpop.f32.mrf.mxu1  ;;  %v11974_v23 = vadd.f32 %v5455_v20, %v11969_v60 }
 0xa20   : > { %v5811_v45 = vsel %vm953_vm1, %v11958_v19, -inf }
 0xa21   : > { %v5559_v38 = vpop.f32.mrf.mxu1  ;;  %v5793_v20 = vsel %vm953_vm1, %v11974_v23, -inf }
 0xa22   : > { %v11977_v27 = vadd.f32 %v5559_v38, %v11969_v60  ;;  %v5826_v38 = vsel %vm953_vm1, %v11982_v46, -inf }
 0xa23   : > { %5797 = vmax.xlane.f32.xlu0 %v5796_v6  ;;  %5818 = vmax.xlane.f32.xlu1 %v5817_v43  ;;  %v11985_v6 = vadd.f32 %v8512_v33, %v11863_v29 }
 0xa24   : > { %v5814_v43 = vsel %vm953_vm1, %v11977_v27, -inf }
 0xa27   : > { %5791 = vmax.xlane.f32.xlu0 %v5790_v31  ;;  %5812 = vmax.xlane.f32.xlu1 %v5811_v45  ;;  %v5829_v45 = vsel %vm953_vm1, %v11985_v6, -inf }
 0xa2b   : > { %5815 = vmax.xlane.f32.xlu0 %v5814_v43  ;;  %5794 = vmax.xlane.f32.xlu1 %v5793_v20 }
 0xa2f   : > { %5827 = vmax.xlane.f32.xlu0 %v5826_v38  ;;  %5830 = vmax.xlane.f32.xlu1 %v5829_v45  ;;  %v12009_v38 = vadd.f32 %v11902_v24, %v11925_v40 }
 0xa33   : > { %v8527_v59 = vpop.f32.mrf.mxu1 }
 0xa34   : > { %v11996_v33 = vadd.f32 %v8527_v59, %v11850_v49 }
 0xa35   : > { %v5748_v31 = vpop.f32.mrf.mxu1 }
 0xa36   : > { %v5847_v43 = vsel %vm953_vm1, %v11996_v33, -inf  ;;  %v12012_v49 = vadd.f32 %v5748_v31, %v11855_v21  ;;  %v5823_v21 = vsel %vm953_vm1, %v12009_v38, -inf }
 0xa37   : > { %5848 = vmax.xlane.f32.xlu0 %v5847_v43  ;;  %v8528_v20 = vpop.f32.mrf.mxu1 }
 0xa38   : > { %v12005_v12 = vadd.f32 %v8528_v20, %v11863_v29  ;;  %v12020_v29 = vadd.f32 %v11904_v51, %v11933_v35  ;;  %v5841_v31 = vsel %vm953_vm1, %v12012_v49, -inf  ;;  %v12035_v51 = vadd.f32 %v11909_v18, %v449_v56 }
 0xa39   : > { %v5751_v13 = vpop.f32.mrf.mxu1 }
 0xa3a   : > { %v5850_v45 = vsel %vm953_vm1, %v12005_v12, -inf  ;;  %v12023_v24 = vadd.f32 %v5751_v13, %v11925_v40 }
 0xa3b   : > { %5821 = vmax.xlane.f32.xlu0 %v5820_v62  ;;  %5851 = vmax.xlane.f32.xlu1 %v5850_v45  ;;  %v8531_v59 = vpop.f32.mrf.mxu1  ;;  %v5838_v62 = vsel %vm972_vm2, %v12020_v29, -inf }
 0xa3c   : > { %v12032_v45 = vadd.f32 %v8531_v59, %v11933_v35  ;;  %v5844_v13 = vsel %vm953_vm1, %v12023_v24, -inf  ;;  %v5663_v35 = vpop.f32.mrf.mxu0 }
 0xa3d   : > { %v5764_v43 = vpop.f32.mrf.mxu1  ;;  %v12048_v59 = vadd.f32 %v5663_v35, %v11969_v60 }
 0xa3e   : > { %v5859_v40 = vsel %vm972_vm2, %v12032_v45, -inf }
 0xa3f   : > { %5824 = vmax.xlane.f32.xlu1 %v5823_v21  ;;  %5842 = vmax.xlane.f32.xlu0 %v5841_v31  ;;  %v8532_v20 = vpop.f32.mrf.mxu1  ;;  %v12041_v21 = vadd.f32 %v5764_v43, %v449_v56  ;;  %v5832_v31 = vsel %vm953_vm1, %v12035_v51, -inf  ;;  %v9311_v56 = vld [vmem:[%s9827_s29 + $0x64] sm:$0xff]  }
 0xa40   : > { %v5835_v20 = vsel %vm953_vm1, %v12048_v59, -inf }
 0xa41   : > { %v5853_v18 = vsel %vm953_vm1, %v12041_v21, -inf }
 0xa43   : > { %5845 = vmax.xlane.f32.xlu1 %v5844_v13  ;;  %5839 = vmax.xlane.f32.xlu0 %v5838_v62  ;;  %v9310_v62 = vld [vmem:[%s9827_s29 + $0x40] sm:$0xff]  }
 0xa47   : > { %5833 = vmax.xlane.f32.xlu0 %v5832_v31  ;;  %5860 = vmax.xlane.f32.xlu1 %v5859_v40  ;;  %v5767_v31 = vpop.f32.mrf.mxu1 }
 0xa48   : > { %v12058_v35 = vadd.f32 %v5767_v31, %v11969_v60 }
 0xa4b   : > { %5854 = vmax.xlane.f32.xlu1 %v5853_v18  ;;  %v5856_v18 = vsel %vm953_vm1, %v12058_v35, -inf }
 0xa4f   : > { %5836 = vmax.xlane.f32.xlu1 %v5835_v20 }
 0xa5d   : > { %6284 = vrot.lane.b32.xlu0 %v9310_v62, %s9328_s18 }
 0xa60   : > { %6376 = vrot.lane.b32.xlu1 %v9311_v56, %s9328_s18  ;;  %v12066_v56 = vpop.permute.xlu0 %6286 }
 0xa6d   : > { %v5780_v43 = vpop.xlane.xlu1 %5779 }
 0xa71   : > { %v5789_v13 = vpop.xlane.xlu1 %5788 }
 0xa72   : > { %v5865_v40 = vsub.f32 %v11874_v39, %v5789_v13  ;;  %v5786_v39 = vpop.xlane.xlu0 %5785  ;;  %v5862_v13 = vsub.f32 %v11866_v0, %v5780_v43 }
 0xa74   : > { %v5896_v5 = vmul.f32 1.442695, %v5865_v40  ;;  %v5890_v48 = vmul.f32 1.442695, %v5862_v13 }
 0xa76   : > { %9137 = vpow2.f32 %v5896_v5  ;;  %v5864_v5 = vsub.f32 %v11858_v1, %v5786_v39 }
 0xa78   : > { %v5894_v60 = vmul.f32 1.442695, %v5864_v5 }
 0xa7a   : > { %9139 = vpow2.f32 %v5894_v60 }
 0xa7c   : > { %5857 = vmax.xlane.f32.xlu0 %v5856_v18 }
 0xa83   : > { %v12062_v20 = vpop.eup %9137 }
 0xa84   : > { %v5955_v62 = vsel %vm953_vm1, %v12062_v20, 0.0 }
 0xa85   : > { %5956 = vadd.xlane.f32.xlu1 %v5955_v62 }
 0xa92   : > { %6374 = vrot.lane.b32.xlu0 %v9312_v26, %s9328_s18 }
 0xaa0   : > { %v5807_v40 = vpop.xlane.xlu0 %5806 }
 0xaa1   : > { %v5871_v31 = vsub.f32 %v11915_v8, %v5807_v40  ;;  %v12077_v40 = vpop.eup %9139 }
 0xaa3   : > { %v5908_v18 = vmul.f32 1.442695, %v5871_v31 }
 0xaa4   : > { %v5810_v9 = vpop.xlane.xlu1 %5809  ;;  %v5801_v34 = vpop.xlane.xlu0 %5800 }
 0xaa5   : > { %9141 = vpow2.f32 %v5908_v18  ;;  %v5872_v62 = vsub.f32 %v11928_v10, %v5810_v9  ;;  %v5869_v50 = vsub.f32 %v11918_v55, %v5801_v34 }
 0xaa6   : > { %9143 = vpow2.f32 %v5890_v48 }
 0xaa7   : > { %v5910_v26 = vmul.f32 1.442695, %v5872_v62  ;;  %v5904_v63 = vmul.f32 1.442695, %v5869_v50 }
 0xaa8   : > { %v5804_v1 = vpop.xlane.xlu1 %5803  ;;  %v5783_v39 = vpop.xlane.xlu0 %5782 }
 0xaa9   : > { %9145 = vpow2.f32 %v5910_v26  ;;  %v5870_v0 = vsub.f32 %v11939_v16, %v5804_v1  ;;  %v5863_v43 = vsub.f32 %v11936_v2, %v5783_v39  ;;  %v5952_v2 = vsel %vm953_vm1, %v12077_v40, 0.0 }
 0xaaa   : > { %9147 = vpow2.f32 %v5904_v63 }
 0xaab   : > { %v5892_v8 = vmul.f32 1.442695, %v5863_v43  ;;  %v5906_v5 = vmul.f32 1.442695, %v5870_v0 }
 0xaac   : > { %v5819_v60 = vpop.xlane.xlu1 %5818  ;;  %v5798_v13 = vpop.xlane.xlu0 %5797 }
 0xaad   : > { %v5875_v9 = vsub.f32 %v11949_v15, %v5819_v60  ;;  %v5868_v34 = vsub.f32 %v11946_v32, %v5798_v13  ;;  %9149 = vpow2.f32 %v5892_v8 }
 0xaae   : > { %9151 = vpow2.f32 %v5906_v5 }
 0xaaf   : > { %v5902_v50 = vmul.f32 1.442695, %v5868_v34  ;;  %v5916_v48 = vmul.f32 1.442695, %v5875_v9 }
 0xab0   : > { %v5813_v55 = vpop.xlane.xlu1 %5812  ;;  %v5792_v10 = vpop.xlane.xlu0 %5791 }
 0xab1   : > { %v5866_v63 = vsub.f32 %v11964_v14, %v5792_v10  ;;  %5953 = vadd.xlane.f32.xlu0 %v5952_v2  ;;  %9153 = vpow2.f32 %v5902_v50  ;;  %v5873_v32 = vsub.f32 %v11958_v19, %v5813_v55 }
 0xab2   : > { %v12084_v16 = vpop.eup %9141  ;;  %9155 = vpow2.f32 %v5916_v48 }
 0xab3   : > { %v5973_v15 = vsel %vm953_vm1, %v12084_v16, 0.0  ;;  %v5898_v31 = vmul.f32 1.442695, %v5866_v63  ;;  %v12089_v26 = vpop.eup %9143  ;;  %v5912_v5 = vmul.f32 1.442695, %v5873_v32 }
 0xab4   : > { %v5795_v18 = vpop.xlane.xlu1 %5794  ;;  %v5816_v62 = vpop.xlane.xlu0 %5815  ;;  %v5946_v60 = vsel %vm953_vm1, %v12089_v26, 0.0 }
 0xab5   : > { %v5867_v1 = vsub.f32 %v11974_v23, %v5795_v18  ;;  %v5874_v39 = vsub.f32 %v11977_v27, %v5816_v62  ;;  %5974 = vadd.xlane.f32.xlu0 %v5973_v15  ;;  %9157 = vpow2.f32 %v5898_v31 }
 0xab6   : > { %v12093_v14 = vpop.eup %9145 }
 0xab7   : > { %v5900_v0 = vmul.f32 1.442695, %v5867_v1  ;;  %v5914_v43 = vmul.f32 1.442695, %v5874_v39  ;;  %v5976_v8 = vsel %vm953_vm1, %v12093_v14, 0.0  ;;  %v12099_v13 = vpop.eup %9147 }
 0xab8   : > { %5977 = vadd.xlane.f32.xlu1 %v5976_v8  ;;  %v5828_v19 = vpop.xlane.xlu0 %5827  ;;  %v5967_v50 = vsel %vm953_vm1, %v12099_v13, 0.0  ;;  %v5831_v10 = vpop.xlane.xlu1 %5830 }
 0xab9   : > { %9159 = vpow2.f32 %v5900_v0  ;;  %v5878_v23 = vsub.f32 %v11982_v46, %v5828_v19  ;;  %5947 = vadd.xlane.f32.xlu0 %v5946_v60  ;;  %v5879_v19 = vsub.f32 %v11985_v6, %v5831_v10 }
 0xaba   : > { %v12102_v27 = vpop.eup %9149  ;;  %9161 = vpow2.f32 %v5914_v43 }
 0xabb   : > { %9163 = vpow2.f32 %v5912_v5  ;;  %v5922_v9 = vmul.f32 1.442695, %v5878_v23  ;;  %v5949_v34 = vsel %vm953_vm1, %v12102_v27, 0.0  ;;  %v12108_v48 = vpop.eup %9151 }
 0xabc   : > { %5950 = vadd.xlane.f32.xlu1 %v5949_v34  ;;  %v5970_v46 = vsel %vm953_vm1, %v12108_v48, 0.0 }
 0xabd   : > { %5968 = vadd.xlane.f32.xlu0 %v5967_v50  ;;  %9165 = vpow2.f32 %v5922_v9 }
 0xabe   : > { %v12110_v55 = vpop.eup %9153 }
 0xabf   : > { %v5964_v63 = vsel %vm972_vm2, %v12110_v55, 0.0  ;;  %v12116_v15 = vpop.eup %9155 }
 0xac0   : > { %v5849_v2 = vpop.xlane.xlu0 %5848  ;;  %5971 = vadd.xlane.f32.xlu1 %v5970_v46  ;;  %v5985_v62 = vsel %vm972_vm2, %v12116_v15, 0.0 }
 0xac1   : > { %v5885_v32 = vsub.f32 %v11996_v33, %v5849_v2  ;;  %5965 = vadd.xlane.f32.xlu0 %v5964_v63  ;;  %v5924_v2 = vmul.f32 1.442695, %v5879_v19 }
 0xac2   : > { %v12121_v39 = vpop.eup %9157 }
 0xac3   : > { %v5936_v31 = vmul.f32 1.442695, %v5885_v32  ;;  %v5958_v23 = vsel %vm953_vm1, %v12121_v39, 0.0 }
 0xac4   : > { %v5852_v18 = vpop.xlane.xlu1 %5851  ;;  %v5822_v1 = vpop.xlane.xlu0 %5821  ;;  %5986 = vadd.xlane.f32.xlu1 %v5985_v62 }
 0xac5   : > { %9167 = vpow2.f32 %v5936_v31  ;;  %v5876_v0 = vsub.f32 %v12000_v54, %v5822_v1  ;;  %v5886_v63 = vsub.f32 %v12005_v12, %v5852_v18 }
 0xac6   : > { %v12124_v43 = vpop.eup %9159 }
 0xac7   : > { %v5918_v8 = vmul.f32 1.442695, %v5876_v0  ;;  %v5961_v5 = vsel %vm953_vm1, %v12124_v43, 0.0  ;;  %v12128_v33 = vpop.eup %9161  ;;  %v5938_v1 = vmul.f32 1.442695, %v5886_v63 }
 0xac8   : > { %v5825_v60 = vpop.xlane.xlu1 %5824  ;;  %5962 = vadd.xlane.f32.xlu0 %v5961_v5  ;;  %v5843_v9 = vpop.xlane.xlu0 %5842  ;;  %5959 = vadd.xlane.f32.xlu1 %v5958_v23  ;;  %v5982_v46 = vsel %vm953_vm1, %v12128_v33, 0.0 }
 0xac9   : > { %v12133_v34 = vpop.eup %9163  ;;  %v5883_v54 = vsub.f32 %v12012_v49, %v5843_v9  ;;  %9169 = vpow2.f32 %v5918_v8  ;;  %v5877_v0 = vsub.f32 %v12009_v38, %v5825_v60 }
 0xaca   : > { %v5979_v10 = vsel %vm953_vm1, %v12133_v34, 0.0  ;;  %v12141_v31 = vpop.eup %9165 }
 0xacb   : > { %v5932_v50 = vmul.f32 1.442695, %v5883_v54  ;;  %v5994_v12 = vsel %vm953_vm1, %v12141_v31, 0.0  ;;  %v5920_v23 = vmul.f32 1.442695, %v5877_v0 }
 0xacc   : > { %v5846_v6 = vpop.xlane.xlu1 %5845  ;;  %5983 = vadd.xlane.f32.xlu0 %v5982_v46  ;;  %v5840_v32 = vpop.xlane.xlu0 %5839  ;;  %5980 = vadd.xlane.f32.xlu1 %v5979_v10 }
 0xacd   : > { %v5882_v62 = vsub.f32 %v12020_v29, %v5840_v32  ;;  %9171 = vpow2.f32 %v5932_v50  ;;  %v5884_v9 = vsub.f32 %v12023_v24, %v5846_v6 }
 0xace   : > { %9173 = vpow2.f32 %v5924_v2 }
 0xacf   : > { %v5930_v49 = vmul.f32 1.442695, %v5882_v62  ;;  %v5934_v46 = vmul.f32 1.442695, %v5884_v9 }
 0xad0   : > { %v5861_v8 = vpop.xlane.xlu1 %5860  ;;  %5995 = vadd.xlane.f32.xlu1 %v5994_v12  ;;  %v5834_v38 = vpop.xlane.xlu0 %5833 }
 0xad1   : > { %v5889_v18 = vsub.f32 %v12032_v45, %v5861_v8  ;;  %9175 = vpow2.f32 %v5930_v49  ;;  %v5880_v2 = vsub.f32 %v12035_v51, %v5834_v38 }
 0xad2   : > { %v12148_v5 = vpop.eup %9167  ;;  %9177 = vpow2.f32 %v5938_v1 }
 0xad3   : > { %v5944_v19 = vmul.f32 1.442695, %v5889_v18  ;;  %v6015_v29 = vsel %vm953_vm1, %v12148_v5, 0.0 }
 0xad4   : > { %v5855_v54 = vpop.xlane.xlu1 %5854  ;;  %6016 = vadd.xlane.f32.xlu0 %v6015_v29 }
 0xad5   : > { %9179 = vpow2.f32 %v5944_v19  ;;  %v5887_v60 = vsub.f32 %v12041_v21, %v5855_v54  ;;  %v5926_v21 = vmul.f32 1.442695, %v5880_v2 }
 0xad6   : > { %v12154_v50 = vpop.eup %9169  ;;  %9181 = vpow2.f32 %v5920_v23 }
 0xad7   : > { %v5940_v45 = vmul.f32 1.442695, %v5887_v60  ;;  %v5988_v10 = vsel %vm953_vm1, %v12154_v50, 0.0 }
 0xad8   : > { %v5837_v63 = vpop.xlane.xlu1 %5836  ;;  %5989 = vadd.xlane.f32.xlu0 %v5988_v10  ;;  %v9313_v10 = vld [vmem:[%s9827_s29 + $0x38] sm:$0xff]  }
 0xad9   : > { %9183 = vpow2.f32 %v5940_v45  ;;  %v5881_v24 = vsub.f32 %v12048_v59, %v5837_v63  ;;  %v12200_v63 = vpop.permute.xlu0 %6284 }
 0xada   : > { %v12160_v6 = vpop.eup %9171  ;;  %9185 = vpow2.f32 %v5934_v46 }
 0xadb   : > { %v5928_v32 = vmul.f32 1.442695, %v5881_v24  ;;  %v6009_v62 = vsel %vm953_vm1, %v12160_v6, 0.0  ;;  %v12164_v49 = vpop.eup %9173 }
 0xadc   : > { %6010 = vadd.xlane.f32.xlu1 %v6009_v62  ;;  %v5997_v1 = vsel %vm953_vm1, %v12164_v49, 0.0 }
 0xadd   : > { %9187 = vpow2.f32 %v5928_v32 }
 0xade   : > { %v12166_v51 = vpop.eup %9175  ;;  %9189 = vpow2.f32 %v5926_v21 }
 0xadf   : > { %v6006_v59 = vsel %vm972_vm2, %v12166_v51, 0.0  ;;  %v12172_v0 = vpop.eup %9177 }
 0xae0   : > { %5998 = vadd.xlane.f32.xlu1 %v5997_v1  ;;  %6007 = vadd.xlane.f32.xlu0 %v6006_v59  ;;  %v6018_v18 = vsel %vm953_vm1, %v12172_v0, 0.0  ;;  %v9314_v59 = vld [vmem:[%s9827_s29 + $0x54] sm:$0xff]  }
 0xae2   : > { %v12174_v8 = vpop.eup %9179 }
 0xae3   : > { %v6027_v12 = vsel %vm972_vm2, %v12174_v8, 0.0  ;;  %v12180_v19 = vpop.eup %9181 }
 0xae4   : > { %6019 = vadd.xlane.f32.xlu1 %v6018_v18  ;;  %6028 = vadd.xlane.f32.xlu0 %v6027_v12  ;;  %v5991_v9 = vsel %vm953_vm1, %v12180_v19, 0.0  ;;  %v12213_v18 = vpop.permute.xlu1 %6376 }
 0xae6   : > { %v12182_v29 = vpop.eup %9183 }
 0xae7   : > { %v6021_v23 = vsel %vm953_vm1, %v12182_v29, 0.0  ;;  %v12188_v54 = vpop.eup %9185 }
 0xae8   : > { %5992 = vadd.xlane.f32.xlu1 %v5991_v9  ;;  %6022 = vadd.xlane.f32.xlu0 %v6021_v23  ;;  %v6012_v45 = vsel %vm953_vm1, %v12188_v54, 0.0 }
 0xaea   : > { %v12190_v38 = vpop.eup %9187 }
 0xaeb   : > { %v6003_v60 = vsel %vm953_vm1, %v12190_v38, 0.0  ;;  %v12196_v46 = vpop.eup %9189 }
 0xaec   : > { %6013 = vadd.xlane.f32.xlu1 %v6012_v45  ;;  %6004 = vadd.xlane.f32.xlu0 %v6003_v60  ;;  %v6000_v2 = vsel %vm953_vm1, %v12196_v46, 0.0 }
 0xaf0   : > { %6001 = vadd.xlane.f32.xlu1 %v6000_v2 }
 0xb01   : > { %6282 = vrot.lane.b32.xlu1 %v9313_v10, %s9328_s18 }
 0xb05   : > { %v5858_v24 = vpop.xlane.xlu0 %5857 }
 0xb06   : > { %v5888_v32 = vsub.f32 %v12058_v35, %v5858_v24 }
 0xb08   : > { %v5942_v21 = vmul.f32 1.442695, %v5888_v32 }
 0xb09   : > { %v12211_v12 = vpop.permute.xlu0 %6374 }
 0xb0a   : > { %9191 = vpow2.f32 %v5942_v21 }
 0xb0e   : > { %v5957_v9 = vpop.xlane.xlu1 %5956 }
 0xb17   : > { %v12205_v62 = vpop.eup %9191 }
 0xb18   : > { %v6024_v1 = vsel %vm953_vm1, %v12205_v62, 0.0 }
 0xb19   : > { %6025 = vadd.xlane.f32.xlu0 %v6024_v1 }
 0xb2f   : > { %6372 = vrot.lane.b32.xlu0 %v9314_v59, %s9328_s18 }
 0xb3a   : > { %v5954_v23 = vpop.xlane.xlu0 %5953 }
 0xb3b   : > { %9193 = vrcp.f32 %v5954_v23 }
 0xb3e   : > { %v5975_v60 = vpop.xlane.xlu0 %5974 }
 0xb41   : > { %v5978_v45 = vpop.xlane.xlu1 %5977 }
 0xb42   : > { %v5948_v35 = vpop.xlane.xlu0 %5947 }
 0xb43   : > { %9195 = vrcp.f32 %v5948_v35 }
 0xb44   : > { %9197 = vrcp.f32 %v5957_v9 }
 0xb45   : > { %v5951_v2 = vpop.xlane.xlu1 %5950 }
 0xb46   : > { %v5969_v10 = vpop.xlane.xlu0 %5968  ;;  %9199 = vrcp.f32 %v5951_v2 }
 0xb47   : > { %9201 = vrcp.f32 %v5978_v45 }
 0xb48   : > { %9203 = vrcp.f32 %v5969_v10  ;;  %v9194_v1 = vpop.eup %9193 }
 0xb49   : > { %9205 = vrcp.f32 %v5975_v60  ;;  %v5972_v24 = vpop.xlane.xlu1 %5971  ;;  %v6060_v9 = vmul.f32 %v9194_v1, %v12077_v40 }
 0xb4a   : > { %9207 = vrcp.f32 %v5972_v24  ;;  %v5966_v32 = vpop.xlane.xlu0 %5965 }
 0xb4b   : > { %9209 = vrcp.f32 %v5966_v32 }
 0xb4d   : > { %v5987_v21 = vpop.xlane.xlu1 %5986 }
 0xb50   : > { %v9196_v42 = vpop.eup %9195 }
 0xb51   : > { %v5963_v59 = vpop.xlane.xlu0 %5962  ;;  %v5960_v37 = vpop.xlane.xlu1 %5959  ;;  %v6058_v60 = vmul.f32 %v9196_v42, %v12089_v26 }
 0xb52   : > { %9211 = vrcp.f32 %v5963_v59  ;;  %v9198_v44 = vpop.eup %9197 }
 0xb53   : > { %9213 = vrcp.f32 %v5960_v37  ;;  %v9200_v23 = vpop.eup %9199  ;;  %v6061_v24 = vmul.f32 %v9198_v44, %v12062_v20 }
 0xb54   : > { %9215 = vrcp.f32 %v5987_v21  ;;  %v9202_v35 = vpop.eup %9201  ;;  %v6059_v2 = vmul.f32 %v9200_v23, %v12102_v27 }
 0xb55   : > { %v5984_v45 = vpop.xlane.xlu0 %5983  ;;  %v9204_v10 = vpop.eup %9203  ;;  %v6087_v37 = vpack.c.bf16 %v6061_v24, %v6060_v9  ;;  %v6068_v52 = vmul.f32 %v9202_v35, %v12093_v14 }
 0xb56   : > { %v5981_v32 = vpop.xlane.xlu1 %5980  ;;  %9217 = vrcp.f32 %v5984_v45  ;;  %v9206_v53 = vpop.eup %9205  ;;  %v6086_v59 = vpack.c.bf16 %v6059_v2, %v6058_v60  ;;  %v6065_v40 = vmul.f32 %v9204_v10, %v12099_v13 }
 0xb57   : > { %9219 = vrcp.f32 %v5981_v32  ;;  %v9208_v22 = vpop.eup %9207  ;;  %v6067_v26 = vmul.f32 %v9206_v53, %v12084_v16 }
 0xb58   : > { %8541 = vmatprep.mubr.msk.bf16.mxu0 %vm953_vm1, %v6086_v59  ;;  %v6066_v42 = vmul.f32 %v9208_v22, %v12108_v48  ;;  %v9210_v27 = vpop.eup %9209 }
 0xb59   : > { %8542 = vmatmul.mubr.msk.bf16.vlgmr.msra.gmra.mxu0 %vm953_vm1, %v6087_v37  ;;  %v6091_v20 = vpack.c.bf16 %v6068_v52, %v6067_v26 }
 0xb5a   : > { %8566 = vmatpush3.bf16.msra.mxu0 %v11871_v36  ;;  %v6090_v44 = vpack.c.bf16 %v6066_v42, %v6065_v40  ;;  %v6064_v36 = vmul.f32 %v9210_v27, %v12110_v55  ;;  %v5996_v48 = vpop.xlane.xlu1 %5995 }
 0xb5b   : > { %8567 = vmatprep.subr.bf16.mxu0 %v12066_v56 }
 0xb5c   : > { %8557 = vmatprep.mubr.msk.bf16.mxu1 %vm953_vm1, %v6090_v44  ;;  %v6089_v1 = vpack.c.bf16 %v6064_v36, %v6064_v36 }
 0xb5d   : > { %8558 = vmatmul.mubr.msk.bf16.vlgmr.msra.gmra.mxu1 %vm953_vm1, %v6091_v20  ;;  %v12231_v53 = vpop.xlane.xlu0 %6016 }
 0xb5e   : > { %8568 = vmatpush3.bf16.msra.mxu0 %v12066_v56  ;;  %8582 = vmatpush3.bf16.msra.mxu1 %v11882_v47 }
 0xb5f   : > { %v9212_v14 = vpop.eup %9211  ;;  %8569 = vmatprep.subr.bf16.mxu0 %v12200_v63  ;;  %8583 = vmatprep.subr.bf16.mxu1 %v12213_v18 }
 0xb60   : > { %v9214_v22 = vpop.eup %9213  ;;  %v6063_v52 = vmul.f32 %v9212_v14, %v12124_v43 }
 0xb61   : > { %v9216_v16 = vpop.eup %9215  ;;  %v6062_v13 = vmul.f32 %v9214_v22, %v12121_v39  ;;  %v5990_v39 = vpop.xlane.xlu0 %5989 }
 0xb62   : > { %8570 = vmatpush3.bf16.msra.mxu0 %v12200_v63  ;;  %8584 = vmatpush3.bf16.msra.mxu1 %v12213_v18  ;;  %v6071_v43 = vmul.f32 %v9216_v16, %v12116_v15 }
 0xb63   : > { %v9218_v21 = vpop.eup %9217  ;;  %v6088_v47 = vpack.c.bf16 %v6063_v52, %v6062_v13  ;;  %8585 = vmatprep.subr.bf16.mxu1 %v12211_v12 }
 0xb64   : > { %v9220_v56 = vpop.eup %9219  ;;  %v6070_v23 = vmul.f32 %v9218_v21, %v12128_v33  ;;  %v6093_v18 = vpack.c.bf16 %v6071_v43, %v6071_v43 }
 0xb65   : > { %8545 = vmatprep.mubr.msk.bf16.mxu0 %vm953_vm1, %v6088_v47  ;;  %v6069_v55 = vmul.f32 %v9220_v56, %v12133_v34  ;;  %v6011_v9 = vpop.xlane.xlu1 %6010 }
 0xb66   : > { %8546 = vmatmul.mubr.msk.bf16.gmra.mxu0 %vm953_vm1, %v6089_v1  ;;  %8586 = vmatpush3.bf16.msra.mxu1 %v12211_v12 }
 0xb67   : > { %v6092_v63 = vpack.c.bf16 %v6070_v23, %v6069_v55 }
 0xb69   : > { %8561 = vmatprep.mubr.msk.bf16.mxu1 %vm953_vm1, %v6092_v63  ;;  %v5999_v35 = vpop.xlane.xlu1 %5998  ;;  %v6008_v33 = vpop.xlane.xlu0 %6007 }
 0xb6a   : > { %8562 = vmatmul.mubr.msk.bf16.gmra.mxu1 %vm953_vm1, %v6093_v18  ;;  %9221 = vrcp.f32 %v5999_v35 }
 0xb6b   : > { %9223 = vrcp.f32 %v5990_v39 }
 0xb6c   : > { %9225 = vrcp.f32 %v5996_v48 }
 0xb6d   : > { %v6020_v45 = vpop.xlane.xlu1 %6019  ;;  %v6029_v15 = vpop.xlane.xlu0 %6028 }
 0xb71   : > { %v5993_v34 = vpop.xlane.xlu1 %5992  ;;  %v6023_v60 = vpop.xlane.xlu0 %6022 }
 0xb72   : > { %9227 = vrcp.f32 %v5993_v34 }
 0xb73   : > { %9229 = vrcp.f32 %v6011_v9 }
 0xb75   : > { %v6014_v2 = vpop.xlane.xlu1 %6013  ;;  %v6005_v10 = vpop.xlane.xlu0 %6004 }
 0xb76   : > { %9231 = vrcp.f32 %v6014_v2 }
 0xb77   : > { %9233 = vrcp.f32 %v6008_v33  ;;  %v9222_v24 = vpop.eup %9221 }
 0xb78   : > { %9235 = vrcp.f32 %v6005_v10  ;;  %v9224_v32 = vpop.eup %9223  ;;  %v6075_v42 = vmul.f32 %v9222_v24, %v12164_v49 }
 0xb79   : > { %v6002_v12 = vpop.xlane.xlu1 %6001  ;;  %v9226_v37 = vpop.eup %9225  ;;  %v6072_v26 = vmul.f32 %v9224_v32, %v12154_v50 }
 0xb7a   : > { %9237 = vrcp.f32 %v6002_v12  ;;  %v6074_v27 = vmul.f32 %v9226_v37, %v12141_v31 }
 0xb7b   : > { %9239 = vrcp.f32 %v6020_v45 }
 0xb7c   : > { %v6095_v52 = vpack.c.bf16 %v6075_v42, %v6074_v27  ;;  %9241 = vrcp.f32 %v12231_v53 }
 0xb7d   : > { %v6283_v59 = vpop.permute.xlu1 %6282  ;;  %9243 = vrcp.f32 %v6029_v15 }
 0xb7e   : > { %8571 = vmatprep.subr.bf16.mxu0 %v6283_v59  ;;  %9245 = vrcp.f32 %v6023_v60 }
 0xb7f   : > { %v9228_v40 = vpop.eup %9227  ;;  %8572 = vmatpush3.bf16.msra.mxu0 %v6283_v59 }
 0xb80   : > { %v6073_v44 = vmul.f32 %v9228_v40, %v12180_v19  ;;  %8597 = vmatprep.subr.mxu0 %v12662_v11  ;;  %v9230_v20 = vpop.eup %9229 }
 0xb81   : > { %v6079_v16 = vmul.f32 %v9230_v20, %v12160_v6  ;;  %v455_v6 = vld [vmem:[%s12493_s4 + $0x18] sm:$0xff] }
 0xb82   : > { %v6094_v14 = vpack.c.bf16 %v6073_v44, %v6072_v26 }
 0xb83   : > { %v9232_v22 = vpop.eup %9231 }
 0xb84   : > { %v9234_v36 = vpop.eup %9233  ;;  %8573 = vmatprep.mubr.msk.bf16.mxu0 %vm953_vm1, %v6094_v14  ;;  %v6080_v49 = vmul.f32 %v9232_v22, %v12188_v54 }
 0xb85   : > { %v9236_v13 = vpop.eup %9235  ;;  %8574 = vmatmul.mubr.msk.bf16.vlgmr.msra.gmra.mxu0 %vm953_vm1, %v6095_v52  ;;  %v6078_v48 = vmul.f32 %v9234_v36, %v12166_v51 }
 0xb86   : > { %v6098_v50 = vpack.c.bf16 %v6080_v49, %v6079_v16  ;;  %v6077_v21 = vmul.f32 %v9236_v13, %v12190_v38  ;;  %8598 = vmatpush3.msra.mxu0 %v455_v6 }
 0xb87   : > { %v9238_v19 = vpop.eup %9237  ;;  %v6097_v56 = vpack.c.bf16 %v6078_v48, %v6078_v48  ;;  %8643 = vmatprep.subr.mxu0 %v12662_v11 }
 0xb88   : > { %8589 = vmatprep.mubr.msk.bf16.mxu1 %vm953_vm1, %v6098_v50  ;;  %v6076_v31 = vmul.f32 %v9238_v19, %v12196_v46  ;;  %v9240_v51 = vpop.eup %9239 }
 0xb89   : > { %v9242_v38 = vpop.eup %9241  ;;  %v6082_v46 = vmul.f32 %v9240_v51, %v12172_v0 }
 0xb8a   : > { %v6096_v47 = vpack.c.bf16 %v6077_v21, %v6076_v31  ;;  %v6081_v23 = vmul.f32 %v9242_v38, %v12148_v5  ;;  %v9244_v43 = vpop.eup %9243  ;;  %v12367_v21 = vld [vmem:[%s12494_s5] ss:$0 sm:$0xff] }
 0xb8b   : > { %v9246_v55 = vpop.eup %9245  ;;  %v6085_v9 = vmul.f32 %v9244_v43, %v12174_v8 }
 0xb8c   : > { %8577 = vmatprep.mubr.msk.bf16.mxu0 %vm953_vm1, %v6096_v47  ;;  %v6099_v53 = vpack.c.bf16 %v6082_v46, %v6081_v23  ;;  %v6083_v0 = vmul.f32 %v9246_v55, %v12182_v29 }
 0xb8d   : > { %8578 = vmatmul.mubr.msk.bf16.gmra.mxu0 %vm953_vm1, %v6097_v56  ;;  %v6101_v18 = vpack.c.bf16 %v6085_v9, %v6085_v9 }
 0xb8e   : > { %8599 = vmatprep.mubr.msk.f32.mxu0 %vm9327_vm4, %v12662_v11 }
 0xba2   : > { %v6026_v54 = vpop.xlane.xlu0 %6025 }
 0xba3   : > { %9247 = vrcp.f32 %v6026_v54 }
 0xba6   : > { %v6373_v1 = vpop.permute.xlu0 %6372 }
 0xba7   : > { %8587 = vmatprep.subr.bf16.mxu1 %v6373_v1 }
 0xba8   : > { %8588 = vmatpush3.bf16.msra.mxu1 %v6373_v1 }
 0xba9   : > { %8620 = vmatprep.subr.mxu1 %v12662_v11 }
 0xbab   : > { %8590 = vmatmul.mubr.msk.bf16.vlgmr.msra.gmra.mxu1 %vm953_vm1, %v6099_v53 }
 0xbac   : > { %8621 = vmatpush3.msra.mxu1 %v455_v6 }
 0xbad   : > { %8666 = vmatprep.subr.mxu1 %v12662_v11 }
 0xbb0   : > { %v9248_v39 = vpop.eup %9247 }
 0xbb1   : > { %v6084_v63 = vmul.f32 %v9248_v39, %v12205_v62 }
 0xbb3   : > { %v6100_v5 = vpack.c.bf16 %v6084_v63, %v6083_v0 }
 0xbb5   : > { %8593 = vmatprep.mubr.msk.bf16.mxu1 %vm953_vm1, %v6100_v5 }
 0xbb6   : > { %8594 = vmatmul.mubr.msk.bf16.gmra.mxu1 %vm953_vm1, %v6101_v18 }
 0xbb7   : > { %8622 = vmatprep.mubr.msk.f32.mxu1 %vm9327_vm4, %v12662_v11 }
 0xc19   : > { %v8543_v35 = vpop.f32.mrf.mxu0 }
 0xc1b   : > { %v6162_v33 = vpop.f32.mrf.mxu0 }
 0xc1c   : > { %8600 = vmatmul.mubr.msk.f32.vlgmr.msra.gmra.mxu0 %vm492_vm0, %v6162_v33 }
 0xc1d   : > { %v8544_v45 = vpop.f32.mrf.mxu0  ;;  %v8559_v15 = vpop.f32.mrf.mxu1  ;;  %8602 = vmatprep.mubr.msk.f32.mxu0 %vm9327_vm4, %v12662_v11  ;;  %8644 = vmatpush3.msra.mxu0 %v455_v6 }
 0xc1f   : > { %v6165_v8 = vpop.f32.mrf.mxu0  ;;  %v6252_v29 = vpop.f32.mrf.mxu1 }
 0xc20   : > { %8603 = vmatmul.mubr.msk.f32.gmra.mxu0 %vm492_vm0, %v6165_v8  ;;  %8623 = vmatmul.mubr.msk.f32.vlgmr.msra.gmra.mxu1 %vm492_vm0, %v6252_v29 }
 0xc21   : > { %v8560_v62 = vpop.f32.mrf.mxu1  ;;  %8605 = vmatprep.mubr.msk.f32.mxu0 %vm9327_vm4, %v12662_v11  ;;  %8625 = vmatprep.mubr.msk.f32.mxu1 %vm9327_vm4, %v12662_v11 }
 0xc22   : > { %8667 = vmatpush3.msra.mxu1 %v455_v6 }
 0xc23   : > { %v6255_v34 = vpop.f32.mrf.mxu1 }
 0xc24   : > { %8606 = vmatmul.mubr.msk.f32.gmra.mxu0 %vm492_vm0, %v8543_v35  ;;  %8626 = vmatmul.mubr.msk.f32.gmra.mxu1 %vm492_vm0, %v6255_v34 }
 0xc25   : > { %8608 = vmatprep.mubr.msk.f32.mxu0 %vm9327_vm4, %v12662_v11  ;;  %8628 = vmatprep.mubr.msk.f32.mxu1 %vm9327_vm4, %v12662_v11 }
 0xc26   : > { %v8547_v60 = vpop.f32.mrf.mxu0 }
 0xc28   : > { %v6178_v2 = vpop.f32.mrf.mxu0  ;;  %8609 = vmatmul.mubr.msk.f32.gmra.mxu0 %vm492_vm0, %v8544_v45  ;;  %8629 = vmatmul.mubr.msk.f32.gmra.mxu1 %vm492_vm0, %v8559_v15 }
 0xc29   : > { %8611 = vmatprep.mubr.msk.f32.mxu0 %vm9327_vm4, %v12662_v11  ;;  %8631 = vmatprep.mubr.msk.f32.mxu1 %vm9327_vm4, %v12662_v11 }
 0xc2a   : > { %v8548_v10 = vpop.f32.mrf.mxu0  ;;  %v8563_v12 = vpop.f32.mrf.mxu1 }
 0xc2c   : > { %v6268_v24 = vpop.f32.mrf.mxu1  ;;  %8612 = vmatmul.mubr.msk.f32.gmra.mxu0 %vm492_vm0, %v6178_v2  ;;  %8632 = vmatmul.mubr.msk.f32.gmra.mxu1 %vm492_vm0, %v8560_v62  ;;  %v6181_v59 = vpop.f32.mrf.mxu0 }
 0xc2d   : > { %8614 = vmatprep.mubr.msk.f32.mxu0 %vm9327_vm4, %v12662_v11  ;;  %8634 = vmatprep.mubr.msk.f32.mxu1 %vm9327_vm4, %v12662_v11 }
 0xc2e   : > { %v8564_v32 = vpop.f32.mrf.mxu1 }
 0xc30   : > { %8615 = vmatmul.mubr.msk.f32.gmra.mxu0 %vm492_vm0, %v6181_v59  ;;  %8635 = vmatmul.mubr.msk.f32.gmra.mxu1 %vm492_vm0, %v6268_v24  ;;  %v6271_v37 = vpop.f32.mrf.mxu1 }
 0xc31   : > { %8617 = vmatprep.mubr.msk.f32.mxu0 %vm9327_vm4, %v12662_v11  ;;  %8637 = vmatprep.mubr.msk.f32.mxu1 %vm9327_vm4, %v12662_v11 }
 0xc34   : > { %8618 = vmatmul.mubr.msk.f32.gmra.mxu0 %vm492_vm0, %v8547_v60  ;;  %8638 = vmatmul.mubr.msk.f32.gmra.mxu1 %vm492_vm0, %v6271_v37 }
 0xc35   : > { %8640 = vmatprep.mubr.msk.f32.mxu1 %vm9327_vm4, %v12662_v11  ;;  %8645 = vmatprep.mubr.msk.f32.mxu0 %vm9327_vm4, %v12662_v11 }
 0xc38   : > { %8641 = vmatmul.mubr.msk.f32.gmra.mxu1 %vm492_vm0, %v8563_v12 }
 0xc39   : > { %8668 = vmatprep.mubr.msk.f32.mxu1 %vm9327_vm4, %v12662_v11 }
 0xc45   : > { %v8575_v40 = vpop.f32.mrf.mxu0 }
 0xc47   : > { %v6342_v42 = vpop.f32.mrf.mxu0 }
 0xc48   : > { %8646 = vmatmul.mubr.msk.f32.vlgmr.msra.gmra.mxu0 %vm492_vm0, %v6342_v42  ;;  %v12707_v42 = vld [vmem:[#allocation31_spill] sm:$0xff] }
 0xc49   : > { %v8576_v26 = vpop.f32.mrf.mxu0  ;;  %8648 = vmatprep.mubr.msk.f32.mxu0 %vm9327_vm4, %v12662_v11 }
 0xc4b   : > { %v6345_v44 = vpop.f32.mrf.mxu0 }
 0xc4c   : > { %8649 = vmatmul.mubr.msk.f32.gmra.mxu0 %vm492_vm0, %v6345_v44 }
 0xc4d   : > { %v8579_v20 = vpop.f32.mrf.mxu0  ;;  %8651 = vmatprep.mubr.msk.f32.mxu0 %vm9327_vm4, %v12662_v11 }
 0xc4f   : > { %v6358_v27 = vpop.f32.mrf.mxu0 }
 0xc50   : > { %8652 = vmatmul.mubr.msk.f32.gmra.mxu0 %vm492_vm0, %v8575_v40 }
 0xc51   : > { %v8580_v14 = vpop.f32.mrf.mxu0  ;;  %8654 = vmatprep.mubr.msk.f32.mxu0 %vm9327_vm4, %v12662_v11 }
 0xc53   : > { %v6361_v22 = vpop.f32.mrf.mxu0 }
 0xc54   : > { %8655 = vmatmul.mubr.msk.f32.gmra.mxu0 %vm492_vm0, %v8576_v26 }
 0xc55   : > { %8657 = vmatprep.mubr.msk.f32.mxu0 %vm9327_vm4, %v12662_v11 }
 0xc58   : > { %8658 = vmatmul.mubr.msk.f32.gmra.mxu0 %vm492_vm0, %v6358_v27 }
 0xc59   : > { %8660 = vmatprep.mubr.msk.f32.mxu0 %vm9327_vm4, %v12662_v11 }
 0xc5c   : > { %8661 = vmatmul.mubr.msk.f32.gmra.mxu0 %vm492_vm0, %v6361_v22 }
 0xc5d   : > { %8663 = vmatprep.mubr.msk.f32.mxu0 %vm9327_vm4, %v12662_v11 }
 0xc60   : > { %8664 = vmatmul.mubr.msk.f32.gmra.mxu0 %vm492_vm0, %v8579_v20 }
 0xc6b   : > { %v8591_v52 = vpop.f32.mrf.mxu1 }
 0xc6d   : > { %v6432_v36 = vpop.f32.mrf.mxu1 }
 0xc6e   : > { %8669 = vmatmul.mubr.msk.f32.vlgmr.msra.gmra.mxu1 %vm492_vm0, %v6432_v36 }
 0xc6f   : > { %v8592_v16 = vpop.f32.mrf.mxu1  ;;  %8671 = vmatprep.mubr.msk.f32.mxu1 %vm9327_vm4, %v12662_v11 }
 0xc71   : > { %v6435_v49 = vpop.f32.mrf.mxu1 }
 0xc72   : > { %8672 = vmatmul.mubr.msk.f32.gmra.mxu1 %vm492_vm0, %v6435_v49 }
 0xc73   : > { %8674 = vmatprep.mubr.msk.f32.mxu1 %vm9327_vm4, %v12662_v11 }
 0xc76   : > { %v8595_v13 = vpop.f32.mrf.mxu1  ;;  %8675 = vmatmul.mubr.msk.f32.gmra.mxu1 %vm492_vm0, %v8591_v52  ;;  %v12709_v52 = vld [vmem:[#allocation28_spill] sm:$0xff] }
 0xc77   : > { %8677 = vmatprep.mubr.msk.f32.mxu1 %vm9327_vm4, %v12662_v11 }
 0xc78   : > { %v6448_v50 = vpop.f32.mrf.mxu1 }
 0xc7a   : > { %v8596_v19 = vpop.f32.mrf.mxu1  ;;  %8678 = vmatmul.mubr.msk.f32.gmra.mxu1 %vm492_vm0, %v8592_v16 }
 0xc7b   : > { %8680 = vmatprep.mubr.msk.f32.mxu1 %vm9327_vm4, %v12662_v11 }
 0xc7c   : > { %v6451_v48 = vpop.f32.mrf.mxu1 }
 0xc7e   : > { %8681 = vmatmul.mubr.msk.f32.gmra.mxu1 %vm492_vm0, %v6448_v50  ;;  %v12710_v50 = vld [vmem:[#allocation5_spill] sm:$0xff] }
 0xc7f   : > { %8683 = vmatprep.mubr.msk.f32.mxu1 %vm9327_vm4, %v12662_v11 }
 0xc82   : > { %8684 = vmatmul.mubr.msk.f32.gmra.mxu1 %vm492_vm0, %v6451_v48 }
 0xc83   : > { %8686 = vmatprep.mubr.msk.f32.mxu1 %vm9327_vm4, %v12662_v11 }
 0xc86   : > { %8687 = vmatmul.mubr.msk.f32.gmra.mxu1 %vm492_vm0, %v8595_v13 }
 0xcdc   : > { %v6549_v31 = vpop.f32.mrf.mxu0 }
 0xcdd   : > { %v6946_v47 = vadd.f32 %v6549_v31, %v11783_v41 }
 0xcde   : > { %v8601_v11 = vpop.f32.mrf.mxu0 }
 0xcdf   : > { %v6981_v56 = vadd.f32 %v12367_v21, %v6946_v47  ;;  %v12711_v11 = vld [vmem:[#allocation2_spill] sm:$0xff] }
 0xce0   : > { %v6554_v6 = vpop.f32.mrf.mxu0  ;;  %v6670_v51 = vpop.f32.mrf.mxu1 }
 0xce1   : > { %7010 = vst.msk [vmem:[%s12373_s19] sm:$0xff] %vm7009_vm5, %v6981_v56  ;;  %v6947_v54 = vadd.f32 %v6554_v6, %v11786_v7  ;;  %v6953_v41 = vadd.f32 %v6670_v51, %v11789_v58 }
 0xce2   : > { %v8604_v38 = vpop.f32.mrf.mxu0  ;;  %v8624_v46 = vpop.f32.mrf.mxu1 }
 0xce3   : > { %v6982_v1 = vadd.f32 %v12367_v21, %v6947_v54  ;;  %v6988_v23 = vadd.f32 %v12367_v21, %v6953_v41  ;;  %v12712_v41 = vld [vmem:[#allocation6_spill] sm:$0xff] }
 0xce4   : > { %v6559_v53 = vpop.f32.mrf.mxu0  ;;  %v6675_v43 = vpop.f32.mrf.mxu1 }
 0xce5   : > { %7011 = vst.msk [vmem:[%s12373_s19 + $0x8] sm:$0xff] %vm7009_vm5, %v6982_v1  ;;  %7018 = vst.msk [vmem:[%s12373_s19 + $0x38] sm:$0xff] %vm7009_vm5, %v6988_v23  ;;  %v6948_v55 = vadd.f32 %v6559_v53, %v11792_v3  ;;  %v6954_v7 = vadd.f32 %v6675_v43, %v11795_v61  ;;  %v12713_v53 = vld [vmem:[#allocation3_spill] sm:$0xff] }
 0xce6   : > { %v8607_v39 = vpop.f32.mrf.mxu0  ;;  %v8627_v58 = vpop.f32.mrf.mxu1 }
 0xce7   : > { %v6983_v9 = vadd.f32 %v12367_v21, %v6948_v55  ;;  %v6989_v0 = vadd.f32 %v12367_v21, %v6954_v7  ;;  %v12714_v58 = vld [vmem:[#allocation4_spill] sm:$0xff] }
 0xce8   : > { %v6564_v63 = vpop.f32.mrf.mxu0  ;;  %v6680_v5 = vpop.f32.mrf.mxu1 }
 0xce9   : > { %7012 = vst.msk [vmem:[%s12373_s19 + $0x10] sm:$0xff] %vm7009_vm5, %v6983_v9  ;;  %7019 = vst.msk [vmem:[%s12373_s19 + $0x40] sm:$0xff] %vm7009_vm5, %v6989_v0  ;;  %v6949_v18 = vadd.f32 %v6564_v63, %v11798_v28  ;;  %v6955_v3 = vadd.f32 %v6680_v5, %v11801_v17 }
 0xcea   : > { %v8610_v35 = vpop.f32.mrf.mxu0  ;;  %v8630_v61 = vpop.f32.mrf.mxu1 }
 0xceb   : > { %v6984_v33 = vadd.f32 %v12367_v21, %v6949_v18  ;;  %v6990_v45 = vadd.f32 %v12367_v21, %v6955_v3  ;;  %v12715_v18 = vld [vmem:[#allocation21_spill] sm:$0xff] }
 0xcec   : > { %v6569_v15 = vpop.f32.mrf.mxu0  ;;  %v6685_v8 = vpop.f32.mrf.mxu1 }
 0xced   : > { %7013 = vst.msk [vmem:[%s12373_s19 + $0x18] sm:$0xff] %vm7009_vm5, %v6984_v33  ;;  %7020 = vst.msk [vmem:[%s12373_s19 + $0x48] sm:$0xff] %vm7009_vm5, %v6990_v45  ;;  %v6950_v29 = vadd.f32 %v6569_v15, %v11804_v25  ;;  %v6956_v28 = vadd.f32 %v6685_v8, %v11807_v30  ;;  %v12716_v45 = vld [vmem:[#allocation18_spill] sm:$0xff] }
 0xcee   : > { %v8613_v62 = vpop.f32.mrf.mxu0  ;;  %v8633_v17 = vpop.f32.mrf.mxu1 }
 0xcef   : > { %v6985_v34 = vadd.f32 %v12367_v21, %v6950_v29  ;;  %v6991_v60 = vadd.f32 %v12367_v21, %v6956_v28  ;;  %v12717_v62 = vld [vmem:[#allocation10_spill] sm:$0xff] }
 0xcf0   : > { %v6574_v2 = vpop.f32.mrf.mxu0  ;;  %v6690_v10 = vpop.f32.mrf.mxu1 }
 0xcf1   : > { %7014 = vst.msk [vmem:[%s12373_s19 + $0x20] sm:$0xff] %vm7009_vm5, %v6985_v34  ;;  %7021 = vst.msk [vmem:[%s12373_s19 + $0x50] sm:$0xff] %vm7009_vm5, %v6991_v60  ;;  %v6951_v12 = vadd.f32 %v6574_v2, %v11810_v57  ;;  %v6957_v25 = vadd.f32 %v6690_v10, %v11813_v4  ;;  %v12708_v57 = vld [vmem:[#allocation33_spill] sm:$0xff]  ;;  %v12718_v10 = vld [vmem:[#allocation15_spill] sm:$0xff] }
 0xcf2   : > { %v8616_v24 = vpop.f32.mrf.mxu0  ;;  %v8636_v30 = vpop.f32.mrf.mxu1 }
 0xcf3   : > { %v6986_v32 = vadd.f32 %v12367_v21, %v6951_v12  ;;  %v6992_v59 = vadd.f32 %v12367_v21, %v6957_v25 }
 0xcf4   : > { %v6579_v37 = vpop.f32.mrf.mxu0  ;;  %v6695_v40 = vpop.f32.mrf.mxu1 }
 0xcf5   : > { %7015 = vst.msk [vmem:[%s12373_s19 + $0x28] sm:$0xff] %vm7009_vm5, %v6986_v32  ;;  %7022 = vst.msk [vmem:[%s12373_s19 + $0x58] sm:$0xff] %vm7009_vm5, %v6992_v59  ;;  %v6952_v26 = vadd.f32 %v6579_v37, %v12707_v42  ;;  %v6958_v44 = vadd.f32 %v6695_v40, %v12708_v57  ;;  %v12719_v32 = vld [vmem:[#allocation22_spill] sm:$0xff] }
 0xcf6   : > { %v8619_v4 = vpop.f32.mrf.mxu0  ;;  %v8639_v20 = vpop.f32.mrf.mxu1 }
 0xcf7   : > { %v6987_v27 = vadd.f32 %v12367_v21, %v6952_v26  ;;  %v6993_v14 = vadd.f32 %v12367_v21, %v6958_v44  ;;  %v12720_v26 = vld [vmem:[#allocation7_spill] sm:$0xff] }
 0xcf8   : > { %v6700_v22 = vpop.f32.mrf.mxu1 }
 0xcf9   : > { %7017 = vst.msk [vmem:[%s12373_s19 + $0x30] sm:$0x1] %vm7016_vm6, %v6987_v27  ;;  %v6959_v36 = vadd.f32 %v6700_v22, %v12709_v52  ;;  %v12721_v27 = vld [vmem:[#allocation23_spill] sm:$0xff] }
 0xcfa   : > { %7023 = vst.msk [vmem:[%s12373_s19 + $0x60] sm:$0xff] %vm7009_vm5, %v6993_v14  ;;  %v8642_v16 = vpop.f32.mrf.mxu1 }
 0xcfb   : > { %v6994_v49 = vadd.f32 %v12367_v21, %v6959_v36  ;;  %v12722_v16 = vld [vmem:[#allocation20_spill] sm:$0xff] }
 0xcfd   : > { %7024 = vst.msk [vmem:[%s12373_s19 + $0x68] sm:$0x1] %vm7016_vm6, %v6994_v49 }
 0xd08   : > { %v6791_v13 = vpop.f32.mrf.mxu0 }
 0xd09   : > { %v6960_v19 = vadd.f32 %v6791_v13, %v12710_v50 }
 0xd0a   : > { %v8647_v48 = vpop.f32.mrf.mxu0 }
 0xd0b   : > { %v6995_v31 = vadd.f32 %v12367_v21, %v6960_v19  ;;  %v12723_v48 = vld [vmem:[#allocation8_spill] sm:$0xff] }
 0xd0c   : > { %v6796_v47 = vpop.f32.mrf.mxu0 }
 0xd0d   : > { %7025 = vst.msk [vmem:[%s12373_s19 + $0x70] sm:$0xff] %vm7009_vm5, %v6995_v31  ;;  %v6961_v56 = vadd.f32 %v6796_v47, %v12711_v11 }
 0xd0e   : > { %v8650_v6 = vpop.f32.mrf.mxu0 }
 0xd0f   : > { %v6996_v51 = vadd.f32 %v12367_v21, %v6961_v56 }
 0xd10   : > { %v6801_v54 = vpop.f32.mrf.mxu0 }
 0xd11   : > { %7026 = vst.msk [vmem:[%s12373_s19 + $0x78] sm:$0xff] %vm7009_vm5, %v6996_v51  ;;  %v6962_v38 = vadd.f32 %v6801_v54, %v12712_v41 }
 0xd12   : > { %v8653_v46 = vpop.f32.mrf.mxu0 }
 0xd13   : > { %v6997_v1 = vadd.f32 %v12367_v21, %v6962_v38 }
 0xd14   : > { %v6806_v23 = vpop.f32.mrf.mxu0 }
 0xd15   : > { %7027 = vst.msk [vmem:[%s12373_s19 + $0x80] sm:$0xff] %vm7009_vm5, %v6997_v1  ;;  %v6963_v43 = vadd.f32 %v6806_v23, %v12713_v53 }
 0xd16   : > { %v8656_v55 = vpop.f32.mrf.mxu0 }
 0xd17   : > { %v6998_v7 = vadd.f32 %v12367_v21, %v6963_v43 }
 0xd18   : > { %v6811_v39 = vpop.f32.mrf.mxu0 }
 0xd19   : > { %7028 = vst.msk [vmem:[%s12373_s19 + $0x88] sm:$0xff] %vm7009_vm5, %v6998_v7  ;;  %v6964_v9 = vadd.f32 %v6811_v39, %v12714_v58 }
 0xd1a   : > { %v8659_v0 = vpop.f32.mrf.mxu0 }
 0xd1b   : > { %v6999_v63 = vadd.f32 %v12367_v21, %v6964_v9 }
 0xd1c   : > { %v6816_v5 = vpop.f32.mrf.mxu0 }
 0xd1d   : > { %7029 = vst.msk [vmem:[%s12373_s19 + $0x90] sm:$0xff] %vm7009_vm5, %v6999_v63  ;;  %v6965_v3 = vadd.f32 %v6816_v5, %v12715_v18 }
 0xd1e   : > { %v8662_v35 = vpop.f32.mrf.mxu0 }
 0xd1f   : > { %v7000_v61 = vadd.f32 %v12367_v21, %v6965_v3 }
 0xd20   : > { %v6821_v33 = vpop.f32.mrf.mxu0 }
 0xd21   : > { %7030 = vst.msk [vmem:[%s12373_s19 + $0x98] sm:$0xff] %vm7009_vm5, %v7000_v61  ;;  %v6966_v15 = vadd.f32 %v6821_v33, %v12716_v45 }
 0xd22   : > { %v8665_v8 = vpop.f32.mrf.mxu0 }
 0xd23   : > { %v7001_v29 = vadd.f32 %v12367_v21, %v6966_v15 }
 0xd25   : > { %7031 = vst.msk [vmem:[%s12373_s19 + $0xa0] sm:$0x1] %vm7016_vm6, %v7001_v29 }
 0xd2e   : > { %v6912_v28 = vpop.f32.mrf.mxu1 }
 0xd2f   : > { %v6967_v17 = vadd.f32 %v6912_v28, %v12717_v62 }
 0xd30   : > { %v8670_v34 = vpop.f32.mrf.mxu1 }
 0xd31   : > { %v7002_v60 = vadd.f32 %v12367_v21, %v6967_v17 }
 0xd32   : > { %v6917_v2 = vpop.f32.mrf.mxu1 }
 0xd33   : > { %7032 = vst.msk [vmem:[%s12373_s19 + $0xa8] sm:$0xff] %vm7009_vm5, %v7002_v60  ;;  %v6968_v12 = vadd.f32 %v6917_v2, %v12718_v10 }
 0xd34   : > { %v8673_v25 = vpop.f32.mrf.mxu1 }
 0xd35   : > { %v7003_v24 = vadd.f32 %v12367_v21, %v6968_v12 }
 0xd36   : > { %v6922_v30 = vpop.f32.mrf.mxu1 }
 0xd37   : > { %7033 = vst.msk [vmem:[%s12373_s19 + $0xb0] sm:$0xff] %vm7009_vm5, %v7003_v24  ;;  %v6969_v59 = vadd.f32 %v6922_v30, %v12719_v32 }
 0xd38   : > { %v8676_v37 = vpop.f32.mrf.mxu1 }
 0xd39   : > { %v7004_v40 = vadd.f32 %v12367_v21, %v6969_v59 }
 0xd3a   : > { %v6927_v42 = vpop.f32.mrf.mxu1 }
 0xd3b   : > { %7034 = vst.msk [vmem:[%s12373_s19 + $0xb8] sm:$0xff] %vm7009_vm5, %v7004_v40  ;;  %v6970_v57 = vadd.f32 %v6927_v42, %v12720_v26 }
 0xd3c   : > { %v8679_v44 = vpop.f32.mrf.mxu1 }
 0xd3d   : > { %v7005_v4 = vadd.f32 %v12367_v21, %v6970_v57 }
 0xd3e   : > { %v6932_v20 = vpop.f32.mrf.mxu1 }
 0xd3f   : > { %7035 = vst.msk [vmem:[%s12373_s19 + $0xc0] sm:$0xff] %vm7009_vm5, %v7005_v4  ;;  %v6971_v14 = vadd.f32 %v6932_v20, %v12721_v27 }
 0xd40   : > { %v8682_v22 = vpop.f32.mrf.mxu1 }
 0xd41   : > { %v7006_v52 = vadd.f32 %v12367_v21, %v6971_v14 }
 0xd42   : > { %v6937_v36 = vpop.f32.mrf.mxu1 }
 0xd43   : > { %7036 = vst.msk [vmem:[%s12373_s19 + $0xc8] sm:$0xff] %vm7009_vm5, %v7006_v52  ;;  %v6972_v49 = vadd.f32 %v6937_v36, %v12722_v16 }
 0xd44   : > { %v8685_v13 = vpop.f32.mrf.mxu1 }
 0xd45   : > { %v7007_v50 = vadd.f32 %v12367_v21, %v6972_v49 }
 0xd46   : > { %v6942_v19 = vpop.f32.mrf.mxu1 }
 0xd47   : > { %7037 = vst.msk [vmem:[%s12373_s19 + $0xd0] sm:$0xff] %vm7009_vm5, %v7007_v50  ;;  %v6973_v31 = vadd.f32 %v6942_v19, %v12723_v48 }
 0xd48   : > { %v8688_v47 = vpop.f32.mrf.mxu1 }
 0xd49   : > { %v7008_v11 = vadd.f32 %v12367_v21, %v6973_v31 }
 0xd4b   : > { %7038 = vst.msk [vmem:[%s12373_s19 + $0xd8] sm:$0x1] %vm7016_vm6, %v7008_v11 }
 0xd4c PF: > { %s16_s21 = sadd.s32 1, %s9321_s21  }
 0xd4d   : > { %p13_p4 = scmp.ge.s32.totalorder %s16_s21, 4  }
 0xd4f   :  { %15 = sbr.rel (!%p13_p4) target bundleno = 1 (0x1), region = 80 }

</bundles_post_ra>
